<compile_context>
chip_gen: v6e
topology: v6e:2x2x1
jax: 0.10.0
libtpu: 0.0.40
codegen_flags: <defaults>
</compile_context>

<pallas_src>
import functools

import jax
import jax.numpy as jnp
from jax.experimental import pallas as pl
from jax.experimental.pallas import tpu as pltpu


# ----------------------------------------------------------------------------
# In-kernel math helpers
# ----------------------------------------------------------------------------

def _erf(x):
    """erf via Abramowitz & Stegun 7.1.26 (|error| <= 1.5e-7).

    Uses exp / mul / add / EUP reciprocal only, so it lowers on the TPU
    VPU/EUP.  approx=True keeps the divide off the saturating VALU path; its
    ~2^-12 relative error is far inside the test error budget.
    """
    p = 0.3275911
    a1, a2, a3, a4, a5 = (0.254829592, -0.284496736, 1.421413741,
                          -1.453152027, 1.061405429)
    sgn = jnp.where(x >= 0.0, 1.0, -1.0)
    ax = jnp.abs(x)
    t = pl.reciprocal(1.0 + p * ax, approx=True)
    poly = ((((a5 * t + a4) * t + a3) * t + a2) * t + a1) * t
    return sgn * (1.0 - poly * jnp.exp(-ax * ax))


def _gelu_exact(x):
    # Matches PyTorch nn.GELU() default (erf formulation), not the tanh approx.
    return 0.5 * x * (1.0 + _erf(x * 0.7071067811865476))


def _relu(x):
    return jnp.maximum(x, 0.0)


# ----------------------------------------------------------------------------
# Fused Pallas kernel (one grid step == one group of whole images)
# ----------------------------------------------------------------------------

def _bottleneck_kernel(*refs, W, with_res_proj, use_bf16_matmul):
    """Fused UNetBottleneck forward; channels on sublanes, B*H*W on lanes."""
    (x_ref, rad_ref, mask_ref,
     dw1_w_ref, dw1_b_ref, m1_w1_ref, m1_b1_ref, m1_w2_ref, m1_b2_ref,
     dw2_w_ref, dw2_b_ref, m2_w1_ref, m2_b1_ref, m2_w2_ref, m2_b2_ref) = refs[:15]
    idx = 15
    if with_res_proj:
        wres_ref = refs[idx]
        idx += 1
    (kp_w1_ref, kp_b1_ref, kp_w2_ref, kp_b2_ref,
     conv_ref, filt_ref) = refs[idx:idx + 6]

    N = x_ref.shape[-1]                              # images_per_block * H * W

    # Border-validity masks (9, N) -- hoist the 9 row slices ONCE and reuse in
    # both depthwise convs and the per-pixel filter loop (no repeated slicing
    # / broadcast materialization per tap loop).
    mask = mask_ref[...]
    mask_rows = tuple(mask[t:t + 1, :] for t in range(9))
    # tap t = (dy, dx) with dy = t//3 - 1, dx = t%3 - 1;  out[p] = in[p + dy*W+dx]
    shifts = tuple((-((t // 3 - 1) * W + (t % 3 - 1))) % N for t in range(9))

    def tap(v, t):
        s = shifts[t]
        y = v if s == 0 else pltpu.roll(v, shift=s, axis=1)
        if t == 4:                                   # centre tap: mask all-ones
            return y
        # mask zeroes every lane whose (dy,dx) neighbour falls outside its own
        # image -- this is what makes the roll over the folded (B*H*W) lane
        # axis correct (no cross-image leakage, no wrap-around leakage).
        return y * mask_rows[t]

    def dwconv3x3(v, w, b):                          # v (C,N), w (C,9), b (C,1)
        acc = tap(v, 0) * w[:, 0:1]
        for t in range(1, 9):
            acc = acc + tap(v, t) * w[:, t:t + 1]
        return acc + b

    mm_dtype = jnp.bfloat16 if use_bf16_matmul else jnp.float32

    def matmul(w, v):                                # (O,I) @ (I,N), f32 acc
        return jnp.dot(w.astype(mm_dtype), v.astype(mm_dtype),
                       preferred_element_type=jnp.float32)

    def mlp(v, w1, b1, w2, b2, act):                 # per-pixel 1x1-conv MLP
        h = matmul(w1, v) + b1
        return matmul(w2, act(h)) + b2

    x = x_ref[...].astype(jnp.float32)               # (Cin, N)
    rad = rad_ref[...].astype(jnp.float32)           # (Cr,  N)

    # --- KernelMatchingFormer 1 (cin -> cin): identity residual --------------
    y1 = dwconv3x3(x, dw1_w_ref[...], dw1_b_ref[...])
    h1 = mlp(y1, m1_w1_ref[...], m1_b1_ref[...],
             m1_w2_ref[...], m1_b2_ref[...], _gelu_exact) + x

    # --- KernelMatchingFormer 2 (cin -> cout) ---------------------------------
    y2 = dwconv3x3(h1, dw2_w_ref[...], dw2_b_ref[...])
    conv = mlp(y2, m2_w1_ref[...], m2_b1_ref[...],
               m2_w2_ref[...], m2_b2_ref[...], _gelu_exact)
    if with_res_proj:                                # only when cin != cout
        conv = conv + matmul(wres_ref[...], h1)
    else:                                            # skip the identity matmul
        conv = conv + h1

    # --- kernel predictor: ChannelMlp(cout, 9, 2), softmax over the 9 taps ---
    logits = mlp(conv, kp_w1_ref[...], kp_b1_ref[...],
                 kp_w2_ref[...], kp_b2_ref[...], _relu)        # (9, N)
    e = jnp.exp(logits - jnp.max(logits, axis=0, keepdims=True))
    ker = e * pl.reciprocal(jnp.sum(e, axis=0, keepdims=True), approx=True)

    # --- PerPixelConv(3): per-pixel 3x3 kernel-prediction filter -------------
    filt = tap(rad, 0) * ker[0:1, :]
    for t in range(1, 9):
        filt = filt + tap(rad, t) * ker[t:t + 1, :]

    conv_ref[...] = conv.astype(conv_ref.dtype)      # whole-tile stores only
    filt_ref[...] = filt.astype(filt_ref.dtype)


# ----------------------------------------------------------------------------
# Host-side wrapper
# ----------------------------------------------------------------------------

def _tap_border_masks(H, W):
    """(9, H*W) f32 validity masks for the 3x3 zero-padded neighbourhood."""
    r = jnp.repeat(jnp.arange(H, dtype=jnp.int32), W)
    c = jnp.tile(jnp.arange(W, dtype=jnp.int32), H)
    rows = []
    for dy in (-1, 0, 1):
        for dx in (-1, 0, 1):
            ok = ((r + dy >= 0) & (r + dy < H) & (c + dx >= 0) & (c + dx < W))
            rows.append(ok.astype(jnp.float32))
    return jnp.stack(rows, axis=0)


def unet_bottleneck_forward(params, input_nchw, radiance_nchw,
                            *, images_per_block=None, use_bf16_matmul=True):
    """Forward pass of UNetBottleneck.  Inputs / outputs are NCHW (PyTorch)."""
    B, Cin, H, W = input_nchw.shape
    Cr = radiance_nchw.shape[1]
    HW = H * W
    p1, p2, kp = params["kmf1"], params["kmf2"], params["kernel_predictor"]
    Cout = p2["w2"].shape[0]
    with_res_proj = (Cin != Cout)                    # shape-gated, not value-gated

    # All whole images in one block unless the caller asks for smaller groups.
    ipb = B if images_per_block is None else images_per_block
    assert B % ipb == 0, "images_per_block must divide the batch size"
    num_blocks = B // ipb
    N = ipb * HW
    if num_blocks > 1:
        assert N % 128 == 0, "lane block must be a multiple of 128"

    # Fold batch into the lane axis: (B, C, H, W) -> (C, B*H*W).  The small
    # host-side transpose is a one-off XLA op; inside the kernel everything is
    # lane-dense and every matmul sees N = images_per_block*H*W lanes.
    x = jnp.transpose(input_nchw, (1, 0, 2, 3)).reshape(Cin, B * HW)
    rad = jnp.transpose(radiance_nchw, (1, 0, 2, 3)).reshape(Cr, B * HW)
    masks = jnp.tile(_tap_border_masks(H, W), (1, ipb))         # (9, N)

    # bf16 operands for the MXU (1x1 convs + residual projection); depthwise
    # weights and biases stay f32 (VPU path).
    mmw = (lambda a: a.astype(jnp.bfloat16)) if use_bf16_matmul else (lambda a: a)

    ins = [x, rad, masks,
           p1["dw_w"], p1["dw_b"], mmw(p1["w1"]), p1["b1"], mmw(p1["w2"]), p1["b2"],
           p2["dw_w"], p2["dw_b"], mmw(p2["w1"]), p2["b1"], mmw(p2["w2"]), p2["b2"]]
    if with_res_proj:
        ins.append(mmw(p2["wres"]))
    ins += [mmw(kp["w1"]), kp["b1"], mmw(kp["w2"]), kp["b2"]]

    def act_spec(c):                                 # blocked over image groups
        return pl.BlockSpec((c, N), lambda g: (0, g))

    def full_spec(shape):                            # grid-invariant params
        nd = len(shape)
        return pl.BlockSpec(shape, lambda g: (0,) * nd)

    in_specs = [act_spec(Cin), act_spec(Cr)]
    in_specs += [full_spec(a.shape) for a in ins[2:]]

    kern = functools.partial(_bottleneck_kernel, W=W,
                             with_res_proj=with_res_proj,
                             use_bf16_matmul=use_bf16_matmul)

    conv, filt = pl.pallas_call(
        kern,
        out_shape=(jax.ShapeDtypeStruct((Cout, B * HW), input_nchw.dtype),
                   jax.ShapeDtypeStruct((Cr, B * HW), radiance_nchw.dtype)),
        grid=(num_blocks,),
        in_specs=in_specs,
        out_specs=(act_spec(Cout), act_spec(Cr)),
        compiler_params=pltpu.CompilerParams(
            dimension_semantics=("parallel",),       # image groups are independent
            vmem_limit_bytes=32 * 1024 * 1024),      # safe on v5e/v6e/v7x
    )(*ins)

    conv = jnp.transpose(conv.reshape(Cout, B, H, W), (1, 0, 2, 3))
    filt = jnp.transpose(filt.reshape(Cr, B, H, W), (1, 0, 2, 3))
    return conv, filt


# ----------------------------------------------------------------------------
# Pure-JAX reference (no Pallas) for correctness checking
# ----------------------------------------------------------------------------

def _reference_forward(params, input_nchw, radiance_nchw):
    B, Cin, H, W = input_nchw.shape
    hp = jax.lax.Precision.HIGHEST

    def conv1x1(v, w, b):
        return (jnp.einsum("oc,bchw->bohw", w, v, precision=hp)
                + b.reshape(1, -1, 1, 1))

    def dwconv3x3(v, w, b):
        vp = jnp.pad(v, ((0, 0), (0, 0), (1, 1), (1, 1)))
        out = jnp.zeros_like(v) + b.reshape(1, -1, 1, 1)
        t = 0
        for dy in range(3):
            for dx in range(3):
                out = out + vp[:, :, dy:dy + H, dx:dx + W] * w[:, t].reshape(1, -1, 1, 1)
                t += 1
        return out

    def kmf(v, p, res_proj):
        y = dwconv3x3(v, p["dw_w"], p["dw_b"])
        h = conv1x1(jax.nn.gelu(conv1x1(y, p["w1"], p["b1"]), approximate=False),
                    p["w2"], p["b2"])
        if res_proj:
            return h + jnp.einsum("oc,bchw->bohw", p["wres"], v, precision=hp)
        return h + v

    p1, p2, kp = params["kmf1"], params["kmf2"], params["kernel_predictor"]
    Cout = p2["w2"].shape[0]
    h1 = kmf(input_nchw, p1, res_proj=False)
    conv = kmf(h1, p2, res_proj=(Cin != Cout))

    logits = conv1x1(jnp.maximum(conv1x1(conv, kp["w1"], kp["b1"]), 0.0),
                     kp["w2"], kp["b2"])
    ker = jax.nn.softmax(logits, axis=1)                       # (B, 9, H, W)

    radp = jnp.pad(radiance_nchw, ((0, 0), (0, 0), (1, 1), (1, 1)))
    filt = jnp.zeros_like(radiance_nchw)
    t = 0
    for dy in range(3):
        for dx in range(3):
            filt = filt + radp[:, :, dy:dy + H, dx:dx + W] * ker[:, t:t + 1]
            t += 1
    return conv, filt


# ----------------------------------------------------------------------------
# Deterministic parameter init (synthetic; shapes follow the module __init__)
# ----------------------------------------------------------------------------

def init_kmf(key, cin, cout):
    ks = jax.random.split(key, 7)
    hd = 2 * cin
    p = dict(
        dw_w=0.1 * jax.random.normal(ks[0], (cin, 9), jnp.float32),
        dw_b=0.05 * jax.random.normal(ks[1], (cin, 1), jnp.float32),
        w1=0.1 * jax.random.normal(ks[2], (hd, cin), jnp.float32),
        b1=0.05 * jax.random.normal(ks[3], (hd, 1), jnp.float32),
        w2=0.1 * jax.random.normal(ks[4], (cout, hd), jnp.float32),
        b2=0.05 * jax.random.normal(ks[5], (cout, 1), jnp.float32),
    )
    if cin != cout:
        # A real projection is only created when the shapes force it.
        p["wres"] = 0.1 * jax.random.normal(ks[6], (cout, cin), jnp.float32)
    return p


def init_channel_mlp(key, cin, cout, expansion=2):
    ks = jax.random.split(key, 4)
    hd = cin * expansion
    return dict(
        w1=0.1 * jax.random.normal(ks[0], (hd, cin), jnp.float32),
        b1=0.05 * jax.random.normal(ks[1], (hd, 1), jnp.float32),
        w2=0.1 * jax.random.normal(ks[2], (cout, hd), jnp.float32),
        b2=0.05 * jax.random.normal(ks[3], (cout, 1), jnp.float32),
    )


def init_params(key, channels_in, channels_out):
    k1, k2, k3 = jax.random.split(key, 3)
    return dict(
        kmf1=init_kmf(k1, channels_in, channels_in),
        kmf2=init_kmf(k2, channels_in, channels_out),
        kernel_predictor=init_channel_mlp(k3, channels_out, 9, expansion=2),
    )


# ----------------------------------------------------------------------------

if __name__ == "__main__":
    root = jax.random.PRNGKey(0)
    fwd = jax.jit(unet_bottleneck_forward)

    def run_case(cin, cout, B=2, H=16, W=16):
        k_in, k_rad, k_par = jax.random.split(jax.random.fold_in(root, cout), 3)
        x = jax.random.normal(k_in, (B, cin, H, W), jnp.float32)
        rad = jax.random.normal(k_rad, (B, 3, H, W), jnp.float32)
        params = init_params(k_par, cin, cout)

        conv, filt = fwd(params, x, rad)
        jax.block_until_ready((conv, filt))
        assert conv.shape == (B, cout, H, W)
        assert filt.shape == (B, 3, H, W)

        conv_r, filt_r = _reference_forward(params, x, rad)
        err_c = float(jnp.max(jnp.abs(conv - conv_r)))
        err_f = float(jnp.max(jnp.abs(filt - filt_r)))
        # Tolerance budget: A&S erf (<=1.5e-7), approx softmax reciprocal
        # (~2^-12 rel), and bf16 MXU operands (dominant, ~1e-2 worst case vs
        # the f32 einsum reference).
        assert err_c < 5e-2 and err_f < 5e-2, (cin, cout, err_c, err_f)

    run_case(8, 8)     # cin == cout: identity residual, projection matmul skipped
    run_case(8, 16)    # cin != cout: learned residual projection path
    print("KERNEL_OK")
</pallas_src>

<mosaic_0001>
module attributes {stable_mosaic.version = 11 : i64} {
  func.func @_bottleneck_kernel(%arg0: i32, %arg1: memref<8x512xf32, #tpu.memory_space<vmem>>, %arg2: memref<3x512xf32, #tpu.memory_space<vmem>>, %arg3: memref<9x512xf32, #tpu.memory_space<vmem>>, %arg4: memref<8x9xf32, #tpu.memory_space<vmem>>, %arg5: memref<8x1xf32, #tpu.memory_space<vmem>>, %arg6: memref<16x8xbf16, #tpu.memory_space<vmem>>, %arg7: memref<16x1xf32, #tpu.memory_space<vmem>>, %arg8: memref<8x16xbf16, #tpu.memory_space<vmem>>, %arg9: memref<8x1xf32, #tpu.memory_space<vmem>>, %arg10: memref<8x9xf32, #tpu.memory_space<vmem>>, %arg11: memref<8x1xf32, #tpu.memory_space<vmem>>, %arg12: memref<16x8xbf16, #tpu.memory_space<vmem>>, %arg13: memref<16x1xf32, #tpu.memory_space<vmem>>, %arg14: memref<8x16xbf16, #tpu.memory_space<vmem>>, %arg15: memref<8x1xf32, #tpu.memory_space<vmem>>, %arg16: memref<16x8xbf16, #tpu.memory_space<vmem>>, %arg17: memref<16x1xf32, #tpu.memory_space<vmem>>, %arg18: memref<9x16xbf16, #tpu.memory_space<vmem>>, %arg19: memref<9x1xf32, #tpu.memory_space<vmem>>, %arg20: memref<8x512xf32, #tpu.memory_space<vmem>>, %arg21: memref<3x512xf32, #tpu.memory_space<vmem>>) attributes {dimension_semantics = [#tpu.dimension_semantics<parallel>], iteration_bounds = array<i64: 1>, scalar_prefetch = 0 : i64, scratch_operands = 0 : i64, tpu.core_type = #tpu.core_type<tc>, window_params = [{transform_indices = @transform_0, window_bounds = array<i64: 8, 512>}, {transform_indices = @transform_1, window_bounds = array<i64: 3, 512>}, {pipeline_mode = #tpu.pipeline_mode<synchronous>, transform_indices = @transform_2, window_bounds = array<i64: 9, 512>}, {pipeline_mode = #tpu.pipeline_mode<synchronous>, transform_indices = @transform_3, window_bounds = array<i64: 8, 9>}, {pipeline_mode = #tpu.pipeline_mode<synchronous>, transform_indices = @transform_4, window_bounds = array<i64: 8, 1>}, {pipeline_mode = #tpu.pipeline_mode<synchronous>, transform_indices = @transform_5, window_bounds = array<i64: 16, 8>}, {pipeline_mode = #tpu.pipeline_mode<synchronous>, transform_indices = @transform_6, window_bounds = array<i64: 16, 1>}, {pipeline_mode = #tpu.pipeline_mode<synchronous>, transform_indices = @transform_7, window_bounds = array<i64: 8, 16>}, {pipeline_mode = #tpu.pipeline_mode<synchronous>, transform_indices = @transform_8, window_bounds = array<i64: 8, 1>}, {pipeline_mode = #tpu.pipeline_mode<synchronous>, transform_indices = @transform_9, window_bounds = array<i64: 8, 9>}, {pipeline_mode = #tpu.pipeline_mode<synchronous>, transform_indices = @transform_10, window_bounds = array<i64: 8, 1>}, {pipeline_mode = #tpu.pipeline_mode<synchronous>, transform_indices = @transform_11, window_bounds = array<i64: 16, 8>}, {pipeline_mode = #tpu.pipeline_mode<synchronous>, transform_indices = @transform_12, window_bounds = array<i64: 16, 1>}, {pipeline_mode = #tpu.pipeline_mode<synchronous>, transform_indices = @transform_13, window_bounds = array<i64: 8, 16>}, {pipeline_mode = #tpu.pipeline_mode<synchronous>, transform_indices = @transform_14, window_bounds = array<i64: 8, 1>}, {pipeline_mode = #tpu.pipeline_mode<synchronous>, transform_indices = @transform_15, window_bounds = array<i64: 16, 8>}, {pipeline_mode = #tpu.pipeline_mode<synchronous>, transform_indices = @transform_16, window_bounds = array<i64: 16, 1>}, {pipeline_mode = #tpu.pipeline_mode<synchronous>, transform_indices = @transform_17, window_bounds = array<i64: 9, 16>}, {pipeline_mode = #tpu.pipeline_mode<synchronous>, transform_indices = @transform_18, window_bounds = array<i64: 9, 1>}, {transform_indices = @transform_19, window_bounds = array<i64: 8, 512>}, {transform_indices = @transform_20, window_bounds = array<i64: 3, 512>}]} {
    %c0 = arith.constant 0 : index
    %c0_0 = arith.constant 0 : index
    %0 = vector.load %arg3[%c0, %c0_0] : memref<9x512xf32, #tpu.memory_space<vmem>>, vector<9x512xf32>
    %1 = vector.extract_strided_slice %0 {offsets = [0, 0], sizes = [1, 512], strides = [1, 1]} : vector<9x512xf32> to vector<1x512xf32>
    %2 = vector.extract_strided_slice %0 {offsets = [1, 0], sizes = [1, 512], strides = [1, 1]} : vector<9x512xf32> to vector<1x512xf32>
    %3 = vector.extract_strided_slice %0 {offsets = [2, 0], sizes = [1, 512], strides = [1, 1]} : vector<9x512xf32> to vector<1x512xf32>
    %4 = vector.extract_strided_slice %0 {offsets = [3, 0], sizes = [1, 512], strides = [1, 1]} : vector<9x512xf32> to vector<1x512xf32>
    %5 = vector.extract_strided_slice %0 {offsets = [5, 0], sizes = [1, 512], strides = [1, 1]} : vector<9x512xf32> to vector<1x512xf32>
    %6 = vector.extract_strided_slice %0 {offsets = [6, 0], sizes = [1, 512], strides = [1, 1]} : vector<9x512xf32> to vector<1x512xf32>
    %7 = vector.extract_strided_slice %0 {offsets = [7, 0], sizes = [1, 512], strides = [1, 1]} : vector<9x512xf32> to vector<1x512xf32>
    %8 = vector.extract_strided_slice %0 {offsets = [8, 0], sizes = [1, 512], strides = [1, 1]} : vector<9x512xf32> to vector<1x512xf32>
    %c0_1 = arith.constant 0 : index
    %c0_2 = arith.constant 0 : index
    %9 = vector.load %arg1[%c0_1, %c0_2] : memref<8x512xf32, #tpu.memory_space<vmem>>, vector<8x512xf32>
    %c0_3 = arith.constant 0 : index
    %c0_4 = arith.constant 0 : index
    %10 = vector.load %arg2[%c0_3, %c0_4] : memref<3x512xf32, #tpu.memory_space<vmem>>, vector<3x512xf32>
    %c0_5 = arith.constant 0 : index
    %c0_6 = arith.constant 0 : index
    %11 = vector.load %arg4[%c0_5, %c0_6] : memref<8x9xf32, #tpu.memory_space<vmem>>, vector<8x9xf32>
    %c0_7 = arith.constant 0 : index
    %c0_8 = arith.constant 0 : index
    %12 = vector.load %arg5[%c0_7, %c0_8] : memref<8x1xf32, #tpu.memory_space<vmem>>, vector<8x1xf32>
    %c17_i32 = arith.constant 17 : i32
    %13 = tpu.dynamic_rotate %9 by %c17_i32 dim 1 : vector<8x512xf32>, i32 -> vector<8x512xf32>
    %14 = vector.broadcast %1 : vector<1x512xf32> to vector<8x512xf32>
    %15 = arith.mulf %13, %14 : vector<8x512xf32>
    %16 = vector.extract_strided_slice %11 {offsets = [0, 0], sizes = [8, 1], strides = [1, 1]} : vector<8x9xf32> to vector<8x1xf32>
    %17 = vector.broadcast %16 : vector<8x1xf32> to vector<8x512xf32>
    %18 = arith.mulf %15, %17 : vector<8x512xf32>
    %c16_i32 = arith.constant 16 : i32
    %19 = tpu.dynamic_rotate %9 by %c16_i32 dim 1 : vector<8x512xf32>, i32 -> vector<8x512xf32>
    %20 = vector.broadcast %2 : vector<1x512xf32> to vector<8x512xf32>
    %21 = arith.mulf %19, %20 : vector<8x512xf32>
    %22 = vector.extract_strided_slice %11 {offsets = [0, 1], sizes = [8, 1], strides = [1, 1]} : vector<8x9xf32> to vector<8x1xf32>
    %23 = vector.broadcast %22 : vector<8x1xf32> to vector<8x512xf32>
    %24 = arith.mulf %21, %23 : vector<8x512xf32>
    %25 = arith.addf %18, %24 : vector<8x512xf32>
    %c15_i32 = arith.constant 15 : i32
    %26 = tpu.dynamic_rotate %9 by %c15_i32 dim 1 : vector<8x512xf32>, i32 -> vector<8x512xf32>
    %27 = vector.broadcast %3 : vector<1x512xf32> to vector<8x512xf32>
    %28 = arith.mulf %26, %27 : vector<8x512xf32>
    %29 = vector.extract_strided_slice %11 {offsets = [0, 2], sizes = [8, 1], strides = [1, 1]} : vector<8x9xf32> to vector<8x1xf32>
    %30 = vector.broadcast %29 : vector<8x1xf32> to vector<8x512xf32>
    %31 = arith.mulf %28, %30 : vector<8x512xf32>
    %32 = arith.addf %25, %31 : vector<8x512xf32>
    %c1_i32 = arith.constant 1 : i32
    %33 = tpu.dynamic_rotate %9 by %c1_i32 dim 1 : vector<8x512xf32>, i32 -> vector<8x512xf32>
    %34 = vector.broadcast %4 : vector<1x512xf32> to vector<8x512xf32>
    %35 = arith.mulf %33, %34 : vector<8x512xf32>
    %36 = vector.extract_strided_slice %11 {offsets = [0, 3], sizes = [8, 1], strides = [1, 1]} : vector<8x9xf32> to vector<8x1xf32>
    %37 = vector.broadcast %36 : vector<8x1xf32> to vector<8x512xf32>
    %38 = arith.mulf %35, %37 : vector<8x512xf32>
    %39 = arith.addf %32, %38 : vector<8x512xf32>
    %40 = vector.extract_strided_slice %11 {offsets = [0, 4], sizes = [8, 1], strides = [1, 1]} : vector<8x9xf32> to vector<8x1xf32>
    %41 = vector.broadcast %40 : vector<8x1xf32> to vector<8x512xf32>
    %42 = arith.mulf %9, %41 : vector<8x512xf32>
    %43 = arith.addf %39, %42 : vector<8x512xf32>
    %c511_i32 = arith.constant 511 : i32
    %44 = tpu.dynamic_rotate %9 by %c511_i32 dim 1 : vector<8x512xf32>, i32 -> vector<8x512xf32>
    %45 = vector.broadcast %5 : vector<1x512xf32> to vector<8x512xf32>
    %46 = arith.mulf %44, %45 : vector<8x512xf32>
    %47 = vector.extract_strided_slice %11 {offsets = [0, 5], sizes = [8, 1], strides = [1, 1]} : vector<8x9xf32> to vector<8x1xf32>
    %48 = vector.broadcast %47 : vector<8x1xf32> to vector<8x512xf32>
    %49 = arith.mulf %46, %48 : vector<8x512xf32>
    %50 = arith.addf %43, %49 : vector<8x512xf32>
    %c497_i32 = arith.constant 497 : i32
    %51 = tpu.dynamic_rotate %9 by %c497_i32 dim 1 : vector<8x512xf32>, i32 -> vector<8x512xf32>
    %52 = vector.broadcast %6 : vector<1x512xf32> to vector<8x512xf32>
    %53 = arith.mulf %51, %52 : vector<8x512xf32>
    %54 = vector.extract_strided_slice %11 {offsets = [0, 6], sizes = [8, 1], strides = [1, 1]} : vector<8x9xf32> to vector<8x1xf32>
    %55 = vector.broadcast %54 : vector<8x1xf32> to vector<8x512xf32>
    %56 = arith.mulf %53, %55 : vector<8x512xf32>
    %57 = arith.addf %50, %56 : vector<8x512xf32>
    %c496_i32 = arith.constant 496 : i32
    %58 = tpu.dynamic_rotate %9 by %c496_i32 dim 1 : vector<8x512xf32>, i32 -> vector<8x512xf32>
    %59 = vector.broadcast %7 : vector<1x512xf32> to vector<8x512xf32>
    %60 = arith.mulf %58, %59 : vector<8x512xf32>
    %61 = vector.extract_strided_slice %11 {offsets = [0, 7], sizes = [8, 1], strides = [1, 1]} : vector<8x9xf32> to vector<8x1xf32>
    %62 = vector.broadcast %61 : vector<8x1xf32> to vector<8x512xf32>
    %63 = arith.mulf %60, %62 : vector<8x512xf32>
    %64 = arith.addf %57, %63 : vector<8x512xf32>
    %c495_i32 = arith.constant 495 : i32
    %65 = tpu.dynamic_rotate %9 by %c495_i32 dim 1 : vector<8x512xf32>, i32 -> vector<8x512xf32>
    %66 = vector.broadcast %8 : vector<1x512xf32> to vector<8x512xf32>
    %67 = arith.mulf %65, %66 : vector<8x512xf32>
    %68 = vector.extract_strided_slice %11 {offsets = [0, 8], sizes = [8, 1], strides = [1, 1]} : vector<8x9xf32> to vector<8x1xf32>
    %69 = vector.broadcast %68 : vector<8x1xf32> to vector<8x512xf32>
    %70 = arith.mulf %67, %69 : vector<8x512xf32>
    %71 = arith.addf %64, %70 : vector<8x512xf32>
    %72 = vector.broadcast %12 : vector<8x1xf32> to vector<8x512xf32>
    %73 = arith.addf %71, %72 : vector<8x512xf32>
    %c0_9 = arith.constant 0 : index
    %c0_10 = arith.constant 0 : index
    %74 = vector.load %arg6[%c0_9, %c0_10] : memref<16x8xbf16, #tpu.memory_space<vmem>>, vector<16x8xbf16>
    %c0_11 = arith.constant 0 : index
    %c0_12 = arith.constant 0 : index
    %75 = vector.load %arg7[%c0_11, %c0_12] : memref<16x1xf32, #tpu.memory_space<vmem>>, vector<16x1xf32>
    %c0_13 = arith.constant 0 : index
    %c0_14 = arith.constant 0 : index
    %76 = vector.load %arg8[%c0_13, %c0_14] : memref<8x16xbf16, #tpu.memory_space<vmem>>, vector<8x16xbf16>
    %c0_15 = arith.constant 0 : index
    %c0_16 = arith.constant 0 : index
    %77 = vector.load %arg9[%c0_15, %c0_16] : memref<8x1xf32, #tpu.memory_space<vmem>>, vector<8x1xf32>
    %78 = arith.truncf %73 : vector<8x512xf32> to vector<8x512xbf16>
    %cst = arith.constant dense<0.000000e+00> : vector<16x512xf32>
    %79 = tpu.matmul %74, %78, %cst {dimension_numbers = #tpu.dot_dimension_numbers<[1], [0], [0], [1], [0, 0, 1, 1], [], []>} : vector<16x8xbf16>, vector<8x512xbf16>, vector<16x512xf32> -> vector<16x512xf32>
    %80 = vector.broadcast %75 : vector<16x1xf32> to vector<16x512xf32>
    %81 = arith.addf %79, %80 : vector<16x512xf32>
    %cst_17 = arith.constant 5.000000e-01 : f32
    %82 = vector.broadcast %cst_17 : f32 to vector<16x512xf32>
    %83 = arith.mulf %82, %81 : vector<16x512xf32>
    %cst_18 = arith.constant 0.707106769 : f32
    %84 = vector.broadcast %cst_18 : f32 to vector<16x512xf32>
    %85 = arith.mulf %81, %84 : vector<16x512xf32>
    %cst_19 = arith.constant 0.000000e+00 : f32
    %86 = vector.broadcast %cst_19 : f32 to vector<16x512xf32>
    %87 = arith.cmpf oge, %85, %86 : vector<16x512xf32>
    %cst_20 = arith.constant 1.000000e+00 : f32
    %cst_21 = arith.constant -1.000000e+00 : f32
    %88 = vector.broadcast %cst_20 : f32 to vector<16x512xf32>
    %89 = vector.broadcast %cst_21 : f32 to vector<16x512xf32>
    %90 = arith.select %87, %88, %89 : vector<16x512xi1>, vector<16x512xf32>
    %91 = math.absf %85 : vector<16x512xf32>
    %cst_22 = arith.constant 0.327591091 : f32
    %92 = vector.broadcast %cst_22 : f32 to vector<16x512xf32>
    %93 = arith.mulf %92, %91 : vector<16x512xf32>
    %cst_23 = arith.constant 1.000000e+00 : f32
    %94 = vector.broadcast %cst_23 : f32 to vector<16x512xf32>
    %95 = arith.addf %94, %93 : vector<16x512xf32>
    %96 = tpu.reciprocal %95 {approx = true} : vector<16x512xf32> -> vector<16x512xf32>
    %cst_24 = arith.constant 1.06140542 : f32
    %97 = vector.broadcast %cst_24 : f32 to vector<16x512xf32>
    %98 = arith.mulf %97, %96 : vector<16x512xf32>
    %cst_25 = arith.constant -1.45315206 : f32
    %99 = vector.broadcast %cst_25 : f32 to vector<16x512xf32>
    %100 = arith.addf %98, %99 : vector<16x512xf32>
    %101 = arith.mulf %100, %96 : vector<16x512xf32>
    %cst_26 = arith.constant 1.42141378 : f32
    %102 = vector.broadcast %cst_26 : f32 to vector<16x512xf32>
    %103 = arith.addf %101, %102 : vector<16x512xf32>
    %104 = arith.mulf %103, %96 : vector<16x512xf32>
    %cst_27 = arith.constant -0.284496725 : f32
    %105 = vector.broadcast %cst_27 : f32 to vector<16x512xf32>
    %106 = arith.addf %104, %105 : vector<16x512xf32>
    %107 = arith.mulf %106, %96 : vector<16x512xf32>
    %cst_28 = arith.constant 0.254829586 : f32
    %108 = vector.broadcast %cst_28 : f32 to vector<16x512xf32>
    %109 = arith.addf %107, %108 : vector<16x512xf32>
    %110 = arith.mulf %109, %96 : vector<16x512xf32>
    %cst_29 = arith.constant 0.000000e+00 : f32
    %111 = vector.broadcast %cst_29 : f32 to vector<16x512xf32>
    %112 = arith.subf %111, %91 : vector<16x512xf32>
    %113 = arith.mulf %112, %91 : vector<16x512xf32>
    %114 = math.exp %113 : vector<16x512xf32>
    %115 = arith.mulf %110, %114 : vector<16x512xf32>
    %cst_30 = arith.constant 1.000000e+00 : f32
    %116 = vector.broadcast %cst_30 : f32 to vector<16x512xf32>
    %117 = arith.subf %116, %115 : vector<16x512xf32>
    %118 = arith.mulf %90, %117 : vector<16x512xf32>
    %cst_31 = arith.constant 1.000000e+00 : f32
    %119 = vector.broadcast %cst_31 : f32 to vector<16x512xf32>
    %120 = arith.addf %119, %118 : vector<16x512xf32>
    %121 = arith.mulf %83, %120 : vector<16x512xf32>
    %122 = arith.truncf %121 : vector<16x512xf32> to vector<16x512xbf16>
    %cst_32 = arith.constant dense<0.000000e+00> : vector<8x512xf32>
    %123 = tpu.matmul %76, %122, %cst_32 {dimension_numbers = #tpu.dot_dimension_numbers<[1], [0], [0], [1], [0, 0, 1, 1], [], []>} : vector<8x16xbf16>, vector<16x512xbf16>, vector<8x512xf32> -> vector<8x512xf32>
    %124 = vector.broadcast %77 : vector<8x1xf32> to vector<8x512xf32>
    %125 = arith.addf %123, %124 : vector<8x512xf32>
    %126 = arith.addf %125, %9 : vector<8x512xf32>
    %c0_33 = arith.constant 0 : index
    %c0_34 = arith.constant 0 : index
    %127 = vector.load %arg10[%c0_33, %c0_34] : memref<8x9xf32, #tpu.memory_space<vmem>>, vector<8x9xf32>
    %c0_35 = arith.constant 0 : index
    %c0_36 = arith.constant 0 : index
    %128 = vector.load %arg11[%c0_35, %c0_36] : memref<8x1xf32, #tpu.memory_space<vmem>>, vector<8x1xf32>
    %c17_i32_37 = arith.constant 17 : i32
    %129 = tpu.dynamic_rotate %126 by %c17_i32_37 dim 1 : vector<8x512xf32>, i32 -> vector<8x512xf32>
    %130 = vector.broadcast %1 : vector<1x512xf32> to vector<8x512xf32>
    %131 = arith.mulf %129, %130 : vector<8x512xf32>
    %132 = vector.extract_strided_slice %127 {offsets = [0, 0], sizes = [8, 1], strides = [1, 1]} : vector<8x9xf32> to vector<8x1xf32>
    %133 = vector.broadcast %132 : vector<8x1xf32> to vector<8x512xf32>
    %134 = arith.mulf %131, %133 : vector<8x512xf32>
    %c16_i32_38 = arith.constant 16 : i32
    %135 = tpu.dynamic_rotate %126 by %c16_i32_38 dim 1 : vector<8x512xf32>, i32 -> vector<8x512xf32>
    %136 = vector.broadcast %2 : vector<1x512xf32> to vector<8x512xf32>
    %137 = arith.mulf %135, %136 : vector<8x512xf32>
    %138 = vector.extract_strided_slice %127 {offsets = [0, 1], sizes = [8, 1], strides = [1, 1]} : vector<8x9xf32> to vector<8x1xf32>
    %139 = vector.broadcast %138 : vector<8x1xf32> to vector<8x512xf32>
    %140 = arith.mulf %137, %139 : vector<8x512xf32>
    %141 = arith.addf %134, %140 : vector<8x512xf32>
    %c15_i32_39 = arith.constant 15 : i32
    %142 = tpu.dynamic_rotate %126 by %c15_i32_39 dim 1 : vector<8x512xf32>, i32 -> vector<8x512xf32>
    %143 = vector.broadcast %3 : vector<1x512xf32> to vector<8x512xf32>
    %144 = arith.mulf %142, %143 : vector<8x512xf32>
    %145 = vector.extract_strided_slice %127 {offsets = [0, 2], sizes = [8, 1], strides = [1, 1]} : vector<8x9xf32> to vector<8x1xf32>
    %146 = vector.broadcast %145 : vector<8x1xf32> to vector<8x512xf32>
    %147 = arith.mulf %144, %146 : vector<8x512xf32>
    %148 = arith.addf %141, %147 : vector<8x512xf32>
    %c1_i32_40 = arith.constant 1 : i32
    %149 = tpu.dynamic_rotate %126 by %c1_i32_40 dim 1 : vector<8x512xf32>, i32 -> vector<8x512xf32>
    %150 = vector.broadcast %4 : vector<1x512xf32> to vector<8x512xf32>
    %151 = arith.mulf %149, %150 : vector<8x512xf32>
    %152 = vector.extract_strided_slice %127 {offsets = [0, 3], sizes = [8, 1], strides = [1, 1]} : vector<8x9xf32> to vector<8x1xf32>
    %153 = vector.broadcast %152 : vector<8x1xf32> to vector<8x512xf32>
    %154 = arith.mulf %151, %153 : vector<8x512xf32>
    %155 = arith.addf %148, %154 : vector<8x512xf32>
    %156 = vector.extract_strided_slice %127 {offsets = [0, 4], sizes = [8, 1], strides = [1, 1]} : vector<8x9xf32> to vector<8x1xf32>
    %157 = vector.broadcast %156 : vector<8x1xf32> to vector<8x512xf32>
    %158 = arith.mulf %126, %157 : vector<8x512xf32>
    %159 = arith.addf %155, %158 : vector<8x512xf32>
    %c511_i32_41 = arith.constant 511 : i32
    %160 = tpu.dynamic_rotate %126 by %c511_i32_41 dim 1 : vector<8x512xf32>, i32 -> vector<8x512xf32>
    %161 = vector.broadcast %5 : vector<1x512xf32> to vector<8x512xf32>
    %162 = arith.mulf %160, %161 : vector<8x512xf32>
    %163 = vector.extract_strided_slice %127 {offsets = [0, 5], sizes = [8, 1], strides = [1, 1]} : vector<8x9xf32> to vector<8x1xf32>
    %164 = vector.broadcast %163 : vector<8x1xf32> to vector<8x512xf32>
    %165 = arith.mulf %162, %164 : vector<8x512xf32>
    %166 = arith.addf %159, %165 : vector<8x512xf32>
    %c497_i32_42 = arith.constant 497 : i32
    %167 = tpu.dynamic_rotate %126 by %c497_i32_42 dim 1 : vector<8x512xf32>, i32 -> vector<8x512xf32>
    %168 = vector.broadcast %6 : vector<1x512xf32> to vector<8x512xf32>
    %169 = arith.mulf %167, %168 : vector<8x512xf32>
    %170 = vector.extract_strided_slice %127 {offsets = [0, 6], sizes = [8, 1], strides = [1, 1]} : vector<8x9xf32> to vector<8x1xf32>
    %171 = vector.broadcast %170 : vector<8x1xf32> to vector<8x512xf32>
    %172 = arith.mulf %169, %171 : vector<8x512xf32>
    %173 = arith.addf %166, %172 : vector<8x512xf32>
    %c496_i32_43 = arith.constant 496 : i32
    %174 = tpu.dynamic_rotate %126 by %c496_i32_43 dim 1 : vector<8x512xf32>, i32 -> vector<8x512xf32>
    %175 = vector.broadcast %7 : vector<1x512xf32> to vector<8x512xf32>
    %176 = arith.mulf %174, %175 : vector<8x512xf32>
    %177 = vector.extract_strided_slice %127 {offsets = [0, 7], sizes = [8, 1], strides = [1, 1]} : vector<8x9xf32> to vector<8x1xf32>
    %178 = vector.broadcast %177 : vector<8x1xf32> to vector<8x512xf32>
    %179 = arith.mulf %176, %178 : vector<8x512xf32>
    %180 = arith.addf %173, %179 : vector<8x512xf32>
    %c495_i32_44 = arith.constant 495 : i32
    %181 = tpu.dynamic_rotate %126 by %c495_i32_44 dim 1 : vector<8x512xf32>, i32 -> vector<8x512xf32>
    %182 = vector.broadcast %8 : vector<1x512xf32> to vector<8x512xf32>
    %183 = arith.mulf %181, %182 : vector<8x512xf32>
    %184 = vector.extract_strided_slice %127 {offsets = [0, 8], sizes = [8, 1], strides = [1, 1]} : vector<8x9xf32> to vector<8x1xf32>
    %185 = vector.broadcast %184 : vector<8x1xf32> to vector<8x512xf32>
    %186 = arith.mulf %183, %185 : vector<8x512xf32>
    %187 = arith.addf %180, %186 : vector<8x512xf32>
    %188 = vector.broadcast %128 : vector<8x1xf32> to vector<8x512xf32>
    %189 = arith.addf %187, %188 : vector<8x512xf32>
    %c0_45 = arith.constant 0 : index
    %c0_46 = arith.constant 0 : index
    %190 = vector.load %arg12[%c0_45, %c0_46] : memref<16x8xbf16, #tpu.memory_space<vmem>>, vector<16x8xbf16>
    %c0_47 = arith.constant 0 : index
    %c0_48 = arith.constant 0 : index
    %191 = vector.load %arg13[%c0_47, %c0_48] : memref<16x1xf32, #tpu.memory_space<vmem>>, vector<16x1xf32>
    %c0_49 = arith.constant 0 : index
    %c0_50 = arith.constant 0 : index
    %192 = vector.load %arg14[%c0_49, %c0_50] : memref<8x16xbf16, #tpu.memory_space<vmem>>, vector<8x16xbf16>
    %c0_51 = arith.constant 0 : index
    %c0_52 = arith.constant 0 : index
    %193 = vector.load %arg15[%c0_51, %c0_52] : memref<8x1xf32, #tpu.memory_space<vmem>>, vector<8x1xf32>
    %194 = arith.truncf %189 : vector<8x512xf32> to vector<8x512xbf16>
    %cst_53 = arith.constant dense<0.000000e+00> : vector<16x512xf32>
    %195 = tpu.matmul %190, %194, %cst_53 {dimension_numbers = #tpu.dot_dimension_numbers<[1], [0], [0], [1], [0, 0, 1, 1], [], []>} : vector<16x8xbf16>, vector<8x512xbf16>, vector<16x512xf32> -> vector<16x512xf32>
    %196 = vector.broadcast %191 : vector<16x1xf32> to vector<16x512xf32>
    %197 = arith.addf %195, %196 : vector<16x512xf32>
    %cst_54 = arith.constant 5.000000e-01 : f32
    %198 = vector.broadcast %cst_54 : f32 to vector<16x512xf32>
    %199 = arith.mulf %198, %197 : vector<16x512xf32>
    %cst_55 = arith.constant 0.707106769 : f32
    %200 = vector.broadcast %cst_55 : f32 to vector<16x512xf32>
    %201 = arith.mulf %197, %200 : vector<16x512xf32>
    %cst_56 = arith.constant 0.000000e+00 : f32
    %202 = vector.broadcast %cst_56 : f32 to vector<16x512xf32>
    %203 = arith.cmpf oge, %201, %202 : vector<16x512xf32>
    %cst_57 = arith.constant 1.000000e+00 : f32
    %cst_58 = arith.constant -1.000000e+00 : f32
    %204 = vector.broadcast %cst_57 : f32 to vector<16x512xf32>
    %205 = vector.broadcast %cst_58 : f32 to vector<16x512xf32>
    %206 = arith.select %203, %204, %205 : vector<16x512xi1>, vector<16x512xf32>
    %207 = math.absf %201 : vector<16x512xf32>
    %cst_59 = arith.constant 0.327591091 : f32
    %208 = vector.broadcast %cst_59 : f32 to vector<16x512xf32>
    %209 = arith.mulf %208, %207 : vector<16x512xf32>
    %cst_60 = arith.constant 1.000000e+00 : f32
    %210 = vector.broadcast %cst_60 : f32 to vector<16x512xf32>
    %211 = arith.addf %210, %209 : vector<16x512xf32>
    %212 = tpu.reciprocal %211 {approx = true} : vector<16x512xf32> -> vector<16x512xf32>
    %cst_61 = arith.constant 1.06140542 : f32
    %213 = vector.broadcast %cst_61 : f32 to vector<16x512xf32>
    %214 = arith.mulf %213, %212 : vector<16x512xf32>
    %cst_62 = arith.constant -1.45315206 : f32
    %215 = vector.broadcast %cst_62 : f32 to vector<16x512xf32>
    %216 = arith.addf %214, %215 : vector<16x512xf32>
    %217 = arith.mulf %216, %212 : vector<16x512xf32>
    %cst_63 = arith.constant 1.42141378 : f32
    %218 = vector.broadcast %cst_63 : f32 to vector<16x512xf32>
    %219 = arith.addf %217, %218 : vector<16x512xf32>
    %220 = arith.mulf %219, %212 : vector<16x512xf32>
    %cst_64 = arith.constant -0.284496725 : f32
    %221 = vector.broadcast %cst_64 : f32 to vector<16x512xf32>
    %222 = arith.addf %220, %221 : vector<16x512xf32>
    %223 = arith.mulf %222, %212 : vector<16x512xf32>
    %cst_65 = arith.constant 0.254829586 : f32
    %224 = vector.broadcast %cst_65 : f32 to vector<16x512xf32>
    %225 = arith.addf %223, %224 : vector<16x512xf32>
    %226 = arith.mulf %225, %212 : vector<16x512xf32>
    %cst_66 = arith.constant 0.000000e+00 : f32
    %227 = vector.broadcast %cst_66 : f32 to vector<16x512xf32>
    %228 = arith.subf %227, %207 : vector<16x512xf32>
    %229 = arith.mulf %228, %207 : vector<16x512xf32>
    %230 = math.exp %229 : vector<16x512xf32>
    %231 = arith.mulf %226, %230 : vector<16x512xf32>
    %cst_67 = arith.constant 1.000000e+00 : f32
    %232 = vector.broadcast %cst_67 : f32 to vector<16x512xf32>
    %233 = arith.subf %232, %231 : vector<16x512xf32>
    %234 = arith.mulf %206, %233 : vector<16x512xf32>
    %cst_68 = arith.constant 1.000000e+00 : f32
    %235 = vector.broadcast %cst_68 : f32 to vector<16x512xf32>
    %236 = arith.addf %235, %234 : vector<16x512xf32>
    %237 = arith.mulf %199, %236 : vector<16x512xf32>
    %238 = arith.truncf %237 : vector<16x512xf32> to vector<16x512xbf16>
    %cst_69 = arith.constant dense<0.000000e+00> : vector<8x512xf32>
    %239 = tpu.matmul %192, %238, %cst_69 {dimension_numbers = #tpu.dot_dimension_numbers<[1], [0], [0], [1], [0, 0, 1, 1], [], []>} : vector<8x16xbf16>, vector<16x512xbf16>, vector<8x512xf32> -> vector<8x512xf32>
    %240 = vector.broadcast %193 : vector<8x1xf32> to vector<8x512xf32>
    %241 = arith.addf %239, %240 : vector<8x512xf32>
    %242 = arith.addf %241, %126 : vector<8x512xf32>
    %c0_70 = arith.constant 0 : index
    %c0_71 = arith.constant 0 : index
    %243 = vector.load %arg16[%c0_70, %c0_71] : memref<16x8xbf16, #tpu.memory_space<vmem>>, vector<16x8xbf16>
    %c0_72 = arith.constant 0 : index
    %c0_73 = arith.constant 0 : index
    %244 = vector.load %arg17[%c0_72, %c0_73] : memref<16x1xf32, #tpu.memory_space<vmem>>, vector<16x1xf32>
    %c0_74 = arith.constant 0 : index
    %c0_75 = arith.constant 0 : index
    %245 = vector.load %arg18[%c0_74, %c0_75] : memref<9x16xbf16, #tpu.memory_space<vmem>>, vector<9x16xbf16>
    %c0_76 = arith.constant 0 : index
    %c0_77 = arith.constant 0 : index
    %246 = vector.load %arg19[%c0_76, %c0_77] : memref<9x1xf32, #tpu.memory_space<vmem>>, vector<9x1xf32>
    %247 = arith.truncf %242 : vector<8x512xf32> to vector<8x512xbf16>
    %cst_78 = arith.constant dense<0.000000e+00> : vector<16x512xf32>
    %248 = tpu.matmul %243, %247, %cst_78 {dimension_numbers = #tpu.dot_dimension_numbers<[1], [0], [0], [1], [0, 0, 1, 1], [], []>} : vector<16x8xbf16>, vector<8x512xbf16>, vector<16x512xf32> -> vector<16x512xf32>
    %249 = vector.broadcast %244 : vector<16x1xf32> to vector<16x512xf32>
    %250 = arith.addf %248, %249 : vector<16x512xf32>
    %cst_79 = arith.constant 0.000000e+00 : f32
    %251 = vector.broadcast %cst_79 : f32 to vector<16x512xf32>
    %252 = arith.maximumf %250, %251 : vector<16x512xf32>
    %253 = arith.truncf %252 : vector<16x512xf32> to vector<16x512xbf16>
    %cst_80 = arith.constant dense<0.000000e+00> : vector<9x512xf32>
    %254 = tpu.matmul %245, %253, %cst_80 {dimension_numbers = #tpu.dot_dimension_numbers<[1], [0], [0], [1], [0, 0, 1, 1], [], []>} : vector<9x16xbf16>, vector<16x512xbf16>, vector<9x512xf32> -> vector<9x512xf32>
    %255 = vector.broadcast %246 : vector<9x1xf32> to vector<9x512xf32>
    %256 = arith.addf %254, %255 : vector<9x512xf32>
    %cst_81 = arith.constant dense<0xFF800000> : vector<512xf32>
    %257 = vector.multi_reduction <maximumf>, %256, %cst_81 [0] : vector<9x512xf32> to vector<512xf32>
    %258 = vector.shape_cast %257 : vector<512xf32> to vector<1x512xf32>
    %259 = vector.broadcast %258 : vector<1x512xf32> to vector<9x512xf32>
    %260 = arith.subf %256, %259 : vector<9x512xf32>
    %261 = math.exp %260 : vector<9x512xf32>
    %cst_82 = arith.constant dense<0.000000e+00> : vector<512xf32>
    %262 = vector.multi_reduction <add>, %261, %cst_82 [0] : vector<9x512xf32> to vector<512xf32>
    %263 = vector.shape_cast %262 : vector<512xf32> to vector<1x512xf32>
    %264 = tpu.reciprocal %263 {approx = true} : vector<1x512xf32> -> vector<1x512xf32>
    %265 = vector.broadcast %264 : vector<1x512xf32> to vector<9x512xf32>
    %266 = arith.mulf %261, %265 : vector<9x512xf32>
    %c17_i32_83 = arith.constant 17 : i32
    %267 = tpu.dynamic_rotate %10 by %c17_i32_83 dim 1 : vector<3x512xf32>, i32 -> vector<3x512xf32>
    %268 = vector.broadcast %1 : vector<1x512xf32> to vector<3x512xf32>
    %269 = arith.mulf %267, %268 : vector<3x512xf32>
    %270 = vector.extract_strided_slice %266 {offsets = [0, 0], sizes = [1, 512], strides = [1, 1]} : vector<9x512xf32> to vector<1x512xf32>
    %271 = vector.broadcast %270 : vector<1x512xf32> to vector<3x512xf32>
    %272 = arith.mulf %269, %271 : vector<3x512xf32>
    %c16_i32_84 = arith.constant 16 : i32
    %273 = tpu.dynamic_rotate %10 by %c16_i32_84 dim 1 : vector<3x512xf32>, i32 -> vector<3x512xf32>
    %274 = vector.broadcast %2 : vector<1x512xf32> to vector<3x512xf32>
    %275 = arith.mulf %273, %274 : vector<3x512xf32>
    %276 = vector.extract_strided_slice %266 {offsets = [1, 0], sizes = [1, 512], strides = [1, 1]} : vector<9x512xf32> to vector<1x512xf32>
    %277 = vector.broadcast %276 : vector<1x512xf32> to vector<3x512xf32>
    %278 = arith.mulf %275, %277 : vector<3x512xf32>
    %279 = arith.addf %272, %278 : vector<3x512xf32>
    %c15_i32_85 = arith.constant 15 : i32
    %280 = tpu.dynamic_rotate %10 by %c15_i32_85 dim 1 : vector<3x512xf32>, i32 -> vector<3x512xf32>
    %281 = vector.broadcast %3 : vector<1x512xf32> to vector<3x512xf32>
    %282 = arith.mulf %280, %281 : vector<3x512xf32>
    %283 = vector.extract_strided_slice %266 {offsets = [2, 0], sizes = [1, 512], strides = [1, 1]} : vector<9x512xf32> to vector<1x512xf32>
    %284 = vector.broadcast %283 : vector<1x512xf32> to vector<3x512xf32>
    %285 = arith.mulf %282, %284 : vector<3x512xf32>
    %286 = arith.addf %279, %285 : vector<3x512xf32>
    %c1_i32_86 = arith.constant 1 : i32
    %287 = tpu.dynamic_rotate %10 by %c1_i32_86 dim 1 : vector<3x512xf32>, i32 -> vector<3x512xf32>
    %288 = vector.broadcast %4 : vector<1x512xf32> to vector<3x512xf32>
    %289 = arith.mulf %287, %288 : vector<3x512xf32>
    %290 = vector.extract_strided_slice %266 {offsets = [3, 0], sizes = [1, 512], strides = [1, 1]} : vector<9x512xf32> to vector<1x512xf32>
    %291 = vector.broadcast %290 : vector<1x512xf32> to vector<3x512xf32>
    %292 = arith.mulf %289, %291 : vector<3x512xf32>
    %293 = arith.addf %286, %292 : vector<3x512xf32>
    %294 = vector.extract_strided_slice %266 {offsets = [4, 0], sizes = [1, 512], strides = [1, 1]} : vector<9x512xf32> to vector<1x512xf32>
    %295 = vector.broadcast %294 : vector<1x512xf32> to vector<3x512xf32>
    %296 = arith.mulf %10, %295 : vector<3x512xf32>
    %297 = arith.addf %293, %296 : vector<3x512xf32>
    %c511_i32_87 = arith.constant 511 : i32
    %298 = tpu.dynamic_rotate %10 by %c511_i32_87 dim 1 : vector<3x512xf32>, i32 -> vector<3x512xf32>
    %299 = vector.broadcast %5 : vector<1x512xf32> to vector<3x512xf32>
    %300 = arith.mulf %298, %299 : vector<3x512xf32>
    %301 = vector.extract_strided_slice %266 {offsets = [5, 0], sizes = [1, 512], strides = [1, 1]} : vector<9x512xf32> to vector<1x512xf32>
    %302 = vector.broadcast %301 : vector<1x512xf32> to vector<3x512xf32>
    %303 = arith.mulf %300, %302 : vector<3x512xf32>
    %304 = arith.addf %297, %303 : vector<3x512xf32>
    %c497_i32_88 = arith.constant 497 : i32
    %305 = tpu.dynamic_rotate %10 by %c497_i32_88 dim 1 : vector<3x512xf32>, i32 -> vector<3x512xf32>
    %306 = vector.broadcast %6 : vector<1x512xf32> to vector<3x512xf32>
    %307 = arith.mulf %305, %306 : vector<3x512xf32>
    %308 = vector.extract_strided_slice %266 {offsets = [6, 0], sizes = [1, 512], strides = [1, 1]} : vector<9x512xf32> to vector<1x512xf32>
    %309 = vector.broadcast %308 : vector<1x512xf32> to vector<3x512xf32>
    %310 = arith.mulf %307, %309 : vector<3x512xf32>
    %311 = arith.addf %304, %310 : vector<3x512xf32>
    %c496_i32_89 = arith.constant 496 : i32
    %312 = tpu.dynamic_rotate %10 by %c496_i32_89 dim 1 : vector<3x512xf32>, i32 -> vector<3x512xf32>
    %313 = vector.broadcast %7 : vector<1x512xf32> to vector<3x512xf32>
    %314 = arith.mulf %312, %313 : vector<3x512xf32>
    %315 = vector.extract_strided_slice %266 {offsets = [7, 0], sizes = [1, 512], strides = [1, 1]} : vector<9x512xf32> to vector<1x512xf32>
    %316 = vector.broadcast %315 : vector<1x512xf32> to vector<3x512xf32>
    %317 = arith.mulf %314, %316 : vector<3x512xf32>
    %318 = arith.addf %311, %317 : vector<3x512xf32>
    %c495_i32_90 = arith.constant 495 : i32
    %319 = tpu.dynamic_rotate %10 by %c495_i32_90 dim 1 : vector<3x512xf32>, i32 -> vector<3x512xf32>
    %320 = vector.broadcast %8 : vector<1x512xf32> to vector<3x512xf32>
    %321 = arith.mulf %319, %320 : vector<3x512xf32>
    %322 = vector.extract_strided_slice %266 {offsets = [8, 0], sizes = [1, 512], strides = [1, 1]} : vector<9x512xf32> to vector<1x512xf32>
    %323 = vector.broadcast %322 : vector<1x512xf32> to vector<3x512xf32>
    %324 = arith.mulf %321, %323 : vector<3x512xf32>
    %325 = arith.addf %318, %324 : vector<3x512xf32>
    %c0_91 = arith.constant 0 : index
    %c0_92 = arith.constant 0 : index
    %326 = vector.load %arg20[%c0_91, %c0_92] : memref<8x512xf32, #tpu.memory_space<vmem>>, vector<8x512xf32>
    tpu.vector_store %arg20[%c0_91, %c0_92], %242 {strides = array<i32>} : memref<8x512xf32, #tpu.memory_space<vmem>>, vector<8x512xf32>,
    %c0_93 = arith.constant 0 : index
    %c0_94 = arith.constant 0 : index
    %327 = vector.load %arg21[%c0_93, %c0_94] : memref<3x512xf32, #tpu.memory_space<vmem>>, vector<3x512xf32>
    tpu.vector_store %arg21[%c0_93, %c0_94], %325 {strides = array<i32>} : memref<3x512xf32, #tpu.memory_space<vmem>>, vector<3x512xf32>,
    return
  }
  func.func @transform_0(%arg0: i32) -> (i32, i32) {
    %c0_i32 = arith.constant 0 : i32
    %c0_i32_0 = arith.constant 0 : i32
    return %c0_i32, %arg0 : i32, i32
  }
  func.func @transform_1(%arg0: i32) -> (i32, i32) {
    %c0_i32 = arith.constant 0 : i32
    %c0_i32_0 = arith.constant 0 : i32
    return %c0_i32, %arg0 : i32, i32
  }
  func.func @transform_2(%arg0: i32) -> (i32, i32) {
    %c0_i32 = arith.constant 0 : i32
    %c0_i32_0 = arith.constant 0 : i32
    %c0_i32_1 = arith.constant 0 : i32
    return %c0_i32, %c0_i32_0 : i32, i32
  }
  func.func @transform_3(%arg0: i32) -> (i32, i32) {
    %c0_i32 = arith.constant 0 : i32
    %c0_i32_0 = arith.constant 0 : i32
    %c0_i32_1 = arith.constant 0 : i32
    return %c0_i32, %c0_i32_0 : i32, i32
  }
  func.func @transform_4(%arg0: i32) -> (i32, i32) {
    %c0_i32 = arith.constant 0 : i32
    %c0_i32_0 = arith.constant 0 : i32
    %c0_i32_1 = arith.constant 0 : i32
    return %c0_i32, %c0_i32_0 : i32, i32
  }
  func.func @transform_5(%arg0: i32) -> (i32, i32) {
    %c0_i32 = arith.constant 0 : i32
    %c0_i32_0 = arith.constant 0 : i32
    %c0_i32_1 = arith.constant 0 : i32
    return %c0_i32, %c0_i32_0 : i32, i32
  }
  func.func @transform_6(%arg0: i32) -> (i32, i32) {
    %c0_i32 = arith.constant 0 : i32
    %c0_i32_0 = arith.constant 0 : i32
    %c0_i32_1 = arith.constant 0 : i32
    return %c0_i32, %c0_i32_0 : i32, i32
  }
  func.func @transform_7(%arg0: i32) -> (i32, i32) {
    %c0_i32 = arith.constant 0 : i32
    %c0_i32_0 = arith.constant 0 : i32
    %c0_i32_1 = arith.constant 0 : i32
    return %c0_i32, %c0_i32_0 : i32, i32
  }
  func.func @transform_8(%arg0: i32) -> (i32, i32) {
    %c0_i32 = arith.constant 0 : i32
    %c0_i32_0 = arith.constant 0 : i32
    %c0_i32_1 = arith.constant 0 : i32
    return %c0_i32, %c0_i32_0 : i32, i32
  }
  func.func @transform_9(%arg0: i32) -> (i32, i32) {
    %c0_i32 = arith.constant 0 : i32
    %c0_i32_0 = arith.constant 0 : i32
    %c0_i32_1 = arith.constant 0 : i32
    return %c0_i32, %c0_i32_0 : i32, i32
  }
  func.func @transform_10(%arg0: i32) -> (i32, i32) {
    %c0_i32 = arith.constant 0 : i32
    %c0_i32_0 = arith.constant 0 : i32
    %c0_i32_1 = arith.constant 0 : i32
    return %c0_i32, %c0_i32_0 : i32, i32
  }
  func.func @transform_11(%arg0: i32) -> (i32, i32) {
    %c0_i32 = arith.constant 0 : i32
    %c0_i32_0 = arith.constant 0 : i32
    %c0_i32_1 = arith.constant 0 : i32
    return %c0_i32, %c0_i32_0 : i32, i32
  }
  func.func @transform_12(%arg0: i32) -> (i32, i32) {
    %c0_i32 = arith.constant 0 : i32
    %c0_i32_0 = arith.constant 0 : i32
    %c0_i32_1 = arith.constant 0 : i32
    return %c0_i32, %c0_i32_0 : i32, i32
  }
  func.func @transform_13(%arg0: i32) -> (i32, i32) {
    %c0_i32 = arith.constant 0 : i32
    %c0_i32_0 = arith.constant 0 : i32
    %c0_i32_1 = arith.constant 0 : i32
    return %c0_i32, %c0_i32_0 : i32, i32
  }
  func.func @transform_14(%arg0: i32) -> (i32, i32) {
    %c0_i32 = arith.constant 0 : i32
    %c0_i32_0 = arith.constant 0 : i32
    %c0_i32_1 = arith.constant 0 : i32
    return %c0_i32, %c0_i32_0 : i32, i32
  }
  func.func @transform_15(%arg0: i32) -> (i32, i32) {
    %c0_i32 = arith.constant 0 : i32
    %c0_i32_0 = arith.constant 0 : i32
    %c0_i32_1 = arith.constant 0 : i32
    return %c0_i32, %c0_i32_0 : i32, i32
  }
  func.func @transform_16(%arg0: i32) -> (i32, i32) {
    %c0_i32 = arith.constant 0 : i32
    %c0_i32_0 = arith.constant 0 : i32
    %c0_i32_1 = arith.constant 0 : i32
    return %c0_i32, %c0_i32_0 : i32, i32
  }
  func.func @transform_17(%arg0: i32) -> (i32, i32) {
    %c0_i32 = arith.constant 0 : i32
    %c0_i32_0 = arith.constant 0 : i32
    %c0_i32_1 = arith.constant 0 : i32
    return %c0_i32, %c0_i32_0 : i32, i32
  }
  func.func @transform_18(%arg0: i32) -> (i32, i32) {
    %c0_i32 = arith.constant 0 : i32
    %c0_i32_0 = arith.constant 0 : i32
    %c0_i32_1 = arith.constant 0 : i32
    return %c0_i32, %c0_i32_0 : i32, i32
  }
  func.func @transform_19(%arg0: i32) -> (i32, i32) {
    %c0_i32 = arith.constant 0 : i32
    %c0_i32_0 = arith.constant 0 : i32
    return %c0_i32, %arg0 : i32, i32
  }
  func.func @transform_20(%arg0: i32) -> (i32, i32) {
    %c0_i32 = arith.constant 0 : i32
    %c0_i32_0 = arith.constant 0 : i32
    return %c0_i32, %arg0 : i32, i32
  }
}

</mosaic_0001>

<bundles_post_ra>
// kernel: unet_bottleneck_forward.1
= control target key start
LH: loop header
LB: loop body
LE: loop exit
PB: predicated region body
PF: predicated region fallthrough
CT: control target
= control target key end

     0   :  { %v4299_v0 = vmov 0   ;;  %v2469_v3 = vmov 2   ;;  %v2471_v5 = vmov 1   ;;  %v2472_v8 = vmov 3   ;;  %s2474_s21 = smov 15   ;;  %s2478_s22 = smov 127   ;;  %s4277_s3 = inlined_call_operand.vmem [shape: f32[8,9], index: 3, kind: input, shape index: {}]   ;;  %s4278_s0 = inlined_call_operand.vmem [shape: f32[8,512], index: 0, kind: input, shape index: {}]   ;;  %s4279_s4 = inlined_call_operand.vmem [shape: f32[8,1], index: 4, kind: input, shape index: {}]   ;;  %s4280_s8 = inlined_call_operand.vmem [shape: f32[8,1], index: 8, kind: input, shape index: {}]   ;;  %s4281_s5 = inlined_call_operand.vmem [shape: bf16[16,8], index: 5, kind: input, shape index: {}]   ;;  %s4282_s6 = inlined_call_operand.vmem [shape: f32[16,1], index: 6, kind: input, shape index: {}]   ;;  %s4283_s9 = inlined_call_operand.vmem [shape: f32[8,9], index: 9, kind: input, shape index: {}]   ;;  %s4284_s2 = inlined_call_operand.vmem [shape: f32[9,512], index: 2, kind: input, shape index: {}]   ;;  %s4285_s7 = inlined_call_operand.vmem [shape: bf16[8,16], index: 7, kind: input, shape index: {}]   ;;  %s4286_s10 = inlined_call_operand.vmem [shape: f32[8,1], index: 10, kind: input, shape index: {}]   ;;  %s4287_s14 = inlined_call_operand.vmem [shape: f32[8,1], index: 14, kind: input, shape index: {}]   ;;  %s4288_s16 = inlined_call_operand.vmem [shape: f32[16,1], index: 16, kind: input, shape index: {}]   ;;  %s4289_s18 = inlined_call_operand.vmem [shape: f32[9,1], index: 18, kind: input, shape index: {}]   ;;  %s4290_s11 = inlined_call_operand.vmem [shape: bf16[16,8], index: 11, kind: input, shape index: {}]   ;;  %s4291_s12 = inlined_call_operand.vmem [shape: f32[16,1], index: 12, kind: input, shape index: {}]   ;;  %s4292_s13 = inlined_call_operand.vmem [shape: bf16[8,16], index: 13, kind: input, shape index: {}]   ;;  %s4293_s15 = inlined_call_operand.vmem [shape: bf16[16,8], index: 15, kind: input, shape index: {}]   ;;  %s4294_s19 = inlined_call_operand.vmem [shape: f32[8,512], index: 19, kind: output, shape index: {0}]   ;;  %s4295_s17 = inlined_call_operand.vmem [shape: bf16[9,16], index: 17, kind: input, shape index: {}]   ;;  %s4296_s1 = inlined_call_operand.vmem [shape: f32[3,512], index: 1, kind: input, shape index: {}]   ;;  %s4297_s20 = inlined_call_operand.vmem [shape: f32[3,512], index: 20, kind: output, shape index: {1}]  }
   0x1   :  { %4363 = sst [smem:[#allocation33_spill]] %s4277_s3  ;;  %2341 = vset.pattern.permute.xlu0 %v4299_v0  ;;  %2343 = vset.pattern.permute.xlu1 %v2469_v3  ;;  %s2473_s3 = smov 16   ;;  %v2475_v9 = vmov 5   ;;  %v2477_v10 = vmov 4   ;;  %v2479_v11 = vmov 7   ;;  %v2481_v12 = vmov 6  }
   0x2   :  { %4364 = sst [smem:[#allocation34_spill]] %s4278_s0  ;;  %535 = vmatprep.mubr.bf16.mxu0 %v4299_v0  ;;  %578 = vmatprep.mubr.bf16.mxu1 %v4299_v0  ;;  %s2476_s0 = smov 1   ;;  %v2483_v13 = vmov 8   ;;  %v463_v16 = vld [vmem:[%s4282_s6] sm:$0xff]  ;;  %v464_v18 = vld [vmem:[%s4282_s6 + $0x8] sm:$0xff]  ;;  %v89_v38 = vlaneseq  ;;  %v2778_v47 = vld [vmem:[%s4284_s2 + $0x10] sm:$0xff] }
   0x3   :  { %4365 = sst [smem:[#allocation35_spill]] %s4279_s4  ;;  %s2482_s24 = smov 112   ;;  %v896_v17 = vld [vmem:[%s4283_s9] sm:$0xff]  ;;  %v2773_v46 = vld [vmem:[%s4284_s2 + $0x8] sm:$0xff]  ;;  %v2788_v49 = vld [vmem:[%s4284_s2 + $0x18] sm:$0xff]  ;;  %vm490_vm8 = vcmask 1043456  }
   0x4   :  { %4366 = sst [smem:[#allocation36_spill]] %s4280_s8  ;;  %s2470_s8 = smov 17   ;;  %v2759_v41 = vshrl.u32 %v89_v38, 7  ;;  %v2763_v43 = vand.u32 127, %v89_v38  ;;  %v2783_v48 = vld [vmem:[%s4284_s2] sm:$0xff]  ;;  %vm486_vm9 = vcmask 64512  }
   0x5   :  { %4367 = sst [smem:[#allocation37_spill]] %s4281_s5  ;;  %s2484_s4 = smov 111  }
   0x6   :  { %s4368_s23 = sld [smem:[#allocation33_spill]]  ;;  %4372 = vst [vmem:[#allocation2_spill] sm:$0xff] %v2759_v41  ;;  %v2766_v44 = vsub.s32 0, %v2759_v41  ;;  %v2791_v50 = vsub.s32 1, %v2759_v41  ;;  %v2796_v52 = vsub.s32 2, %v2759_v41  ;;  %vm91_vm0 = vcmp.lt.s32.totalorder %v2763_v43, 17 }
   0x7   :  { %s4369_s25 = sld [smem:[#allocation34_spill]]  ;;  %v2816_v57 = vsub.s32 3, %v2759_v41  ;;  %vm133_vm1 = vcmp.lt.s32.totalorder %v2763_v43, 16  ;;  %vm178_vm2 = vcmp.lt.s32.totalorder %v2763_v43, 15  ;;  %vm223_vm3 = vcmp.lt.s32.totalorder %v2763_v43, 1 }
   0x8   :  { %s4370_s28 = sld [smem:[#allocation35_spill]]  ;;  %4374 = vst [vmem:[#allocation4_spill] sm:$0xff] %v2766_v44  ;;  %4375 = vst [vmem:[#allocation5_spill] sm:$0xff] %v2791_v50  ;;  %v2801_v53 = vrot.slane %v2773_v46, %v2766_v44  ;;  %v2805_v54 = vrot.slane %v2778_v47, %v2766_v44  ;;  %v2809_v55 = vrot.slane %v2783_v48, %v2766_v44  ;;  %vm280_vm4 = vcmp.lt.s32.totalorder %v2763_v43, 127 }
   0x9   :  { %s4371_s30 = sld [smem:[#allocation36_spill]]  ;;  %4376 = vst [vmem:[#allocation6_spill] sm:$0xff] %v2796_v52  ;;  %v2813_v56 = vrot.slane %v2788_v49, %v2766_v44  ;;  %4381 = vst [vmem:[#allocation11_spill] sm:$0xff] %v2816_v57  ;;  %v2821_v58 = vrot.slane %v2773_v46, %v2791_v50  ;;  %v2825_v59 = vrot.slane %v2778_v47, %v2791_v50  ;;  %vm325_vm5 = vcmp.lt.s32.totalorder %v2763_v43, 113 }
   0xa   :  { %4377 = vst [vmem:[#allocation7_spill] sm:$0xff] %v2801_v53  ;;  %4378 = vst [vmem:[#allocation8_spill] sm:$0xff] %v2805_v54  ;;  %v2829_v60 = vrot.slane %v2783_v48, %v2791_v50  ;;  %v2837_v63 = vrot.slane %v2788_v49, %v2791_v50  ;;  %vm370_vm6 = vcmp.lt.s32.totalorder %v2763_v43, 112  ;;  %vm415_vm7 = vcmp.lt.s32.totalorder %v2763_v43, 111  ;;  %s4406_s26 = sld [smem:[#allocation37_spill]] }
   0xb   :  { %4379 = vst [vmem:[#allocation9_spill] sm:$0xff] %v2809_v55  ;;  %4380 = vst [vmem:[#allocation10_spill] sm:$0xff] %v2813_v56 }
   0xc   :  { %v2595_v1 = vld [vmem:[%s4368_s23] sm:$0xff]  ;;  %s2480_s23 = smov 113   ;;  %4382 = vst [vmem:[#allocation12_spill] sm:$0xff] %v2821_v58  ;;  %4383 = vst [vmem:[#allocation13_spill] sm:$0xff] %v2825_v59 }
   0xd   :  { %v2600_v2 = vld [vmem:[%s4369_s25] sm:$0xff]  ;;  %118 = vperm.xlu0 %2341, %v2595_v1   ;;  %v2609_v4 = vld [vmem:[%s4369_s25 + $0x8] sm:$0xff]  ;;  %v2620_v6 = vld [vmem:[%s4369_s25 + $0x10] sm:$0xff]  ;;  %4384 = vst [vmem:[#allocation14_spill] sm:$0xff] %v2829_v60 }
   0xe   :  { %81 = vrot.lane.b32.xlu1 %v2600_v2, %s2470_s8  ;;  %v2625_v7 = vld [vmem:[%s4369_s25 + $0x18] sm:$0xff]  ;;  %v80_v14 = vld [vmem:[%s4370_s28] sm:$0xff] }
   0xf   :  { %v466_v15 = vld [vmem:[%s4371_s30] sm:$0xff] }
  0x11   :  { %2342 = vset.pattern.permute.xlu0 %v2471_v5 }
  0x12   :  { %83 = vrot.lane.b32.xlu1 %v2609_v4, %s2470_s8  ;;  %159 = vperm.xlu0 %2342, %v2595_v1  }
  0x16   :  { %85 = vrot.lane.b32.xlu1 %v2620_v6, %s2470_s8  ;;  %87 = vrot.lane.b32.xlu0 %v2625_v7, %s2470_s8 }
  0x17   :  { %2344 = vset.pattern.permute.xlu0 %v2472_v8 }
  0x1a   :  { %125 = vrot.lane.b32.xlu1 %v2600_v2, %s2473_s3  ;;  %127 = vrot.lane.b32.xlu0 %v2609_v4, %s2473_s3 }
  0x1e   :  { %129 = vrot.lane.b32.xlu1 %v2620_v6, %s2473_s3  ;;  %131 = vrot.lane.b32.xlu0 %v2625_v7, %s2473_s3 }
  0x22   :  { %204 = vperm.xlu1 %2343, %v2595_v1   ;;  %170 = vrot.lane.b32.xlu0 %v2600_v2, %s2474_s21 }
  0x26   :  { %172 = vrot.lane.b32.xlu1 %v2609_v4, %s2474_s21  ;;  %174 = vrot.lane.b32.xlu0 %v2620_v6, %s2474_s21 }
  0x27   :  { %2346 = vset.pattern.permute.xlu1 %v2475_v9 }
  0x2a   :  { %176 = vrot.lane.b32.xlu1 %v2625_v7, %s2474_s21  ;;  %249 = vperm.xlu0 %2344, %v2595_v1  }
  0x2e   :  { %215 = vrot.lane.b32.xlu1 %v2600_v2, %s2476_s0  ;;  %219 = vrot.lane.b32.xlu0 %v2620_v6, %s2476_s0 }
  0x2f   :  { %2345 = vset.pattern.permute.xlu0 %v2477_v10 }
  0x32   :  { %217 = vrot.lane.b32.xlu1 %v2609_v4, %s2476_s0  ;;  %261 = vperm.xlu0 %2345, %v2595_v1  }
  0x36   :  { %221 = vrot.lane.b32.xlu1 %v2625_v7, %s2476_s0  ;;  %274 = vrot.lane.b32.xlu0 %v2609_v4, %s2478_s22 }
  0x37   :  { %2348 = vset.pattern.permute.xlu0 %v2479_v11 }
  0x3a   :  { %306 = vperm.xlu1 %2346, %v2595_v1   ;;  %278 = vrot.lane.b32.xlu0 %v2625_v7, %s2478_s22 }
  0x3e   :  { %272 = vrot.lane.b32.xlu1 %v2600_v2, %s2478_s22  ;;  %317 = vrot.lane.b32.xlu0 %v2600_v2, %s2480_s23 }
  0x3f   :  { %2347 = vset.pattern.permute.xlu1 %v2481_v12 }
  0x42   :  { %276 = vrot.lane.b32.xlu1 %v2620_v6, %s2478_s22  ;;  %321 = vrot.lane.b32.xlu0 %v2620_v6, %s2480_s23 }
  0x46   :  { %351 = vperm.xlu1 %2347, %v2595_v1   ;;  %396 = vperm.xlu0 %2348, %v2595_v1  }
  0x4a   :  { %319 = vrot.lane.b32.xlu1 %v2609_v4, %s2480_s23  ;;  %366 = vrot.lane.b32.xlu0 %v2620_v6, %s2482_s24 }
  0x4b   :  { %2351 = vset.pattern.permute.xlu1 %v4299_v0  ;;  %2349 = vset.pattern.permute.xlu0 %v2483_v13 }
  0x4e   :  { %323 = vrot.lane.b32.xlu1 %v2625_v7, %s2480_s23  ;;  %441 = vperm.xlu0 %2349, %v2595_v1   ;;  %v2842_v1 = vrot.slane %v2773_v46, %v2796_v52 }
  0x52   :  { %362 = vrot.lane.b32.xlu1 %v2600_v2, %s2482_s24  ;;  %411 = vrot.lane.b32.xlu0 %v2620_v6, %s2484_s4 }
  0x53   :  { %2350 = vset.pattern.permute.xlu0 %v4299_v0 }
  0x56   :  { %364 = vrot.lane.b32.xlu1 %v2609_v4, %s2482_s24  ;;  %454 = vperm.xlu0 %2350, %v80_v14  }
  0x5a   :  { %368 = vrot.lane.b32.xlu1 %v2625_v7, %s2482_s24  ;;  %803 = vperm.xlu0 %2350, %v466_v15  }
  0x5e   :  { %407 = vrot.lane.b32.xlu1 %v2600_v2, %s2484_s4  ;;  %2352 = vset.pattern.permute.xlu0 %v2471_v5  ;;  %v2849_v5 = vrot.slane %v2778_v47, %v2796_v52 }
  0x5f   :  { %940 = vperm.xlu0 %2352, %v896_v17  }
  0x60   :  { %4386 = vst [vmem:[#allocation16_spill] sm:$0xff] %v2849_v5 }
  0x62   :  { %409 = vrot.lane.b32.xlu1 %v2609_v4, %s2484_s4 }
  0x63   :  { %2353 = vset.pattern.permute.xlu0 %v2469_v3  ;;  %v2845_v3 = vsub.s32 5, %v2759_v41 }
  0x64   :  { %968 = vperm.xlu0 %2353, %v896_v17  }
  0x65   :  { %4385 = vst [vmem:[#allocation15_spill] sm:$0xff] %v2845_v3 }
  0x66   :  { %413 = vrot.lane.b32.xlu1 %v2625_v7, %s2484_s4 }
  0x68   :  { %2354 = vset.pattern.permute.xlu0 %v2472_v8  ;;  %v2853_v8 = vrot.slane %v2783_v48, %v2796_v52 }
  0x69   :  { %996 = vperm.xlu0 %2354, %v896_v17  }
  0x6a   :  { %473 = vperm.xlu1 %2351, %v463_v16   ;;  %4387 = vst [vmem:[#allocation17_spill] sm:$0xff] %v2853_v8  ;;  %v2883_v16 = vrot.slane %v2783_v48, %v2816_v57 }
  0x6c   :  { %4390 = vst [vmem:[#allocation20_spill] sm:$0xff] %v2883_v16 }
  0x6d   :  { %2355 = vset.pattern.permute.xlu0 %v2477_v10  ;;  %v2860_v10 = vsub.s32 6, %v2759_v41 }
  0x6e   :  { %478 = vperm.xlu1 %2351, %v464_v18   ;;  %1008 = vperm.xlu0 %2355, %v896_v17  }
  0x6f   :  { %4389 = vst [vmem:[#allocation19_spill] sm:$0xff] %v2860_v10 }
  0x72   :  { %916 = vperm.xlu1 %2351, %v896_v17   ;;  %2358 = vset.pattern.permute.xlu0 %v2479_v11 }
  0x73   :  { %1092 = vperm.xlu0 %2358, %v896_v17  }
  0x76   :  { %2356 = vset.pattern.permute.xlu1 %v2475_v9  ;;  %v2857_v9 = vrot.slane %v2788_v49, %v2796_v52  ;;  %v2899_v52 = vrot.slane %v2788_v49, %v2845_v3 }
  0x77   :  { %1036 = vperm.xlu1 %2356, %v896_v17   ;;  %2359 = vset.pattern.permute.xlu0 %v2483_v13  ;;  %v2873_v13 = vrot.slane %v2778_v47, %v2816_v57 }
  0x78   :  { %1120 = vperm.xlu0 %2359, %v896_v17   ;;  %4388 = vst [vmem:[#allocation18_spill] sm:$0xff] %v2857_v9  ;;  %4392 = vst [vmem:[#allocation22_spill] sm:$0xff] %v2899_v52 }
  0x7b   :  { %2357 = vset.pattern.permute.xlu1 %v2481_v12  ;;  %v2869_v12 = vrot.slane %v2773_v46, %v2816_v57 }
  0x7c   :  { %1064 = vperm.xlu1 %2357, %v896_v17   ;;  %2360 = vset.pattern.permute.xlu0 %v4299_v0  ;;  %v2887_v17 = vrot.slane %v2788_v49, %v2816_v57  ;;  %v2907_v57 = vrot.slane %v2778_v47, %v2845_v3 }
  0x7e   :  { %4393 = vst [vmem:[#allocation23_spill] sm:$0xff] %v2907_v57 }
  0x80   :  { %v2717_v19 = vpop.permute.xlu1 %81  ;;  %2361 = vset.pattern.permute.xlu1 %v4299_v0  ;;  %v2895_v0 = vrot.slane %v2783_v48, %v2845_v3 }
  0x84   :  { %v2719_v20 = vpop.permute.xlu1 %83 }
  0x85   :  { %v94_v50 = vsel %vm91_vm0, %v2717_v19, %v2719_v20 }
  0x88   :  { %v2721_v21 = vpop.permute.xlu0 %118  ;;  %v2724_v22 = vpop.permute.xlu1 %85 }
  0x89   :  { %v93_v11 = vsel %vm91_vm0, %v2719_v20, %v2724_v22 }
  0x8a   :  { %v114_v44 = vmul.f32 %v2805_v54, %v93_v11 }
  0x8c   :  { %v2731_v25 = vpop.permute.xlu1 %125 }
  0x8d   :  { %v2726_v23 = vpop.permute.xlu0 %159 }
  0x90   :  { %v2733_v27 = vpop.permute.xlu1 %129 }
  0x91   :  { %v2729_v24 = vpop.permute.xlu0 %87 }
  0x92   :  { %v95_v20 = vsel %vm91_vm0, %v2729_v24, %v2717_v19 }
  0x95   :  { %v128_v26 = vpop.permute.xlu0 %127 }
  0x96   :  { %v135_v14 = vsel %vm133_vm1, %v128_v26, %v2733_v27  ;;  %v136_v15 = vsel %vm133_vm1, %v2731_v25, %v128_v26  ;;  %v2903_v26 = vrot.slane %v2773_v46, %v2845_v3  ;;  %v92_v3 = vsel %vm91_vm0, %v2724_v22, %v2729_v24 }
  0x97   :  { %v155_v11 = vmul.f32 %v2821_v58, %v136_v15  ;;  %v156_v54 = vmul.f32 %v2825_v59, %v135_v14  ;;  %v113_v14 = vmul.f32 %v2801_v53, %v94_v50  ;;  %v112_v15 = vmul.f32 %v2809_v55, %v95_v20 }
  0x98   :  { %v123_v55 = vmul.f32 %v2721_v21, %v114_v44 }
  0x99   :  { %v2735_v28 = vpop.permute.xlu0 %131  ;;  %v164_v53 = vmul.f32 %v2726_v23, %v156_v54  ;;  %v121_v54 = vmul.f32 %v2721_v21, %v112_v15 }
  0x9a   :  { %v134_v57 = vsel %vm133_vm1, %v2733_v27, %v2735_v28  ;;  %v137_v52 = vsel %vm133_vm1, %v2735_v28, %v2731_v25  ;;  %v2954_v27 = vrot.slane %v2778_v47, %v2860_v10  ;;  %v2958_v25 = vrot.slane %v2788_v49, %v2860_v10 }
  0x9b   :  { %v2961_v28 = vsub.s32 7, %v2759_v41  ;;  %v157_v41 = vmul.f32 %v2837_v63, %v134_v57 }
  0x9c   :  { %4395 = vst [vmem:[#allocation25_spill] sm:$0xff] %v2954_v27  ;;  %4396 = vst [vmem:[#allocation26_spill] sm:$0xff] %v2958_v25 }
  0x9d   :  { %v2737_v29 = vpop.permute.xlu1 %204  ;;  %v2739_v30 = vpop.permute.xlu0 %170  ;;  %4397 = vst [vmem:[#allocation27_spill] sm:$0xff] %v2961_v28 }
  0xa1   :  { %v2741_v31 = vpop.permute.xlu1 %172  ;;  %v2743_v32 = vpop.permute.xlu0 %174 }
  0xa2   :  { %v181_v22 = vsel %vm178_vm2, %v2739_v30, %v2741_v31  ;;  %v180_v19 = vsel %vm178_vm2, %v2741_v31, %v2743_v32  ;;  %v115_v31 = vmul.f32 %v2813_v56, %v92_v3  ;;  %v122_v56 = vmul.f32 %v2721_v21, %v113_v14 }
  0xa3   :  { %v200_v20 = vmul.f32 %v2842_v1, %v181_v22  ;;  %v201_v3 = vmul.f32 %v2849_v5, %v180_v19 }
  0xa5   :  { %v2745_v33 = vpop.permute.xlu1 %176  ;;  %v2747_v34 = vpop.permute.xlu0 %249  ;;  %v208_v14 = vmul.f32 %v2737_v29, %v200_v20 }
  0xa6   :  { %v179_v50 = vsel %vm178_vm2, %v2743_v32, %v2745_v33  ;;  %v182_v59 = vsel %vm178_vm2, %v2745_v33, %v2739_v30  ;;  %v163_v32 = vmul.f32 %v2726_v23, %v155_v11  ;;  %v124_v11 = vmul.f32 %v2721_v21, %v115_v31 }
  0xa7   :  { %v199_v33 = vmul.f32 %v2853_v8, %v182_v59  ;;  %v209_v21 = vmul.f32 %v2737_v29, %v201_v3  ;;  %v168_v31 = vadd.f32 %v164_v53, %v123_v55  ;;  %v3025_v53 = vrot.slane %v2773_v46, %v2961_v28 }
  0xa8   :  { %v167_v15 = vadd.f32 %v163_v32, %v122_v56  ;;  %v3029_v55 = vrot.slane %v2778_v47, %v2961_v28  ;;  %v3033_v56 = vrot.slane %v2788_v49, %v2961_v28 }
  0xa9   :  { %v2749_v35 = vpop.permute.xlu1 %215  ;;  %v2751_v36 = vpop.permute.xlu0 %219  ;;  %4399 = vst [vmem:[#allocation29_spill] sm:$0xff] %v3025_v53  ;;  %v213_v32 = vadd.f32 %v209_v21, %v168_v31 }
  0xaa   :  { %4400 = vst [vmem:[#allocation30_spill] sm:$0xff] %v3029_v55  ;;  %4401 = vst [vmem:[#allocation31_spill] sm:$0xff] %v3033_v56  ;;  %v212_v3 = vadd.f32 %v208_v14, %v167_v15 }
  0xad   :  { %v2753_v37 = vpop.permute.xlu1 %217  ;;  %v2755_v39 = vpop.permute.xlu0 %261 }
  0xae   :  { %v225_v57 = vsel %vm223_vm3, %v2753_v37, %v2751_v36  ;;  %v226_v44 = vsel %vm223_vm3, %v2749_v35, %v2753_v37  ;;  %v165_v37 = vmul.f32 %v2726_v23, %v157_v41  ;;  %v3021_v41 = vrot.slane %v2783_v48, %v2961_v28 }
  0xb0   :  { %4398 = vst [vmem:[#allocation28_spill] sm:$0xff] %v3021_v41  ;;  %v169_v20 = vadd.f32 %v165_v37, %v124_v11  ;;  %v264_v11 = vmul.f32 %v2755_v39, %v2600_v2 }
  0xb1   :  { %v2757_v40 = vpop.permute.xlu1 %221  ;;  %v2768_v45 = vpop.permute.xlu0 %274 }
  0xb2   :  { %v224_v59 = vsel %vm223_vm3, %v2751_v36, %v2757_v40  ;;  %v227_v22 = vsel %vm223_vm3, %v2757_v40, %v2749_v35  ;;  %v246_v36 = vmul.f32 %v2873_v13, %v225_v57  ;;  %v207_v35 = vmul.f32 %v2737_v29, %v199_v33 }
  0xb5   :  { %v2761_v42 = vpop.permute.xlu1 %306  ;;  %v2831_v61 = vpop.permute.xlu0 %278 }
  0xb6   :  { %4373 = vst [vmem:[#allocation3_spill] sm:$0xff] %v2761_v42  ;;  %v2920_v42 = vrot.slane %v2773_v46, %v2860_v10 }
  0xb8   :  { %4394 = vst [vmem:[#allocation24_spill] sm:$0xff] %v2920_v42 }
  0xb9   :  { %v2793_v51 = vpop.permute.xlu1 %272  ;;  %v2889_v18 = vpop.permute.xlu0 %317 }
  0xba   :  { %v283_v46 = vsel %vm280_vm4, %v2793_v51, %v2768_v45 }
  0xbb   :  { %v301_v37 = vmul.f32 %v2895_v0, %v283_v46 }
  0xbd   :  { %v2833_v62 = vpop.permute.xlu1 %276  ;;  %v2973_v58 = vpop.permute.xlu0 %321 }
  0xbe   :  { %v282_v47 = vsel %vm280_vm4, %v2768_v45, %v2833_v62 }
  0xbf   :  { %v302_v14 = vmul.f32 %v2903_v26, %v282_v47 }
  0xc1   :  { %v2891_v38 = vpop.permute.xlu1 %351 }
  0xc2   :  { %4391 = vst [vmem:[#allocation21_spill] sm:$0xff] %v2891_v38  ;;  %v2916_v38 = vrot.slane %v2783_v48, %v2860_v10  ;;  %v154_v10 = vmul.f32 %v2829_v60, %v137_v52  ;;  %v202_v52 = vmul.f32 %v2857_v9, %v179_v50  ;;  %v245_v50 = vmul.f32 %v2869_v12, %v226_v44  ;;  %v3013_v9 = vpop.permute.xlu0 %396 }
  0xc3   :  { %v254_v48 = vmul.f32 %v2747_v34, %v246_v36 }
  0xc4   :  { %v162_v19 = vmul.f32 %v2726_v23, %v154_v10  ;;  %v210_v40 = vmul.f32 %v2737_v29, %v202_v52  ;;  %v244_v10 = vmul.f32 %v2883_v16, %v227_v22  ;;  %v247_v23 = vmul.f32 %v2887_v17, %v224_v59 }
  0xc5   :  { %v2948_v24 = vpop.permute.xlu1 %319  ;;  %v253_v33 = vmul.f32 %v2747_v34, %v245_v50  ;;  %v265_v59 = vmul.f32 %v2755_v39, %v2609_v4  ;;  %v266_v22 = vmul.f32 %v2755_v39, %v2620_v6 }
  0xc6   :  { %v166_v29 = vadd.f32 %v162_v19, %v121_v54  ;;  %v214_v57 = vadd.f32 %v210_v40, %v169_v20  ;;  %v252_v44 = vmul.f32 %v2747_v34, %v244_v10  ;;  %v255_v54 = vmul.f32 %v2747_v34, %v247_v23  ;;  %v367_v45 = vpop.permute.xlu0 %366  ;;  %v4402_v40 = vld [vmem:[#allocation22_spill] sm:$0xff]  ;;  %v4403_v23 = vld [vmem:[#allocation3_spill] sm:$0xff] }
  0xc7   :  { %v267_v19 = vmul.f32 %v2755_v39, %v2625_v7  ;;  %v327_v2 = vsel %vm325_vm5, %v2948_v24, %v2973_v58  ;;  %v328_v4 = vsel %vm325_vm5, %v2889_v18, %v2948_v24  ;;  %v257_v6 = vadd.f32 %v253_v33, %v212_v3  ;;  %v4404_v20 = vld [vmem:[#allocation23_spill] sm:$0xff] }
  0xc8   :  { %v211_v52 = vadd.f32 %v207_v35, %v166_v29  ;;  %v258_v34 = vadd.f32 %v254_v48, %v213_v32  ;;  %v284_v7 = vsel %vm280_vm4, %v2831_v61, %v2793_v51  ;;  %v281_v39 = vsel %vm280_vm4, %v2833_v62, %v2831_v61 }
  0xc9   :  { %v2984_v30 = vpop.permute.xlu1 %323  ;;  %v259_v31 = vadd.f32 %v255_v54, %v214_v57  ;;  %v346_v36 = vmul.f32 %v2916_v38, %v328_v4  ;;  %v347_v35 = vmul.f32 %v2920_v42, %v327_v2  ;;  %v304_v10 = vmul.f32 %v4402_v40, %v284_v7  ;;  %v4405_v54 = vld [vmem:[#allocation21_spill] sm:$0xff] }
  0xca   :  { %v256_v15 = vadd.f32 %v252_v44, %v211_v52  ;;  %v326_v51 = vsel %vm325_vm5, %v2973_v58, %v2984_v30  ;;  %v329_v61 = vsel %vm325_vm5, %v2984_v30, %v2889_v18  ;;  %v442_v62 = vpop.permute.xlu0 %441  ;;  %v309_v29 = vmul.f32 %v4403_v23, %v301_v37 }
  0xcb   :  { %v303_v3 = vmul.f32 %v4404_v20, %v281_v39  ;;  %v310_v32 = vmul.f32 %v4403_v23, %v302_v14  ;;  %v269_v30 = vadd.f32 %v265_v59, %v257_v6  ;;  %v270_v47 = vadd.f32 %v266_v22, %v258_v34  ;;  %v2297_v59 = vld [vmem:[%s4284_s2 + $0x20] ss:$0 sm:$0xff] }
  0xcc   :  { %v349_v52 = vmul.f32 %v2958_v25, %v329_v61  ;;  %v268_v57 = vadd.f32 %v264_v11, %v256_v15  ;;  %v271_v44 = vadd.f32 %v267_v19, %v259_v31  ;;  %v354_v37 = vmul.f32 %v4405_v54, %v346_v36  ;;  %v2298_v11 = vld [vmem:[%s4284_s2 + $0x28] ss:$0 sm:$0xff] }
  0xcd   :  { %v363_v5 = vpop.permute.xlu1 %362  ;;  %v355_v14 = vmul.f32 %v4405_v54, %v347_v35  ;;  %v312_v2 = vmul.f32 %v4403_v23, %v304_v10  ;;  %v314_v19 = vadd.f32 %v310_v32, %v269_v30  ;;  %v2300_v32 = vld [vmem:[%s4284_s2 + $0x38] ss:$0 sm:$0xff] }
  0xce   :  { %v313_v22 = vadd.f32 %v309_v29, %v268_v57  ;;  %v412_v7 = vpop.permute.xlu0 %411  ;;  %v357_v15 = vmul.f32 %v4405_v54, %v349_v52 }
  0xcf   :  { %v316_v61 = vadd.f32 %v312_v2, %v271_v44 }
  0xd1   :  { %v365_v49 = vpop.permute.xlu1 %364  ;;  %v361_v52 = vadd.f32 %v357_v15, %v316_v61 }
  0xd2   :  { %v372_v50 = vsel %vm370_vm6, %v365_v49, %v367_v45  ;;  %v373_v24 = vsel %vm370_vm6, %v363_v5, %v365_v49  ;;  %v348_v49 = vmul.f32 %v2954_v27, %v326_v51  ;;  %v359_v51 = vadd.f32 %v355_v14, %v314_v19  ;;  %v455_v14 = vpop.permute.xlu0 %454 }
  0xd3   :  { %v391_v33 = vmul.f32 %v3021_v41, %v373_v24  ;;  %v392_v48 = vmul.f32 %v3025_v53, %v372_v50  ;;  %v358_v24 = vadd.f32 %v354_v37, %v313_v22 }
  0xd5   :  { %v369_v21 = vpop.permute.xlu1 %368  ;;  %v399_v6 = vmul.f32 %v3013_v9, %v391_v33  ;;  %v400_v34 = vmul.f32 %v3013_v9, %v392_v48 }
  0xd6   :  { %v371_v58 = vsel %vm370_vm6, %v367_v45, %v369_v21  ;;  %v374_v46 = vsel %vm370_vm6, %v369_v21, %v363_v5  ;;  %v311_v45 = vmul.f32 %v4403_v23, %v303_v3  ;;  %v356_v21 = vmul.f32 %v4405_v54, %v348_v49  ;;  %v2299_v3 = vld [vmem:[%s4284_s2 + $0x30] ss:$0 sm:$0xff] }
  0xd7   :  { %v393_v4 = vmul.f32 %v3029_v55, %v371_v58  ;;  %v394_v5 = vmul.f32 %v3033_v56, %v374_v46  ;;  %v404_v46 = vadd.f32 %v400_v34, %v359_v51  ;;  %v403_v30 = vadd.f32 %v399_v6, %v358_v24 }
  0xd8   :  { %v315_v10 = vadd.f32 %v311_v45, %v270_v47 }
  0xd9   :  { %v408_v18 = vpop.permute.xlu1 %407  ;;  %v401_v23 = vmul.f32 %v3013_v9, %v393_v4  ;;  %v402_v29 = vmul.f32 %v3013_v9, %v394_v5 }
  0xda   :  { %v360_v49 = vadd.f32 %v356_v21, %v315_v10 }
  0xdb   :  { %v406_v2 = vadd.f32 %v402_v29, %v361_v52 }
  0xdc   :  { %v405_v45 = vadd.f32 %v401_v23, %v360_v49 }
  0xdd   :  { %v410_v39 = vpop.permute.xlu1 %409 }
  0xde   :  { %v417_v31 = vsel %vm415_vm7, %v410_v39, %v412_v7  ;;  %v418_v50 = vsel %vm415_vm7, %v408_v18, %v410_v39 }
  0xdf   :  { %v436_v36 = vmul.f32 %v2297_v59, %v418_v50  ;;  %v437_v35 = vmul.f32 %v2298_v11, %v417_v31  ;;  %v4407_v50 = vmov 0  }
  0xe1   :  { %v444_v33 = vmul.f32 %v442_v62, %v436_v36  ;;  %v445_v48 = vmul.f32 %v442_v62, %v437_v35  ;;  %v414_v58 = vpop.permute.xlu1 %413 }
  0xe2   :  { %v416_v47 = vsel %vm415_vm7, %v412_v7, %v414_v58  ;;  %v419_v9 = vsel %vm415_vm7, %v414_v58, %v408_v18  ;;  %v2362_v7 = vld [vmem:[%s4406_s26] sm:$0xff]  }
  0xe3   :  { %v438_v57 = vmul.f32 %v2299_v3, %v416_v47  ;;  %v439_v44 = vmul.f32 %v2300_v32, %v419_v9  ;;  %v449_v54 = vadd.f32 %v445_v48, %v404_v46  ;;  %v448_v37 = vadd.f32 %v444_v33, %v403_v30 }
  0xe5   :  { %v446_v4 = vmul.f32 %v442_v62, %v438_v57  ;;  %v447_v5 = vmul.f32 %v442_v62, %v439_v44  ;;  %v458_v59 = vadd.f32 %v455_v14, %v449_v54  ;;  %v457_v11 = vadd.f32 %v455_v14, %v448_v37  ;;  %v474_v24 = vpop.permute.xlu1 %473 }
  0xe7   :  { %v468_v22 = vpack.c.bf16 %v458_v59, %v458_v59  ;;  %v467_v19 = vpack.c.bf16 %v457_v11, %v457_v11  ;;  %v451_v6 = vadd.f32 %v447_v5, %v406_v2  ;;  %v450_v34 = vadd.f32 %v446_v4, %v405_v45 }
  0xe9   :  { %2302 = vmatprep.subr.msk.bf16.mxu0 %vm490_vm8, %v468_v22  ;;  %v492_v18 = vsel %vm490_vm8, %v467_v19, 0  ;;  %v460_v39 = vadd.f32 %v455_v14, %v451_v6  ;;  %v459_v21 = vadd.f32 %v455_v14, %v450_v34  ;;  %v479_v3 = vpop.permute.xlu1 %478 }
  0xea   :  { %518 = vmatpush1.bf16.msra.mxu0 %v492_v18 }
  0xeb   :  { %v470_v62 = vpack.c.bf16 %v460_v39, %v460_v39  ;;  %v469_v15 = vpack.c.bf16 %v459_v21, %v459_v21 }
  0xed   :  { %2303 = vmatmul.mubr.msk.bf16.vlgmr.msra.gmra.mxu0 %vm486_vm9, %v2362_v7  ;;  %2304 = vmatprep.subr.msk.bf16.mxu1 %vm490_vm8, %v470_v62  ;;  %v498_v31 = vsel %vm490_vm8, %v469_v15, 0 }
  0xee   :  { %561 = vmatpush1.bf16.msra.mxu1 %v498_v31  ;;  %842 = vmatprep.mubr.bf16.mxu0 %v4407_v50 }
  0xf1   :  { %2305 = vmatmul.mubr.msk.bf16.vlgmr.msra.gmra.mxu1 %vm486_vm9, %v2362_v7 }
  0xf2   :  { %883 = vmatprep.mubr.bf16.mxu1 %v4407_v50 }
 0x1ad   :  { %v537_v36 = vpop.f32.mrf.mxu0 }
 0x1ae   :  { %v3143_v35 = vadd.f32 %v537_v36, %v474_v24 }
 0x1af   :  { %v539_v51 = vpop.f32.mrf.mxu0 }
 0x1b0   :  { %v3146_v61 = vmul.f32 0.70710677, %v3143_v35  ;;  %v3148_v10 = vadd.f32 %v539_v51, %v474_v24 }
 0x1b1   :  { %v541_v23 = vpop.f32.mrf.mxu0  ;;  %v580_v29 = vpop.f32.mrf.mxu1 }
 0x1b2   :  { %v621_v32 = vand.u32 2147483647, %v3146_v61  ;;  %v3152_v33 = vmul.f32 0.70710677, %v3148_v10  ;;  %v3154_v48 = vadd.f32 %v541_v23, %v479_v3  ;;  %v3156_v58 = vadd.f32 %v580_v29, %v474_v24 }
 0x1b3   :  { %v543_v47 = vpop.f32.mrf.mxu0  ;;  %v582_v57 = vpop.f32.mrf.mxu1  ;;  %vm605_vm10 = vcmp.ge.f32.partialorder %v3146_v61, 0.0 }
 0x1b4   :  { %v629_v46 = vmul.f32 0.3275911, %v621_v32  ;;  %v622_v30 = vand.u32 2147483647, %v3152_v33  ;;  %v3160_v49 = vmul.f32 0.70710677, %v3154_v48  ;;  %v3166_v14 = vadd.f32 %v543_v47, %v479_v3 }
 0x1b5   :  { %v3164_v54 = vmul.f32 0.70710677, %v3156_v58  ;;  %v584_v4 = vpop.f32.mrf.mxu1  ;;  %v3175_v22 = vadd.f32 %v582_v57, %v474_v24  ;;  %v725_v7 = vsub.f32 0.0, %v621_v32  ;;  %vm606_vm11 = vcmp.ge.f32.partialorder %v3152_v33, 0.0 }
 0x1b6   :  { %v637_v9 = vadd.f32 1.0, %v629_v46  ;;  %v630_v52 = vmul.f32 0.3275911, %v622_v30  ;;  %v625_v44 = vand.u32 2147483647, %v3160_v49  ;;  %v3177_v19 = vadd.f32 %v584_v4, %v479_v3 }
 0x1b7   :  { %v3169_v45 = vand.u32 2147483647, %v3164_v54  ;;  %v3173_v11 = vmul.f32 0.70710677, %v3166_v14  ;;  %v3181_v18 = vmul.f32 0.70710677, %v3175_v22  ;;  %v586_v31 = vpop.f32.mrf.mxu1  ;;  %v733_v29 = vmul.f32 %v725_v7, %v621_v32 }
 0x1b8   :  { %2368 = vrcp.f32 %v637_v9  ;;  %v638_v37 = vadd.f32 1.0, %v630_v52  ;;  %v633_v2 = vmul.f32 0.3275911, %v625_v44  ;;  %v726_v21 = vsub.f32 0.0, %v622_v30 }
 0x1b9   :  { %v631_v59 = vmul.f32 0.3275911, %v3169_v45  ;;  %v626_v34 = vand.u32 2147483647, %v3173_v11  ;;  %v624_v62 = vand.u32 2147483647, %v3181_v18  ;;  %v3188_v46 = vadd.f32 %v586_v31, %v479_v3 }
 0x1ba   :  { %2370 = vrcp.f32 %v638_v37  ;;  %v641_v5 = vadd.f32 1.0, %v633_v2  ;;  %v3185_v15 = vmul.f32 0.70710677, %v3177_v19  ;;  %v729_v36 = vsub.f32 0.0, %v625_v44 }
 0x1bb   :  { %v639_v6 = vadd.f32 1.0, %v631_v59  ;;  %v634_v39 = vmul.f32 0.3275911, %v626_v34  ;;  %v632_v51 = vmul.f32 0.3275911, %v624_v62  ;;  %v734_v9 = vmul.f32 %v726_v21, %v622_v30 }
 0x1bc   :  { %2372 = vrcp.f32 %v641_v5  ;;  %v627_v23 = vand.u32 2147483647, %v3185_v15  ;;  %v3194_v2 = vmul.f32 0.70710677, %v3188_v46  ;;  %v737_v4 = vmul.f32 %v729_v36, %v625_v44 }
 0x1bd   :  { %2374 = vrcp.f32 %v639_v6  ;;  %v642_v24 = vadd.f32 1.0, %v634_v39  ;;  %v640_v52 = vadd.f32 1.0, %v632_v51  ;;  %v741_v32 = vmul.f32 1.442695, %v733_v29 }
 0x1be   :  { %v635_v57 = vmul.f32 0.3275911, %v627_v23  ;;  %v628_v3 = vand.u32 2147483647, %v3194_v2  ;;  %v743_v39 = vmul.f32 1.442695, %v734_v9 }
 0x1bf   :  { %2376 = vrcp.f32 %v642_v24  ;;  %v730_v30 = vsub.f32 0.0, %v626_v34  ;;  %v727_v24 = vsub.f32 0.0, %v3169_v45  ;;  %v728_v29 = vsub.f32 0.0, %v624_v62 }
 0x1c0   :  { %2378 = vrcp.f32 %v640_v52  ;;  %v643_v5 = vadd.f32 1.0, %v635_v57  ;;  %v636_v44 = vmul.f32 0.3275911, %v628_v3  ;;  %v749_v52 = vmul.f32 1.442695, %v737_v4 }
 0x1c1   :  { %v738_v55 = vmul.f32 %v730_v30, %v626_v34  ;;  %v731_v25 = vsub.f32 0.0, %v627_v23  ;;  %v736_v27 = vmul.f32 %v728_v29, %v624_v62  ;;  %vm609_vm12 = vcmp.ge.f32.partialorder %v3160_v49, 0.0 }
 0x1c2   :  { %2380 = vrcp.f32 %v643_v5  ;;  %vm610_vm13 = vcmp.ge.f32.partialorder %v3173_v11, 0.0  ;;  %vm607_vm14 = vcmp.ge.f32.partialorder %v3164_v54, 0.0  ;;  %vm611_vm15 = vcmp.ge.f32.partialorder %v3185_v15, 0.0 }
 0x1c3   :  { %2382 = vpow2.f32 %v741_v32  ;;  %v735_v32 = vmul.f32 %v727_v24, %v3169_v45  ;;  %v751_v30 = vmul.f32 1.442695, %v738_v55  ;;  %v732_v24 = vsub.f32 0.0, %v628_v3 }
 0x1c4   :  { %2384 = vpow2.f32 %v743_v39 }
 0x1c5   :  { %v3190_v47 = vpop.eup %2368  ;;  %v745_v45 = vmul.f32 1.442695, %v735_v32 }
 0x1c6   :  { %v653_v37 = vmul.f32 1.0614054, %v3190_v47 }
 0x1c7   :  { %v3196_v59 = vpop.eup %2370 }
 0x1c8   :  { %v661_v6 = vadd.f32 -1.4531521, %v653_v37  ;;  %v654_v7 = vmul.f32 1.0614054, %v3196_v59  ;;  %v644_v37 = vadd.f32 1.0, %v636_v44 }
 0x1c9   :  { %v3200_v21 = vpop.eup %2372 }
 0x1ca   :  { %v669_v31 = vmul.f32 %v3190_v47, %v661_v6  ;;  %v662_v36 = vadd.f32 -1.4531521, %v654_v7  ;;  %v657_v51 = vmul.f32 1.0614054, %v3200_v21  ;;  %v3205_v28 = vpop.eup %2374  ;;  %2386 = vrcp.f32 %v644_v37 }
 0x1cb   :  { %v655_v5 = vmul.f32 1.0614054, %v3205_v28  ;;  %2388 = vpow2.f32 %v749_v52  ;;  %v739_v37 = vmul.f32 %v731_v25, %v627_v23 }
 0x1cc   :  { %v677_v57 = vadd.f32 1.4214138, %v669_v31  ;;  %v670_v9 = vmul.f32 %v3196_v59, %v662_v36  ;;  %v665_v56 = vadd.f32 -1.4531521, %v657_v51  ;;  %v3212_v53 = vpop.eup %2376  ;;  %2390 = vpow2.f32 %v751_v30 }
 0x1cd   :  { %v663_v44 = vadd.f32 -1.4531521, %v655_v5  ;;  %v753_v23 = vmul.f32 1.442695, %v739_v37 }
 0x1ce   :  { %v685_v6 = vmul.f32 %v3190_v47, %v677_v57  ;;  %v678_v7 = vadd.f32 1.4214138, %v670_v9  ;;  %v673_v4 = vmul.f32 %v3200_v21, %v665_v56  ;;  %v658_v57 = vmul.f32 1.0614054, %v3212_v53  ;;  %v3219_v9 = vpop.eup %2378 }
 0x1cf   :  { %v671_v51 = vmul.f32 %v3205_v28, %v663_v44  ;;  %v3225_v44 = vpop.eup %2380 }
 0x1d0   :  { %v693_v31 = vadd.f32 -0.28449672, %v685_v6  ;;  %v686_v39 = vmul.f32 %v3196_v59, %v678_v7  ;;  %v681_v34 = vadd.f32 1.4214138, %v673_v4  ;;  %v666_v29 = vadd.f32 -1.4531521, %v658_v57 }
 0x1d1   :  { %v679_v62 = vadd.f32 1.4214138, %v671_v51  ;;  %v747_v6 = vmul.f32 1.442695, %v736_v27  ;;  %v656_v4 = vmul.f32 1.0614054, %v3219_v9  ;;  %v740_v51 = vmul.f32 %v732_v24, %v628_v3 }
 0x1d2   :  { %v701_v36 = vmul.f32 %v3190_v47, %v693_v31  ;;  %v694_v56 = vadd.f32 -0.28449672, %v686_v39  ;;  %v689_v52 = vmul.f32 %v3200_v21, %v681_v34  ;;  %v674_v25 = vmul.f32 %v3212_v53, %v666_v29 }
 0x1d3   :  { %v687_v31 = vmul.f32 %v3205_v28, %v679_v62  ;;  %v664_v34 = vadd.f32 -1.4531521, %v656_v4  ;;  %2392 = vpow2.f32 %v747_v6  ;;  %v659_v57 = vmul.f32 1.0614054, %v3225_v44 }
 0x1d4   :  { %v709_v5 = vadd.f32 0.2548296, %v701_v36  ;;  %v702_v55 = vmul.f32 %v3196_v59, %v694_v56  ;;  %v697_v7 = vadd.f32 -0.28449672, %v689_v52  ;;  %v682_v36 = vadd.f32 1.4214138, %v674_v25  ;;  %v2383_v56 = vpop.eup %2382 }
 0x1d5   :  { %v695_v27 = vadd.f32 -0.28449672, %v687_v31  ;;  %v672_v30 = vmul.f32 %v3219_v9, %v664_v34  ;;  %v2385_v37 = vpop.eup %2384  ;;  %2394 = vpow2.f32 %v745_v45  ;;  %v667_v3 = vadd.f32 -1.4531521, %v659_v57 }
 0x1d6   :  { %v710_v32 = vadd.f32 0.2548296, %v702_v55  ;;  %v705_v39 = vmul.f32 %v3200_v21, %v697_v7  ;;  %v717_v52 = vmul.f32 %v3190_v47, %v709_v5  ;;  %v690_v55 = vmul.f32 %v3212_v53, %v682_v36 }
 0x1d7   :  { %v3234_v24 = vpop.eup %2386  ;;  %v680_v7 = vadd.f32 1.4214138, %v672_v30  ;;  %2396 = vpow2.f32 %v753_v23  ;;  %v755_v4 = vmul.f32 1.442695, %v740_v51  ;;  %v675_v25 = vmul.f32 %v3225_v44, %v667_v3 }
 0x1d8   :  { %v718_v62 = vmul.f32 %v3196_v59, %v710_v32  ;;  %v713_v29 = vadd.f32 0.2548296, %v705_v39  ;;  %v2389_v47 = vpop.eup %2388  ;;  %v703_v59 = vmul.f32 %v3205_v28, %v695_v27  ;;  %v698_v31 = vadd.f32 -0.28449672, %v690_v55 }
 0x1d9   :  { %v757_v32 = vmul.f32 %v2383_v56, %v717_v52  ;;  %v688_v45 = vmul.f32 %v3219_v9, %v680_v7  ;;  %v660_v34 = vmul.f32 1.0614054, %v3234_v24  ;;  %v4346_v36 = vmov -1.0   ;;  %v2391_v7 = vpop.eup %2390 }
 0x1da   :  { %v721_v6 = vmul.f32 %v3200_v21, %v713_v29  ;;  %v758_v5 = vmul.f32 %v2385_v37, %v718_v62  ;;  %v613_v21 = vsel %vm605_vm10, 1.0, %v4346_v36  ;;  %v706_v23 = vmul.f32 %v3212_v53, %v698_v31 }
 0x1db   :  { %v683_v51 = vadd.f32 1.4214138, %v675_v25  ;;  %v696_v57 = vadd.f32 -0.28449672, %v688_v45  ;;  %v668_v56 = vadd.f32 -1.4531521, %v660_v34  ;;  %2398 = vpow2.f32 %v755_v4 }
 0x1dc   :  { %v761_v39 = vmul.f32 %v2389_v47, %v721_v6  ;;  %v766_v52 = vsub.f32 1.0, %v758_v5  ;;  %v711_v62 = vadd.f32 0.2548296, %v703_v59  ;;  %v714_v29 = vadd.f32 0.2548296, %v706_v23 }
 0x1dd   :  { %v691_v30 = vmul.f32 %v3225_v44, %v683_v51  ;;  %v765_v37 = vsub.f32 1.0, %v757_v32  ;;  %v704_v55 = vmul.f32 %v3219_v9, %v696_v57  ;;  %v676_v61 = vmul.f32 %v3234_v24, %v668_v56 }
 0x1de   :  { %v769_v27 = vsub.f32 1.0, %v761_v39  ;;  %v614_v33 = vsel %vm606_vm11, 1.0, %v4346_v36  ;;  %v617_v3 = vsel %vm609_vm12, 1.0, %v4346_v36  ;;  %v722_v49 = vmul.f32 %v3212_v53, %v714_v29 }
 0x1df   :  { %v699_v6 = vadd.f32 -0.28449672, %v691_v30  ;;  %v712_v5 = vadd.f32 0.2548296, %v704_v55  ;;  %v684_v59 = vadd.f32 1.4214138, %v676_v61  ;;  %v774_v31 = vmul.f32 %v766_v52, %v614_v33 }
 0x1e0   :  { %v777_v47 = vmul.f32 %v769_v27, %v617_v3  ;;  %v719_v25 = vmul.f32 %v3205_v28, %v711_v62  ;;  %v762_v32 = vmul.f32 %v2391_v7, %v722_v49  ;;  %v2393_v4 = vpop.eup %2392  ;;  %v773_v45 = vmul.f32 %v765_v37, %v613_v21 }
 0x1e1   :  { %v707_v39 = vmul.f32 %v3225_v44, %v699_v6  ;;  %v720_v34 = vmul.f32 %v3219_v9, %v712_v5  ;;  %v692_v23 = vmul.f32 %v3234_v24, %v684_v59  ;;  %v589_v53 = vmul.f32 0.5, %v3143_v35 }
 0x1e2   :  { %v590_v51 = vmul.f32 0.5, %v3148_v10  ;;  %v770_v27 = vsub.f32 1.0, %v762_v32  ;;  %v2395_v56 = vpop.eup %2394  ;;  %v785_v29 = vadd.f32 1.0, %v777_v47  ;;  %v618_v28 = vsel %vm610_vm13, 1.0, %v4346_v36 }
 0x1e3   :  { %v715_v57 = vadd.f32 0.2548296, %v707_v39  ;;  %v760_v52 = vmul.f32 %v2393_v4, %v720_v34  ;;  %v700_v62 = vadd.f32 -0.28449672, %v692_v23  ;;  %v782_v21 = vadd.f32 1.0, %v774_v31 }
 0x1e4   :  { %v2397_v30 = vpop.eup %2396  ;;  %v759_v37 = vmul.f32 %v2395_v56, %v719_v25  ;;  %v778_v9 = vmul.f32 %v770_v27, %v618_v28  ;;  %v781_v61 = vadd.f32 1.0, %v773_v45  ;;  %v593_v35 = vmul.f32 0.5, %v3154_v48 }
 0x1e5   :  { %v723_v55 = vmul.f32 %v3225_v44, %v715_v57  ;;  %v708_v10 = vmul.f32 %v3234_v24, %v700_v62  ;;  %v594_v33 = vmul.f32 0.5, %v3166_v14  ;;  %vm608_vm10 = vcmp.ge.f32.partialorder %v3181_v18, 0.0 }
 0x1e6   :  { %v786_v3 = vadd.f32 1.0, %v778_v9  ;;  %v793_v49 = vmul.f32 %v785_v29, %v593_v35  ;;  %v768_v6 = vsub.f32 1.0, %v760_v52  ;;  %v790_v47 = vmul.f32 %v782_v21, %v590_v51 }
 0x1e7   :  { %v763_v11 = vmul.f32 %v2397_v30, %v723_v55  ;;  %v716_v7 = vadd.f32 0.2548296, %v708_v10  ;;  %v767_v44 = vsub.f32 1.0, %v759_v37  ;;  %v789_v48 = vmul.f32 %v781_v61, %v589_v53 }
 0x1e8   :  { %v794_v5 = vmul.f32 %v786_v3, %v594_v33  ;;  %v619_v31 = vsel %vm611_vm15, 1.0, %v4346_v36  ;;  %v2399_v32 = vpop.eup %2398  ;;  %v615_v14 = vsel %vm607_vm14, 1.0, %v4346_v36  ;;  %v616_v15 = vsel %vm608_vm10, 1.0, %v4346_v36 }
 0x1e9   :  { %v771_v59 = vsub.f32 1.0, %v763_v11  ;;  %v724_v25 = vmul.f32 %v3234_v24, %v716_v7  ;;  %v797_v4 = vpack.c.bf16 %v793_v49, %v789_v48  ;;  %v776_v45 = vmul.f32 %v768_v6, %v616_v15  ;;  %v465_v24 = vld [vmem:[%s4285_s7] sm:$0xf]  ;;  %v2457_v7 = vld [vmem:[%s4369_s25 + $0x10] sm:$0xff]  ;;  %v2458_v48 = vld [vmem:[%s4369_s25 + $0x8] sm:$0xff] }
 0x1ea   :  { %v798_v18 = vpack.c.bf16 %v794_v5, %v790_v47  ;;  %vm612_vm11 = vcmp.ge.f32.partialorder %v3194_v2, 0.0  ;;  %v775_v23 = vmul.f32 %v767_v44, %v615_v14  ;;  %vm806_vm12 = vcmask 130048   ;;  %v897_v15 = vld [vmem:[%s4286_s10] sm:$0xff] }
 0x1eb   :  { %v779_v39 = vmul.f32 %v771_v59, %v619_v31  ;;  %v764_v34 = vmul.f32 %v2399_v32, %v724_v25  ;;  %v620_v51 = vsel %vm612_vm11, 1.0, %v4346_v36  ;;  %v784_v27 = vadd.f32 1.0, %v776_v45  ;;  %v2459_v32 = vld [vmem:[%s4369_s25 + $0x18] sm:$0xff]  ;;  %v1142_v45 = vld [vmem:[%s4291_s12] sm:$0xff]  ;;  %v4414_v36 = vld [vmem:[#allocation8_spill] sm:$0xff] }
 0x1ec   :  { %824 = vmatprep.subr.bf16.mxu0 %v798_v18  ;;  %v783_v56 = vadd.f32 1.0, %v775_v23  ;;  %v595_v29 = vmul.f32 0.5, %v3177_v19  ;;  %v592_v2 = vmul.f32 0.5, %v3175_v22  ;;  %v596_v28 = vmul.f32 0.5, %v3188_v46  ;;  %v804_v22 = vpop.permute.xlu0 %803  ;;  %v1575_v18 = vld [vmem:[%s4288_s16 + $0x8] sm:$0xff]  ;;  %v1574_v23 = vld [vmem:[%s4288_s16] sm:$0xff] }
 0x1ed   :  { %v772_v53 = vsub.f32 1.0, %v764_v34  ;;  %825 = vmatpush1.bf16.msra.mxu0 %v797_v4  ;;  %v787_v54 = vadd.f32 1.0, %v779_v39  ;;  %v591_v62 = vmul.f32 0.5, %v3156_v58  ;;  %v2456_v58 = vld [vmem:[%s4369_s25] sm:$0xff]  ;;  %v1143_v34 = vld [vmem:[%s4291_s12 + $0x8] sm:$0xff] }
 0x1ee   :  { %v792_v21 = vmul.f32 %v784_v27, %v592_v2  ;;  %v1145_v39 = vld [vmem:[%s4287_s14] sm:$0xff] }
 0x1ef   :  { %v780_v57 = vmul.f32 %v772_v53, %v620_v51  ;;  %v795_v30 = vmul.f32 %v787_v54, %v595_v29  ;;  %v791_v9 = vmul.f32 %v783_v56, %v591_v62  ;;  %v1578_v4 = vld [vmem:[%s4289_s18] sm:$0xff]  ;;  %v3401_v51 = vpop.permute.xlu1 %916 }
 0x1f0   :  { %2306 = vmatmul.mubr.msk.bf16.vlgmr.msra.gmra.mxu0 %vm806_vm12, %v465_v24  ;;  %v3394_v53 = vpop.permute.xlu0 %940 }
 0x1f1   :  { %v788_v52 = vadd.f32 1.0, %v780_v57  ;;  %1212 = vmatprep.mubr.bf16.mxu0 %v4407_v50  ;;  %v799_v61 = vpack.c.bf16 %v795_v30, %v791_v9 }
 0x1f3   :  { %v796_v37 = vmul.f32 %v788_v52, %v596_v28  ;;  %v3403_v27 = vpop.permute.xlu1 %1036 }
 0x1f4   :  { %v3399_v54 = vpop.permute.xlu0 %968 }
 0x1f5   :  { %v800_v55 = vpack.c.bf16 %v796_v37, %v792_v21 }
 0x1f7   :  { %865 = vmatprep.subr.bf16.mxu1 %v800_v55  ;;  %v3407_v56 = vpop.permute.xlu1 %1064 }
 0x1f8   :  { %866 = vmatpush1.bf16.msra.mxu1 %v799_v61  ;;  %v3405_v57 = vpop.permute.xlu0 %996 }
 0x1fb   :  { %2307 = vmatmul.mubr.msk.bf16.vlgmr.msra.gmra.mxu1 %vm806_vm12, %v465_v24  ;;  %v1579_v24 = vld [vmem:[%s4289_s18 + $0x8] sm:$0x1] }
 0x1fc   :  { %1255 = vmatprep.mubr.bf16.mxu1 %v4407_v50  ;;  %v1009_v29 = vpop.permute.xlu0 %1008  ;;  %v4416_v50 = vld [vmem:[#allocation12_spill] sm:$0xff] }
 0x200   :  { %v3409_v2 = vpop.permute.xlu0 %1092 }
 0x204   :  { %v3411_v62 = vpop.permute.xlu0 %1120 }
 0x205   :  { %4411 = vst [vmem:[#allocation21_spill] sm:$0xff] %v3411_v62 }
 0x2b0   :  { %v844_v19 = vpop.f32.mrf.mxu0 }
 0x2b1   :  { %v845_v46 = vadd.f32 %v844_v19, %v804_v22 }
 0x2b2   :  { %v846_v35 = vpop.f32.mrf.mxu0 }
 0x2b3   :  { %v3292_v10 = vadd.f32 %v2456_v58, %v845_v46  ;;  %v847_v59 = vadd.f32 %v846_v35, %v804_v22 }
 0x2b4   :  { %v848_v33 = vpop.f32.mrf.mxu0 }
 0x2b5   :  { %4408 = vst [vmem:[#allocation22_spill] sm:$0xff] %v3292_v10  ;;  %898 = vrot.lane.b32.xlu1 %v3292_v10, %s2470_s8  ;;  %v3324_v31 = vadd.f32 %v2458_v48, %v847_v59 }
 0x2b6   :  { %v849_v3 = vpop.f32.mrf.mxu0 }
 0x2b7   :  { %4410 = vst [vmem:[#allocation23_spill] sm:$0xff] %v3324_v31 }
 0x2b9   :  { %951 = vrot.lane.b32.xlu1 %v3292_v10, %s2474_s21 }
 0x2bb   :  { %v885_v11 = vpop.f32.mrf.mxu1 }
 0x2bc   :  { %v886_v49 = vadd.f32 %v885_v11, %v804_v22 }
 0x2bd   :  { %v887_v6 = vpop.f32.mrf.mxu1  ;;  %979 = vrot.lane.b32.xlu1 %v3292_v10, %s2476_s0 }
 0x2be   :  { %v3303_v47 = vadd.f32 %v2457_v7, %v886_v49  ;;  %v888_v25 = vadd.f32 %v887_v6, %v804_v22 }
 0x2bf   :  { %v889_v44 = vpop.f32.mrf.mxu1 }
 0x2c0   :  { %4409 = vst [vmem:[#allocation3_spill] sm:$0xff] %v3303_v47  ;;  %902 = vrot.lane.b32.xlu0 %v3303_v47, %s2470_s8  ;;  %v3333_v14 = vadd.f32 %v2459_v32, %v888_v25  ;;  %v4413_v32 = vld [vmem:[#allocation7_spill] sm:$0xff] }
 0x2c1   :  { %v890_v5 = vpop.f32.mrf.mxu1  ;;  %1019 = vrot.lane.b32.xlu1 %v3292_v10, %s2478_s22 }
 0x2c4   :  { %923 = vrot.lane.b32.xlu0 %v3292_v10, %s2473_s3 }
 0x2c5   :  { %1023 = vrot.lane.b32.xlu1 %v3303_v47, %s2478_s22 }
 0x2c8   :  { %927 = vrot.lane.b32.xlu0 %v3303_v47, %s2473_s3 }
 0x2c9   :  { %1075 = vrot.lane.b32.xlu1 %v3292_v10, %s2482_s24 }
 0x2cc   :  { %955 = vrot.lane.b32.xlu0 %v3303_v47, %s2474_s21 }
 0x2cd   :  { %1103 = vrot.lane.b32.xlu1 %v3292_v10, %s2484_s4 }
 0x2d0   :  { %983 = vrot.lane.b32.xlu0 %v3303_v47, %s2476_s0 }
 0x2d1   :  { %900 = vrot.lane.b32.xlu1 %v3324_v31, %s2470_s8 }
 0x2d4   :  { %1047 = vrot.lane.b32.xlu0 %v3292_v10, %s2480_s23 }
 0x2d5   :  { %904 = vrot.lane.b32.xlu1 %v3333_v14, %s2470_s8 }
 0x2d8   :  { %1051 = vrot.lane.b32.xlu0 %v3303_v47, %s2480_s23 }
 0x2d9   :  { %925 = vrot.lane.b32.xlu1 %v3324_v31, %s2473_s3 }
 0x2dc   :  { %1079 = vrot.lane.b32.xlu0 %v3303_v47, %s2482_s24 }
 0x2dd   :  { %929 = vrot.lane.b32.xlu1 %v3333_v14, %s2473_s3 }
 0x2e0   :  { %1021 = vrot.lane.b32.xlu0 %v3324_v31, %s2478_s22 }
 0x2e1   :  { %953 = vrot.lane.b32.xlu1 %v3324_v31, %s2474_s21 }
 0x2e4   :  { %1025 = vrot.lane.b32.xlu0 %v3333_v14, %s2478_s22 }
 0x2e5   :  { %957 = vrot.lane.b32.xlu1 %v3333_v14, %s2474_s21 }
 0x2e8   :  { %1107 = vrot.lane.b32.xlu0 %v3303_v47, %s2484_s4 }
 0x2e9   :  { %981 = vrot.lane.b32.xlu1 %v3324_v31, %s2476_s0 }
 0x2ec   :  { %1133 = vperm.xlu0 %2360, %v897_v15  }
 0x2ed   :  { %985 = vrot.lane.b32.xlu1 %v3333_v14, %s2476_s0 }
 0x2f0   :  { %1480 = vperm.xlu0 %2360, %v1145_v39  }
 0x2f1   :  { %1049 = vrot.lane.b32.xlu1 %v3324_v31, %s2480_s23 }
 0x2f4   :  { %1591 = vperm.xlu0 %2360, %v1575_v18  }
 0x2f5   :  { %1053 = vrot.lane.b32.xlu1 %v3333_v14, %s2480_s23 }
 0x2f8   :  { %1714 = vperm.xlu0 %2360, %v1578_v4  }
 0x2f9   :  { %1077 = vrot.lane.b32.xlu1 %v3324_v31, %s2482_s24 }
 0x2fd   :  { %1081 = vrot.lane.b32.xlu1 %v3333_v14, %s2482_s24 }
 0x301   :  { %1105 = vrot.lane.b32.xlu1 %v3324_v31, %s2484_s4 }
 0x305   :  { %1109 = vrot.lane.b32.xlu1 %v3333_v14, %s2484_s4 }
 0x309   :  { %1152 = vperm.xlu1 %2361, %v1142_v45   ;;  %v3439_v45 = vmul.f32 %v1009_v29, %v3292_v10 }
 0x30d   :  { %1157 = vperm.xlu1 %2361, %v1143_v34   ;;  %v3442_v34 = vmul.f32 %v1009_v29, %v3324_v31  ;;  %v4415_v31 = vld [vmem:[#allocation9_spill] sm:$0xff] }
 0x311   :  { %1586 = vperm.xlu1 %2361, %v1574_v23  }
 0x315   :  { %1719 = vperm.xlu1 %2361, %v1579_v24   ;;  %v3447_v24 = vmul.f32 %v1009_v29, %v3303_v47 }
 0x327   :  { %v899_v28 = vpop.permute.xlu1 %898 }
 0x32b   :  { %v952_v52 = vpop.permute.xlu1 %951 }
 0x32f   :  { %v980_v30 = vpop.permute.xlu1 %979 }
 0x332   :  { %v903_v21 = vpop.permute.xlu0 %902 }
 0x333   :  { %v3413_v37 = vpop.permute.xlu1 %1019 }
 0x336   :  { %v924_v9 = vpop.permute.xlu0 %923 }
 0x337   :  { %v3415_v55 = vpop.permute.xlu1 %1023 }
 0x33a   :  { %v928_v61 = vpop.permute.xlu0 %927 }
 0x33b   :  { %v3417_v22 = vpop.permute.xlu1 %1075 }
 0x33e   :  { %v956_v46 = vpop.permute.xlu0 %955 }
 0x33f   :  { %v3419_v19 = vpop.permute.xlu1 %1103 }
 0x340   :  { %4412 = vst [vmem:[#allocation32_spill] sm:$0xff] %v3419_v19 }
 0x342   :  { %v984_v58 = vpop.permute.xlu0 %983 }
 0x343   :  { %v901_v35 = vpop.permute.xlu1 %900 }
 0x344   :  { %v908_v5 = vsel %vm91_vm0, %v899_v28, %v901_v35  ;;  %v907_v25 = vsel %vm91_vm0, %v901_v35, %v903_v21 }
 0x345   :  { %v911_v15 = vmul.f32 %v908_v5, %v4413_v32  ;;  %v3455_v5 = vmul.f32 %v1009_v29, %v3333_v14  ;;  %v912_v32 = vmul.f32 %v907_v25, %v4414_v36  ;;  %v4417_v25 = vld [vmem:[#allocation10_spill] sm:$0xff] }
 0x346   :  { %v3421_v11 = vpop.permute.xlu0 %1047 }
 0x347   :  { %v905_v33 = vpop.permute.xlu1 %904  ;;  %v920_v19 = vmul.f32 %v3401_v51, %v911_v15 }
 0x348   :  { %v909_v39 = vsel %vm91_vm0, %v905_v33, %v899_v28  ;;  %v906_v35 = vsel %vm91_vm0, %v903_v21, %v905_v33 }
 0x349   :  { %v910_v10 = vmul.f32 %v909_v39, %v4415_v31  ;;  %v4418_v39 = vld [vmem:[#allocation13_spill] sm:$0xff] }
 0x34a   :  { %v3423_v6 = vpop.permute.xlu0 %1051 }
 0x34b   :  { %v926_v3 = vpop.permute.xlu1 %925 }
 0x34c   :  { %v933_v18 = vsel %vm133_vm1, %v924_v9, %v926_v3  ;;  %v932_v28 = vsel %vm133_vm1, %v926_v3, %v928_v61 }
 0x34d   :  { %v936_v62 = vmul.f32 %v933_v18, %v4416_v50  ;;  %v937_v31 = vmul.f32 %v932_v28, %v4418_v39 }
 0x34e   :  { %v3427_v59 = vpop.permute.xlu0 %1079 }
 0x34f   :  { %v930_v49 = vpop.permute.xlu1 %929 }
 0x350   :  { %v934_v48 = vsel %vm133_vm1, %v930_v49, %v924_v9  ;;  %v931_v33 = vsel %vm133_vm1, %v928_v61, %v930_v49 }
 0x351   :  { %v935_v9 = vmul.f32 %v934_v48, %v2829_v60  ;;  %v913_v60 = vmul.f32 %v906_v35, %v4417_v25  ;;  %v944_v35 = vmul.f32 %v3394_v53, %v936_v62  ;;  %v938_v28 = vmul.f32 %v931_v33, %v2837_v63  ;;  %v4420_v33 = vld [vmem:[#allocation18_spill] sm:$0xff] }
 0x352   :  { %v1022_v21 = vpop.permute.xlu0 %1021  ;;  %v945_v62 = vmul.f32 %v3394_v53, %v937_v31 }
 0x353   :  { %v954_v7 = vpop.permute.xlu1 %953  ;;  %v943_v15 = vmul.f32 %v3394_v53, %v935_v9  ;;  %v921_v9 = vmul.f32 %v3401_v51, %v912_v32  ;;  %v948_v32 = vadd.f32 %v944_v35, %v920_v19 }
 0x354   :  { %v961_v47 = vsel %vm178_vm2, %v952_v52, %v954_v7  ;;  %v960_v3 = vsel %vm178_vm2, %v954_v7, %v956_v46 }
 0x355   :  { %v964_v61 = vmul.f32 %v961_v47, %v2842_v1 }
 0x357   :  { %v958_v44 = vpop.permute.xlu1 %957 }
 0x358   :  { %v962_v23 = vsel %vm178_vm2, %v958_v44, %v952_v52  ;;  %v959_v49 = vsel %vm178_vm2, %v956_v46, %v958_v44 }
 0x359   :  { %v963_v29 = vmul.f32 %v962_v23, %v2853_v8  ;;  %v919_v23 = vmul.f32 %v3401_v51, %v910_v10  ;;  %v4419_v8 = vld [vmem:[#allocation16_spill] sm:$0xff]  ;;  %v922_v10 = vmul.f32 %v3401_v51, %v913_v60  ;;  %v946_v60 = vmul.f32 %v3394_v53, %v938_v28 }
 0x35a   :  { %v965_v39 = vmul.f32 %v960_v3, %v4419_v8  ;;  %v1028_v3 = vsel %vm280_vm4, %v1022_v21, %v3415_v55 }
 0x35b   :  { %v982_v4 = vpop.permute.xlu1 %981  ;;  %v971_v50 = vmul.f32 %v3399_v54, %v963_v29  ;;  %v1026_v29 = vpop.permute.xlu0 %1025  ;;  %v1032_v19 = vmul.f32 %v1028_v3, %v2903_v26  ;;  %v950_v35 = vadd.f32 %v946_v60, %v922_v10 }
 0x35c   :  { %v989_v18 = vsel %vm223_vm3, %v980_v30, %v982_v4  ;;  %v1030_v53 = vsel %vm280_vm4, %v1026_v29, %v3413_v37 }
 0x35d   :  { %v992_v47 = vmul.f32 %v989_v18, %v2869_v12  ;;  %v972_v18 = vmul.f32 %v3399_v54, %v964_v61  ;;  %v949_v61 = vadd.f32 %v945_v62, %v921_v9 }
 0x35f   :  { %v986_v48 = vpop.permute.xlu1 %985 }
 0x360   :  { %v990_v52 = vsel %vm223_vm3, %v986_v48, %v980_v30  ;;  %v988_v30 = vsel %vm223_vm3, %v982_v4, %v984_v58  ;;  %v987_v46 = vsel %vm223_vm3, %v984_v58, %v986_v48  ;;  %v947_v4 = vadd.f32 %v943_v15, %v919_v23 }
 0x361   :  { %v991_v7 = vmul.f32 %v990_v52, %v2883_v16  ;;  %v966_v52 = vmul.f32 %v959_v49, %v4420_v33  ;;  %v1029_v58 = vsel %vm280_vm4, %v3413_v37, %v1022_v21  ;;  %v993_v31 = vmul.f32 %v988_v30, %v2873_v13 }
 0x362   :  { %v994_v51 = vmul.f32 %v987_v46, %v2887_v17  ;;  %v973_v48 = vmul.f32 %v3399_v54, %v965_v39  ;;  %v975_v49 = vadd.f32 %v971_v50, %v947_v4  ;;  %v1000_v15 = vmul.f32 %v3405_v57, %v992_v47 }
 0x363   :  { %v1050_v44 = vpop.permute.xlu1 %1049  ;;  %v999_v16 = vmul.f32 %v3405_v57, %v991_v7  ;;  %v1027_v7 = vsel %vm280_vm4, %v3415_v55, %v1026_v29  ;;  %v974_v21 = vmul.f32 %v3399_v54, %v966_v52  ;;  %v1031_v28 = vmul.f32 %v1029_v58, %v2895_v0 }
 0x364   :  { %v976_v39 = vadd.f32 %v972_v18, %v948_v32  ;;  %v1001_v30 = vmul.f32 %v3405_v57, %v993_v31  ;;  %v1002_v47 = vmul.f32 %v3405_v57, %v994_v51  ;;  %v1056_v55 = vsel %vm325_vm5, %v1050_v44, %v3423_v6 }
 0x365   :  { %v1003_v50 = vadd.f32 %v999_v16, %v975_v49  ;;  %v1033_v46 = vmul.f32 %v1027_v7, %v4404_v20  ;;  %v1034_v37 = vmul.f32 %v1030_v53, %v4402_v40  ;;  %v977_v54 = vadd.f32 %v973_v48, %v949_v61  ;;  %v4421_v48 = vld [vmem:[#allocation29_spill] sm:$0xff]  ;;  %v4423_v7 = vld [vmem:[#allocation26_spill] sm:$0xff] }
 0x366   :  { %v1004_v9 = vadd.f32 %v1000_v15, %v976_v39  ;;  %v978_v52 = vadd.f32 %v974_v21, %v950_v35  ;;  %v1057_v16 = vsel %vm325_vm5, %v3421_v11, %v1050_v44  ;;  %v1060_v29 = vmul.f32 %v1056_v55, %v2920_v42  ;;  %v4424_v35 = vld [vmem:[#allocation30_spill] sm:$0xff] }
 0x367   :  { %v1054_v23 = vpop.permute.xlu1 %1053  ;;  %v1015_v3 = vadd.f32 %v3439_v45, %v1003_v50  ;;  %v1039_v18 = vmul.f32 %v3403_v27, %v1031_v28  ;;  %v1040_v58 = vmul.f32 %v3403_v27, %v1032_v19  ;;  %v1005_v60 = vadd.f32 %v1001_v30, %v977_v54 }
 0x368   :  { %v1055_v4 = vsel %vm325_vm5, %v3423_v6, %v1054_v23  ;;  %v1058_v44 = vsel %vm325_vm5, %v1054_v23, %v3421_v11  ;;  %v1006_v31 = vadd.f32 %v1002_v47, %v978_v52  ;;  %v1016_v51 = vadd.f32 %v3442_v34, %v1004_v9  ;;  %v4422_v6 = vld [vmem:[#allocation25_spill] sm:$0xff]  ;;  %v4425_v47 = vld [vmem:[#allocation31_spill] sm:$0xff] }
 0x369   :  { %v1059_v45 = vmul.f32 %v1057_v16, %v2916_v38  ;;  %v1061_v61 = vmul.f32 %v1055_v4, %v4422_v6  ;;  %v1062_v53 = vmul.f32 %v1058_v44, %v4423_v7  ;;  %v1041_v34 = vmul.f32 %v3403_v27, %v1033_v46 }
 0x36a   :  { %v1042_v21 = vmul.f32 %v3403_v27, %v1034_v37  ;;  %v1043_v28 = vadd.f32 %v1039_v18, %v1015_v3  ;;  %v1068_v19 = vmul.f32 %v3407_v56, %v1060_v29  ;;  %v1017_v39 = vadd.f32 %v3447_v24, %v1005_v60  ;;  %v2461_v29 = vld [vmem:[%s4284_s2 + $0x28] ss:$0 sm:$0xff] }
 0x36b   :  { %v1078_v62 = vpop.permute.xlu1 %1077  ;;  %v1018_v50 = vadd.f32 %v3455_v5, %v1006_v31  ;;  %v1044_v54 = vadd.f32 %v1040_v58, %v1016_v51  ;;  %v1067_v9 = vmul.f32 %v3407_v56, %v1059_v45  ;;  %v1069_v37 = vmul.f32 %v3407_v56, %v1061_v61  ;;  %v4426_v5 = vld [vmem:[#allocation32_spill] sm:$0xff]  ;;  %v4427_v51 = vld [vmem:[#allocation21_spill] sm:$0xff] }
 0x36c   :  { %v1084_v57 = vsel %vm370_vm6, %v1078_v62, %v3427_v59  ;;  %v1085_v10 = vsel %vm370_vm6, %v3417_v22, %v1078_v62  ;;  %v1070_v62 = vmul.f32 %v3407_v56, %v1062_v53  ;;  %v1045_v56 = vadd.f32 %v1041_v34, %v1017_v39 }
 0x36d   :  { %v1087_v32 = vmul.f32 %v1085_v10, %v3021_v41  ;;  %v1088_v49 = vmul.f32 %v1084_v57, %v4421_v48  ;;  %v1071_v16 = vadd.f32 %v1067_v9, %v1043_v28  ;;  %v1072_v57 = vadd.f32 %v1068_v19, %v1044_v54  ;;  %v2460_v10 = vld [vmem:[%s4284_s2 + $0x20] ss:$0 sm:$0xff]  ;;  %v2463_v28 = vld [vmem:[%s4284_s2 + $0x38] ss:$0 sm:$0xff] }
 0x36e   :  { %v1046_v44 = vadd.f32 %v1042_v21, %v1018_v50 }
 0x36f   :  { %v1082_v15 = vpop.permute.xlu1 %1081  ;;  %v1096_v46 = vmul.f32 %v3409_v2, %v1088_v49 }
 0x370   :  { %v1083_v11 = vsel %vm370_vm6, %v3427_v59, %v1082_v15  ;;  %v1086_v23 = vsel %vm370_vm6, %v1082_v15, %v3417_v22  ;;  %v1108_v59 = vpop.permute.xlu0 %1107  ;;  %v1095_v22 = vmul.f32 %v3409_v2, %v1087_v32  ;;  %v1073_v15 = vadd.f32 %v1069_v37, %v1045_v56 }
 0x371   :  { %v1089_v30 = vmul.f32 %v1083_v11, %v4424_v35  ;;  %v1090_v55 = vmul.f32 %v1086_v23, %v4425_v47  ;;  %v1100_v31 = vadd.f32 %v1096_v46, %v1072_v57  ;;  %v1074_v61 = vadd.f32 %v1070_v62, %v1046_v44 }
 0x372   :  { %v1099_v60 = vadd.f32 %v1095_v22, %v1071_v16 }
 0x373   :  { %v1106_v27 = vpop.permute.xlu1 %1105  ;;  %v1097_v18 = vmul.f32 %v3409_v2, %v1089_v30  ;;  %v1098_v58 = vmul.f32 %v3409_v2, %v1090_v55  ;;  %v2462_v2 = vld [vmem:[%s4284_s2 + $0x30] ss:$0 sm:$0xff] }
 0x374   :  { %v1112_v24 = vsel %vm415_vm7, %v1106_v27, %v1108_v59  ;;  %v1113_v52 = vsel %vm415_vm7, %v4426_v5, %v1106_v27  ;;  %v1134_v30 = vpop.permute.xlu0 %1133 }
 0x375   :  { %v1115_v3 = vmul.f32 %v2460_v10, %v1113_v52  ;;  %v1116_v4 = vmul.f32 %v2461_v29, %v1112_v24  ;;  %v1101_v39 = vadd.f32 %v1097_v18, %v1073_v15  ;;  %v1102_v50 = vadd.f32 %v1098_v58, %v1074_v61  ;;  %v2363_v24 = vld [vmem:[%s4290_s11] sm:$0xff]  }
 0x377   :  { %v1123_v45 = vmul.f32 %v4427_v51, %v1115_v3  ;;  %v1124_v32 = vmul.f32 %v4427_v51, %v1116_v4  ;;  %v1110_v49 = vpop.permute.xlu1 %1109  ;;  %v4428_v3 = vmov 0  }
 0x378   :  { %v1111_v53 = vsel %vm415_vm7, %v1108_v59, %v1110_v49  ;;  %v1114_v11 = vsel %vm415_vm7, %v1110_v49, %v4426_v5 }
 0x379   :  { %v1127_v23 = vadd.f32 %v1123_v45, %v1099_v60  ;;  %v1128_v34 = vadd.f32 %v1124_v32, %v1100_v31  ;;  %v1117_v21 = vmul.f32 %v2462_v2, %v1111_v53  ;;  %v1118_v19 = vmul.f32 %v2463_v28, %v1114_v11 }
 0x37b   :  { %v1125_v55 = vmul.f32 %v4427_v51, %v1117_v21  ;;  %v1126_v59 = vmul.f32 %v4427_v51, %v1118_v19  ;;  %v1137_v54 = vadd.f32 %v1134_v30, %v1128_v34  ;;  %v1136_v9 = vadd.f32 %v1134_v30, %v1127_v23 }
 0x37d   :  { %v1129_v22 = vadd.f32 %v1125_v55, %v1101_v39  ;;  %v1130_v46 = vadd.f32 %v1126_v59, %v1102_v50  ;;  %v1147_v27 = vpack.c.bf16 %v1137_v54, %v1137_v54  ;;  %v1146_v37 = vpack.c.bf16 %v1136_v9, %v1136_v9 }
 0x37f   :  { %2309 = vmatprep.subr.msk.bf16.mxu0 %vm490_vm8, %v1147_v27  ;;  %v1169_v62 = vsel %vm490_vm8, %v1146_v37, 0  ;;  %v1139_v5 = vadd.f32 %v1134_v30, %v1130_v46  ;;  %v1138_v52 = vadd.f32 %v1134_v30, %v1129_v22 }
 0x380   :  { %1195 = vmatpush1.bf16.msra.mxu0 %v1169_v62 }
 0x381   :  { %v1149_v16 = vpack.c.bf16 %v1139_v5, %v1139_v5  ;;  %v1148_v57 = vpack.c.bf16 %v1138_v52, %v1138_v52 }
 0x383   :  { %2310 = vmatmul.mubr.msk.bf16.vlgmr.msra.gmra.mxu0 %vm486_vm9, %v2363_v24  ;;  %2311 = vmatprep.subr.msk.bf16.mxu1 %vm490_vm8, %v1149_v16  ;;  %v1175_v10 = vsel %vm490_vm8, %v1148_v57, 0 }
 0x384   :  { %1238 = vmatpush1.bf16.msra.mxu1 %v1175_v10  ;;  %1518 = vmatprep.mubr.bf16.mxu0 %v4428_v3  ;;  %v1153_v29 = vpop.permute.xlu1 %1152 }
 0x387   :  { %2312 = vmatmul.mubr.msk.bf16.vlgmr.msra.gmra.mxu1 %vm486_vm9, %v2363_v24 }
 0x388   :  { %1559 = vmatprep.mubr.bf16.mxu1 %v4428_v3  ;;  %v1158_v51 = vpop.permute.xlu1 %1157 }
 0x443   :  { %v1214_v4 = vpop.f32.mrf.mxu0 }
 0x444   :  { %v3604_v56 = vadd.f32 %v1214_v4, %v1153_v29 }
 0x445   :  { %v1216_v44 = vpop.f32.mrf.mxu0 }
 0x446   :  { %v3607_v18 = vmul.f32 0.70710677, %v3604_v56  ;;  %v3609_v58 = vadd.f32 %v1216_v44, %v1153_v29 }
 0x447   :  { %v1218_v60 = vpop.f32.mrf.mxu0  ;;  %v1257_v31 = vpop.f32.mrf.mxu1 }
 0x448   :  { %v1298_v45 = vand.u32 2147483647, %v3607_v18  ;;  %v3613_v32 = vmul.f32 0.70710677, %v3609_v58  ;;  %v3615_v49 = vadd.f32 %v1218_v60, %v1158_v51  ;;  %v3617_v15 = vadd.f32 %v1257_v31, %v1153_v29 }
 0x449   :  { %v1220_v23 = vpop.f32.mrf.mxu0  ;;  %v1259_v21 = vpop.f32.mrf.mxu1  ;;  %vm1282_vm13 = vcmp.ge.f32.partialorder %v3607_v18, 0.0 }
 0x44a   :  { %v1306_v61 = vmul.f32 0.3275911, %v1298_v45  ;;  %v1299_v53 = vand.u32 2147483647, %v3613_v32  ;;  %v3621_v11 = vmul.f32 0.70710677, %v3615_v49  ;;  %v3627_v50 = vadd.f32 %v1220_v23, %v1158_v51 }
 0x44b   :  { %v3625_v19 = vmul.f32 0.70710677, %v3617_v15  ;;  %v1261_v59 = vpop.f32.mrf.mxu1  ;;  %v3636_v46 = vadd.f32 %v1259_v21, %v1153_v29  ;;  %v1402_v5 = vsub.f32 0.0, %v1298_v45  ;;  %vm1283_vm14 = vcmp.ge.f32.partialorder %v3613_v32, 0.0 }
 0x44c   :  { %v1314_v34 = vadd.f32 1.0, %v1306_v61  ;;  %v1307_v2 = vmul.f32 0.3275911, %v1299_v53  ;;  %v1302_v28 = vand.u32 2147483647, %v3621_v11  ;;  %v3638_v27 = vadd.f32 %v1261_v59, %v1158_v51 }
 0x44d   :  { %v3630_v55 = vand.u32 2147483647, %v3625_v19  ;;  %v3634_v22 = vmul.f32 0.70710677, %v3627_v50  ;;  %v3642_v24 = vmul.f32 0.70710677, %v3636_v46  ;;  %v1263_v4 = vpop.f32.mrf.mxu1  ;;  %v1410_v61 = vmul.f32 %v1402_v5, %v1298_v45 }
 0x44e   :  { %2400 = vrcp.f32 %v1314_v34  ;;  %v1315_v39 = vadd.f32 1.0, %v1307_v2  ;;  %v1310_v30 = vmul.f32 0.3275911, %v1302_v28  ;;  %v1403_v16 = vsub.f32 0.0, %v1299_v53 }
 0x44f   :  { %v1308_v9 = vmul.f32 0.3275911, %v3630_v55  ;;  %v1303_v62 = vand.u32 2147483647, %v3634_v22  ;;  %v1301_v57 = vand.u32 2147483647, %v3642_v24  ;;  %v3649_v23 = vadd.f32 %v1263_v4, %v1158_v51 }
 0x450   :  { %2402 = vrcp.f32 %v1315_v39  ;;  %v1318_v54 = vadd.f32 1.0, %v1310_v30  ;;  %v3646_v10 = vmul.f32 0.70710677, %v3638_v27  ;;  %v1406_v44 = vsub.f32 0.0, %v1302_v28 }
 0x451   :  { %v1316_v37 = vadd.f32 1.0, %v1308_v9  ;;  %v1311_v52 = vmul.f32 0.3275911, %v1303_v62  ;;  %v1309_v60 = vmul.f32 0.3275911, %v1301_v57  ;;  %v1411_v2 = vmul.f32 %v1403_v16, %v1299_v53 }
 0x452   :  { %2404 = vrcp.f32 %v1318_v54  ;;  %v1304_v31 = vand.u32 2147483647, %v3646_v10  ;;  %v3655_v59 = vmul.f32 0.70710677, %v3649_v23  ;;  %v1414_v54 = vmul.f32 %v1406_v44, %v1302_v28 }
 0x453   :  { %2406 = vrcp.f32 %v1316_v37  ;;  %v1319_v29 = vadd.f32 1.0, %v1311_v52  ;;  %v1317_v21 = vadd.f32 1.0, %v1309_v60  ;;  %v1418_v45 = vmul.f32 1.442695, %v1410_v61 }
 0x454   :  { %v1312_v39 = vmul.f32 0.3275911, %v1304_v31  ;;  %v1305_v51 = vand.u32 2147483647, %v3655_v59  ;;  %v1420_v4 = vmul.f32 1.442695, %v1411_v2 }
 0x455   :  { %2408 = vrcp.f32 %v1319_v29  ;;  %v1407_v53 = vsub.f32 0.0, %v1303_v62  ;;  %v1404_v60 = vsub.f32 0.0, %v3630_v55  ;;  %v1405_v61 = vsub.f32 0.0, %v1301_v57 }
 0x456   :  { %2410 = vrcp.f32 %v1317_v21  ;;  %v1320_v9 = vadd.f32 1.0, %v1312_v39  ;;  %v1313_v28 = vmul.f32 0.3275911, %v1305_v51  ;;  %v1426_v39 = vmul.f32 1.442695, %v1414_v54 }
 0x457   :  { %v1415_v41 = vmul.f32 %v1407_v53, %v1303_v62  ;;  %v1408_v6 = vsub.f32 0.0, %v1304_v31  ;;  %v1413_v7 = vmul.f32 %v1405_v61, %v1301_v57  ;;  %vm1286_vm15 = vcmp.ge.f32.partialorder %v3621_v11, 0.0 }
 0x458   :  { %2412 = vrcp.f32 %v1320_v9  ;;  %v1321_v47 = vadd.f32 1.0, %v1313_v28  ;;  %vm1287_vm10 = vcmp.ge.f32.partialorder %v3634_v22, 0.0  ;;  %vm1284_vm11 = vcmp.ge.f32.partialorder %v3625_v19, 0.0 }
 0x459   :  { %2414 = vpow2.f32 %v1418_v45  ;;  %v1412_v45 = vmul.f32 %v1404_v60, %v3630_v55  ;;  %v1428_v53 = vmul.f32 1.442695, %v1415_v41  ;;  %v1409_v60 = vsub.f32 0.0, %v1305_v51 }
 0x45a   :  { %2416 = vpow2.f32 %v1420_v4 }
 0x45b   :  { %v3651_v34 = vpop.eup %2400  ;;  %2418 = vrcp.f32 %v1321_v47  ;;  %v1422_v55 = vmul.f32 1.442695, %v1412_v45 }
 0x45c   :  { %v1330_v30 = vmul.f32 1.0614054, %v3651_v34  ;;  %2420 = vpow2.f32 %v1426_v39 }
 0x45d   :  { %v3657_v37 = vpop.eup %2402  ;;  %2422 = vpow2.f32 %v1428_v53 }
 0x45e   :  { %v1338_v52 = vadd.f32 -1.4531521, %v1330_v30  ;;  %v1331_v5 = vmul.f32 1.0614054, %v3657_v37 }
 0x45f   :  { %v3661_v16 = vpop.eup %2404 }
 0x460   :  { %v1346_v29 = vmul.f32 %v3651_v34, %v1338_v52  ;;  %v1339_v44 = vadd.f32 -1.4531521, %v1331_v5  ;;  %v1334_v21 = vmul.f32 1.0614054, %v3661_v16  ;;  %v3666_v35 = vpop.eup %2406 }
 0x461   :  { %v1332_v9 = vmul.f32 1.0614054, %v3666_v35 }
 0x462   :  { %v1354_v30 = vadd.f32 1.4214138, %v1346_v29  ;;  %v1347_v2 = vmul.f32 %v3657_v37, %v1339_v44  ;;  %v1342_v48 = vadd.f32 -1.4531521, %v1334_v21  ;;  %v3673_v42 = vpop.eup %2408 }
 0x463   :  { %v1340_v28 = vadd.f32 -1.4531521, %v1332_v9  ;;  %v1335_v47 = vmul.f32 1.0614054, %v3673_v42 }
 0x464   :  { %v1362_v52 = vmul.f32 %v3651_v34, %v1354_v30  ;;  %v1355_v5 = vadd.f32 1.4214138, %v1347_v2  ;;  %v1350_v54 = vmul.f32 %v3661_v16, %v1342_v48  ;;  %v1416_v30 = vmul.f32 %v1408_v6, %v1304_v31  ;;  %v3680_v2 = vpop.eup %2410 }
 0x465   :  { %v1348_v21 = vmul.f32 %v3666_v35, %v1340_v28  ;;  %v1343_v61 = vadd.f32 -1.4531521, %v1335_v47  ;;  %v3686_v28 = vpop.eup %2412 }
 0x466   :  { %v1370_v29 = vadd.f32 -0.28449672, %v1362_v52  ;;  %v1363_v4 = vmul.f32 %v3657_v37, %v1355_v5  ;;  %v1358_v62 = vadd.f32 1.4214138, %v1350_v54  ;;  %v1424_v52 = vmul.f32 1.442695, %v1413_v7 }
 0x467   :  { %v1356_v57 = vadd.f32 1.4214138, %v1348_v21  ;;  %v1333_v54 = vmul.f32 1.0614054, %v3680_v2  ;;  %v1351_v6 = vmul.f32 %v3673_v42, %v1343_v61  ;;  %v1430_v31 = vmul.f32 1.442695, %v1416_v30 }
 0x468   :  { %v1378_v44 = vmul.f32 %v3651_v34, %v1370_v29  ;;  %v1371_v48 = vadd.f32 -0.28449672, %v1363_v4  ;;  %v1366_v39 = vmul.f32 %v3661_v16, %v1358_v62  ;;  %v1417_v21 = vmul.f32 %v1409_v60, %v1305_v51 }
 0x469   :  { %v1364_v29 = vmul.f32 %v3666_v35, %v1356_v57  ;;  %v1341_v62 = vadd.f32 -1.4531521, %v1333_v54  ;;  %2424 = vpow2.f32 %v1424_v52  ;;  %v1336_v47 = vmul.f32 1.0614054, %v3686_v28 }
 0x46a   :  { %v1386_v9 = vadd.f32 0.2548296, %v1378_v44  ;;  %v1379_v41 = vmul.f32 %v3657_v37, %v1371_v48  ;;  %v1374_v5 = vadd.f32 -0.28449672, %v1366_v39  ;;  %v1359_v44 = vadd.f32 1.4214138, %v1351_v6  ;;  %v2415_v48 = vpop.eup %2414 }
 0x46b   :  { %v1372_v7 = vadd.f32 -0.28449672, %v1364_v29  ;;  %v1349_v53 = vmul.f32 %v3680_v2, %v1341_v62  ;;  %v2417_v30 = vpop.eup %2416  ;;  %2426 = vpow2.f32 %v1422_v55  ;;  %v1344_v51 = vadd.f32 -1.4531521, %v1336_v47 }
 0x46c   :  { %v1387_v45 = vadd.f32 0.2548296, %v1379_v41  ;;  %v1382_v4 = vmul.f32 %v3661_v16, %v1374_v5  ;;  %v1394_v39 = vmul.f32 %v3651_v34, %v1386_v9  ;;  %v1367_v41 = vmul.f32 %v3673_v42, %v1359_v44  ;;  %v3695_v60 = vpop.eup %2418 }
 0x46d   :  { %v1357_v5 = vadd.f32 1.4214138, %v1349_v53  ;;  %2428 = vpow2.f32 %v1430_v31  ;;  %v1432_v54 = vmul.f32 1.442695, %v1417_v21  ;;  %v2421_v34 = vpop.eup %2420  ;;  %v1352_v6 = vmul.f32 %v3686_v28, %v1344_v51 }
 0x46e   :  { %v1395_v57 = vmul.f32 %v3657_v37, %v1387_v45  ;;  %v1390_v61 = vadd.f32 0.2548296, %v1382_v4  ;;  %v1380_v37 = vmul.f32 %v3666_v35, %v1372_v7  ;;  %v1375_v29 = vadd.f32 -0.28449672, %v1367_v41 }
 0x46f   :  { %v1434_v45 = vmul.f32 %v2415_v48, %v1394_v39  ;;  %v1365_v55 = vmul.f32 %v3680_v2, %v1357_v5  ;;  %v1337_v62 = vmul.f32 1.0614054, %v3695_v60  ;;  %v4429_v44 = vmov -1.0   ;;  %v2423_v5 = vpop.eup %2422 }
 0x470   :  { %v1398_v52 = vmul.f32 %v3661_v16, %v1390_v61  ;;  %v1435_v9 = vmul.f32 %v2417_v30, %v1395_v57  ;;  %v1290_v16 = vsel %vm1282_vm13, 1.0, %v4429_v44  ;;  %v1383_v31 = vmul.f32 %v3673_v42, %v1375_v29 }
 0x471   :  { %v1360_v21 = vadd.f32 1.4214138, %v1352_v6  ;;  %v1373_v47 = vadd.f32 -0.28449672, %v1365_v55  ;;  %v1345_v57 = vadd.f32 -1.4531521, %v1337_v62  ;;  %2430 = vpow2.f32 %v1432_v54 }
 0x472   :  { %v1438_v4 = vmul.f32 %v2421_v34, %v1398_v52  ;;  %v1443_v48 = vsub.f32 1.0, %v1435_v9  ;;  %v1388_v39 = vadd.f32 0.2548296, %v1380_v37  ;;  %v1391_v61 = vadd.f32 0.2548296, %v1383_v31 }
 0x473   :  { %v1368_v53 = vmul.f32 %v3686_v28, %v1360_v21  ;;  %v1442_v30 = vsub.f32 1.0, %v1434_v45  ;;  %v1381_v41 = vmul.f32 %v3680_v2, %v1373_v47  ;;  %v1353_v18 = vmul.f32 %v3695_v60, %v1345_v57 }
 0x474   :  { %v1446_v7 = vsub.f32 1.0, %v1438_v4  ;;  %v1291_v32 = vsel %vm1283_vm14, 1.0, %v4429_v44  ;;  %v1294_v51 = vsel %vm1286_vm15, 1.0, %v4429_v44  ;;  %v1399_v11 = vmul.f32 %v3673_v42, %v1391_v61 }
 0x475   :  { %v1376_v52 = vadd.f32 -0.28449672, %v1368_v53  ;;  %v1389_v9 = vadd.f32 0.2548296, %v1381_v41  ;;  %v1361_v37 = vadd.f32 1.4214138, %v1353_v18  ;;  %v1451_v29 = vmul.f32 %v1443_v48, %v1291_v32 }
 0x476   :  { %v1454_v34 = vmul.f32 %v1446_v7, %v1294_v51  ;;  %v1396_v6 = vmul.f32 %v3666_v35, %v1388_v39  ;;  %v1439_v45 = vmul.f32 %v2423_v5, %v1399_v11  ;;  %v2425_v54 = vpop.eup %2424  ;;  %v1450_v55 = vmul.f32 %v1442_v30, %v1290_v16 }
 0x477   :  { %v1384_v4 = vmul.f32 %v3686_v28, %v1376_v52  ;;  %v1397_v62 = vmul.f32 %v3680_v2, %v1389_v9  ;;  %v1369_v31 = vmul.f32 %v3695_v60, %v1361_v37  ;;  %v1266_v42 = vmul.f32 0.5, %v3604_v56 }
 0x478   :  { %v1267_v21 = vmul.f32 0.5, %v3609_v58  ;;  %v1447_v7 = vsub.f32 1.0, %v1439_v45  ;;  %v2427_v57 = vpop.eup %2426  ;;  %v1462_v61 = vadd.f32 1.0, %v1454_v34  ;;  %v1295_v35 = vsel %vm1287_vm10, 1.0, %v4429_v44 }
 0x479   :  { %v1392_v47 = vadd.f32 0.2548296, %v1384_v4  ;;  %v1437_v48 = vmul.f32 %v2425_v54, %v1397_v62  ;;  %v1377_v39 = vadd.f32 -0.28449672, %v1369_v31  ;;  %v1459_v16 = vadd.f32 1.0, %v1451_v29 }
 0x47a   :  { %v2429_v53 = vpop.eup %2428  ;;  %v1436_v30 = vmul.f32 %v2427_v57, %v1396_v6  ;;  %v1455_v2 = vmul.f32 %v1447_v7, %v1295_v35  ;;  %v1458_v18 = vadd.f32 1.0, %v1450_v55  ;;  %v1270_v56 = vmul.f32 0.5, %v3615_v49 }
 0x47b   :  { %v1400_v41 = vmul.f32 %v3686_v28, %v1392_v47  ;;  %v1385_v58 = vmul.f32 %v3695_v60, %v1377_v39  ;;  %v1271_v32 = vmul.f32 0.5, %v3627_v50  ;;  %vm1288_vm13 = vcmp.ge.f32.partialorder %v3646_v10, 0.0 }
 0x47c   :  { %v1463_v51 = vadd.f32 1.0, %v1455_v2  ;;  %v1470_v11 = vmul.f32 %v1462_v61, %v1270_v56  ;;  %vm1285_vm14 = vcmp.ge.f32.partialorder %v3642_v24, 0.0  ;;  %v1445_v52 = vsub.f32 1.0, %v1437_v48  ;;  %v4430_v56 = vld [vmem:[#allocation22_spill] sm:$0xff] }
 0x47d   :  { %v1440_v22 = vmul.f32 %v2429_v53, %v1400_v41  ;;  %v1393_v5 = vadd.f32 0.2548296, %v1385_v58  ;;  %v1467_v34 = vmul.f32 %v1459_v16, %v1267_v21  ;;  %v1444_v28 = vsub.f32 1.0, %v1436_v30 }
 0x47e   :  { %v1471_v9 = vmul.f32 %v1463_v51, %v1271_v32  ;;  %v1466_v49 = vmul.f32 %v1458_v18, %v1266_v42  ;;  %v1296_v29 = vsel %vm1288_vm13, 1.0, %v4429_v44  ;;  %v2431_v45 = vpop.eup %2430  ;;  %v1292_v50 = vsel %vm1284_vm11, 1.0, %v4429_v44 }
 0x47f   :  { %v1448_v37 = vsub.f32 1.0, %v1440_v22  ;;  %v1401_v6 = vmul.f32 %v3695_v60, %v1393_v5  ;;  %v1293_v10 = vsel %vm1285_vm14, 1.0, %v4429_v44  ;;  %vm1289_vm15 = vcmp.ge.f32.partialorder %v3655_v59, 0.0  ;;  %v1144_v60 = vld [vmem:[%s4292_s13] sm:$0xf]  ;;  %v4431_v22 = vld [vmem:[#allocation23_spill] sm:$0xff] }
 0x480   :  { %v1475_v24 = vpack.c.bf16 %v1471_v9, %v1467_v34  ;;  %v1474_v54 = vpack.c.bf16 %v1470_v11, %v1466_v49  ;;  %v1453_v55 = vmul.f32 %v1445_v52, %v1293_v10  ;;  %v1452_v31 = vmul.f32 %v1444_v28, %v1292_v50  ;;  %v2364_v28 = vld [vmem:[%s4293_s15] sm:$0xff]  }
 0x481   :  { %v1456_v4 = vmul.f32 %v1448_v37, %v1296_v29  ;;  %v1441_v62 = vmul.f32 %v2431_v45, %v1401_v6  ;;  %v1297_v19 = vsel %vm1289_vm15, 1.0, %v4429_v44  ;;  %v1272_v61 = vmul.f32 0.5, %v3638_v27  ;;  %v4432_v29 = vld [vmem:[#allocation3_spill] sm:$0xff] }
 0x482   :  { %1500 = vmatprep.subr.bf16.mxu0 %v1475_v24  ;;  %v1461_v7 = vadd.f32 1.0, %v1453_v55  ;;  %v1460_v57 = vadd.f32 1.0, %v1452_v31  ;;  %v1269_v59 = vmul.f32 0.5, %v3636_v46  ;;  %v1273_v35 = vmul.f32 0.5, %v3649_v23  ;;  %v1481_v46 = vpop.permute.xlu0 %1480 }
 0x483   :  { %v1449_v42 = vsub.f32 1.0, %v1441_v62  ;;  %1501 = vmatpush1.bf16.msra.mxu0 %v1474_v54  ;;  %v1464_v21 = vadd.f32 1.0, %v1456_v4  ;;  %v1268_v39 = vmul.f32 0.5, %v3617_v15  ;;  %v3780_v62 = vld [vmem:[%s4296_s1] sm:$0x77] }
 0x484   :  { %v1469_v16 = vmul.f32 %v1461_v7, %v1269_v59  ;;  %1923 = vrot.lane.b32.xlu1 %v3780_v62, %s2470_s8  ;;  %v1919_v31 = vcombine.high %v3780_v62, %v3780_v62 }
 0x485   :  { %v1457_v47 = vmul.f32 %v1449_v42, %v1297_v19  ;;  %v1472_v53 = vmul.f32 %v1464_v21, %v1272_v61  ;;  %v1468_v44 = vmul.f32 %v1460_v57, %v1268_v39  ;;  %v1587_v19 = vpop.permute.xlu1 %1586 }
 0x486   :  { %2313 = vmatmul.mubr.msk.bf16.vlgmr.msra.gmra.mxu0 %vm806_vm12, %v1144_v60  ;;  %1925 = vrot.lane.b32.xlu0 %v1919_v31, %s2470_s8  ;;  %v1592_v21 = vpop.permute.xlu0 %1591 }
 0x487   :  { %v1465_v48 = vadd.f32 1.0, %v1457_v47  ;;  %1646 = vmatprep.mubr.bf16.mxu0 %v4428_v3  ;;  %v1476_v41 = vpack.c.bf16 %v1472_v53, %v1468_v44 }
 0x489   :  { %v1473_v30 = vmul.f32 %v1465_v48, %v1273_v35 }
 0x48b   :  { %v1477_v2 = vpack.c.bf16 %v1473_v30, %v1469_v16 }
 0x48d   :  { %1541 = vmatprep.subr.bf16.mxu1 %v1477_v2 }
 0x48e   :  { %1542 = vmatpush1.bf16.msra.mxu1 %v1476_v41 }
 0x491   :  { %2314 = vmatmul.mubr.msk.bf16.vlgmr.msra.gmra.mxu1 %vm806_vm12, %v1144_v60 }
 0x492   :  { %1689 = vmatprep.mubr.bf16.mxu1 %v4428_v3 }
 0x546   :  { %v1520_v27 = vpop.f32.mrf.mxu0 }
 0x547   :  { %v1521_v23 = vadd.f32 %v1520_v27, %v1481_v46 }
 0x548   :  { %v1522_v18 = vpop.f32.mrf.mxu0 }
 0x549   :  { %v1568_v58 = vadd.f32 %v1521_v23, %v4430_v56  ;;  %v1523_v32 = vadd.f32 %v1522_v18, %v1481_v46 }
 0x54a   :  { %v1524_v15 = vpop.f32.mrf.mxu0 }
 0x54b   :  { %v1580_v51 = vpack.c.bf16 %v1568_v58, %v1568_v58  ;;  %2275 = vst [vmem:[%s4294_s19] sm:$0xff] %v1568_v58  ;;  %v1569_v11 = vadd.f32 %v1523_v32, %v4431_v22 }
 0x54c   :  { %v1525_v52 = vpop.f32.mrf.mxu0 }
 0x54d   :  { %v1581_v5 = vpack.c.bf16 %v1569_v11, %v1569_v11  ;;  %2276 = vst [vmem:[%s4294_s19 + $0x8] sm:$0xff] %v1569_v11  ;;  %v1603_v34 = vsel %vm490_vm8, %v1580_v51, 0 }
 0x54f   :  { %2316 = vmatprep.subr.msk.bf16.mxu0 %vm490_vm8, %v1581_v5 }
 0x550   :  { %1629 = vmatpush1.bf16.msra.mxu0 %v1603_v34  ;;  %v1720_v34 = vpop.permute.xlu1 %1719 }
 0x551   :  { %v1561_v9 = vpop.f32.mrf.mxu1 }
 0x552   :  { %v1562_v37 = vadd.f32 %v1561_v9, %v1481_v46 }
 0x553   :  { %v1563_v49 = vpop.f32.mrf.mxu1  ;;  %2317 = vmatmul.mubr.msk.bf16.vlgmr.msra.gmra.mxu0 %vm486_vm9, %v2364_v28 }
 0x554   :  { %v1570_v6 = vadd.f32 %v1562_v37, %v4432_v29  ;;  %v1564_v45 = vadd.f32 %v1563_v49, %v1481_v46  ;;  %1762 = vmatprep.mubr.bf16.mxu0 %v4428_v3  ;;  %v2365_v46 = vld [vmem:[%s4295_s17] sm:$0x1f]   ;;  %v3844_v9 = vpop.permute.xlu1 %1923 }
 0x555   :  { %v1565_v50 = vpop.f32.mrf.mxu1 }
 0x556   :  { %v1582_v10 = vpack.c.bf16 %v1570_v6, %v1570_v6  ;;  %2277 = vst [vmem:[%s4294_s19 + $0x10] sm:$0xff] %v1570_v6  ;;  %v1571_v4 = vadd.f32 %v1564_v45, %v3333_v14  ;;  %v3785_v14 = vld [vmem:[%s4296_s1 + $0x8] sm:$0x77] }
 0x557   :  { %v1566_v24 = vpop.f32.mrf.mxu1  ;;  %4433 = vst [vmem:[#allocation8_spill] sm:$0xff] %v3785_v14  ;;  %1927 = vrot.lane.b32.xlu1 %v3785_v14, %s2470_s8 }
 0x558   :  { %v1583_v54 = vpack.c.bf16 %v1571_v4, %v1571_v4  ;;  %2278 = vst [vmem:[%s4294_s19 + $0x18] sm:$0xff] %v1571_v4  ;;  %v1609_v55 = vsel %vm490_vm8, %v1582_v10, 0 }
 0x55a   :  { %2318 = vmatprep.subr.msk.bf16.mxu1 %vm490_vm8, %v1583_v54  ;;  %vm1816_vm8 = vcmask 1040384  }
 0x55b   :  { %1672 = vmatpush1.bf16.msra.mxu1 %v1609_v55  ;;  %1959 = vrot.lane.b32.xlu1 %v3780_v62, %s2473_s3 }
 0x55e   :  { %2319 = vmatmul.mubr.msk.bf16.vlgmr.msra.gmra.mxu1 %vm486_vm9, %v2364_v28  ;;  %v1715_v28 = vpop.permute.xlu0 %1714 }
 0x55f   :  { %1805 = vmatprep.mubr.bf16.mxu1 %v4428_v3  ;;  %v1920_v3 = vcombine.high %v3785_v14, %v3785_v14  ;;  %1963 = vrot.lane.b32.xlu1 %v3785_v14, %s2473_s3 }
 0x561   :  { %1929 = vrot.lane.b32.xlu0 %v1920_v3, %s2470_s8 }
 0x562   :  { %v3846_v37 = vpop.permute.xlu0 %1925 }
 0x563   :  { %1999 = vrot.lane.b32.xlu1 %v3780_v62, %s2474_s21 }
 0x565   :  { %1961 = vrot.lane.b32.xlu0 %v1919_v31, %s2473_s3 }
 0x567   :  { %2003 = vrot.lane.b32.xlu1 %v3785_v14, %s2474_s21 }
 0x569   :  { %1965 = vrot.lane.b32.xlu0 %v1920_v3, %s2473_s3 }
 0x56b   :  { %2039 = vrot.lane.b32.xlu1 %v3780_v62, %s2476_s0 }
 0x56d   :  { %2001 = vrot.lane.b32.xlu0 %v1919_v31, %s2474_s21 }
 0x56f   :  { %2043 = vrot.lane.b32.xlu1 %v3785_v14, %s2476_s0 }
 0x571   :  { %2005 = vrot.lane.b32.xlu0 %v1920_v3, %s2474_s21 }
 0x573   :  { %2115 = vrot.lane.b32.xlu1 %v3780_v62, %s2478_s22 }
 0x575   :  { %2041 = vrot.lane.b32.xlu0 %v1919_v31, %s2476_s0 }
 0x577   :  { %2119 = vrot.lane.b32.xlu1 %v3785_v14, %s2478_s22 }
 0x579   :  { %2045 = vrot.lane.b32.xlu0 %v1920_v3, %s2476_s0 }
 0x57b   :  { %2155 = vrot.lane.b32.xlu1 %v3780_v62, %s2480_s23 }
 0x57d   :  { %2117 = vrot.lane.b32.xlu0 %v1919_v31, %s2478_s22 }
 0x57f   :  { %2159 = vrot.lane.b32.xlu1 %v3785_v14, %s2480_s23 }
 0x581   :  { %2121 = vrot.lane.b32.xlu0 %v1920_v3, %s2478_s22 }
 0x583   :  { %2195 = vrot.lane.b32.xlu1 %v3780_v62, %s2482_s24 }
 0x585   :  { %2157 = vrot.lane.b32.xlu0 %v1919_v31, %s2480_s23 }
 0x587   :  { %2199 = vrot.lane.b32.xlu1 %v3785_v14, %s2482_s24 }
 0x589   :  { %2161 = vrot.lane.b32.xlu0 %v1920_v3, %s2480_s23 }
 0x58b   :  { %2235 = vrot.lane.b32.xlu1 %v3780_v62, %s2484_s4 }
 0x58d   :  { %2197 = vrot.lane.b32.xlu0 %v1919_v31, %s2482_s24 }
 0x58f   :  { %2239 = vrot.lane.b32.xlu1 %v3785_v14, %s2484_s4 }
 0x591   :  { %2201 = vrot.lane.b32.xlu0 %v1920_v3, %s2482_s24 }
 0x595   :  { %2237 = vrot.lane.b32.xlu0 %v1919_v31, %s2484_s4 }
 0x599   :  { %2241 = vrot.lane.b32.xlu0 %v1920_v3, %s2484_s4 }
 0x5c9   :  { %v3848_v49 = vpop.permute.xlu1 %1927 }
 0x5cd   :  { %v3852_v6 = vpop.permute.xlu1 %1959 }
 0x5d1   :  { %v3856_v50 = vpop.permute.xlu1 %1963 }
 0x5d3   :  { %v3850_v29 = vpop.permute.xlu0 %1929 }
 0x5d5   :  { %v3860_v24 = vpop.permute.xlu1 %1999 }
 0x5d7   :  { %v3854_v45 = vpop.permute.xlu0 %1961 }
 0x5db   :  { %v3858_v10 = vpop.permute.xlu0 %1965 }
 0x5df   :  { %v3862_v31 = vpop.permute.xlu0 %2001 }
 0x613   :  { %v1648_v42 = vpop.f32.mrf.mxu0 }
 0x614   :  { %v1649_v61 = vadd.f32 %v1648_v42, %v1587_v19 }
 0x615   :  { %v1650_v60 = vpop.f32.mrf.mxu0 }
 0x616   :  { %v1651_v47 = vadd.f32 %v1650_v60, %v1587_v19  ;;  %v1700_v16 = vmax.f32 %v1649_v61, 0.0 }
 0x617   :  { %v1652_v7 = vpop.f32.mrf.mxu0 }
 0x618   :  { %v1653_v57 = vadd.f32 %v1652_v7, %v1592_v21  ;;  %v1701_v39 = vmax.f32 %v1651_v47, 0.0  ;;  %v3865_v7 = vpop.permute.xlu1 %2003 }
 0x619   :  { %v1654_v59 = vpop.f32.mrf.mxu0 }
 0x61a   :  { %v1655_v35 = vadd.f32 %v1654_v59, %v1592_v21  ;;  %v1704_v48 = vmax.f32 %v1653_v57, 0.0 }
 0x61c   :  { %v1705_v53 = vmax.f32 %v1655_v35, 0.0  ;;  %v1708_v2 = vpack.c.bf16 %v1704_v48, %v1700_v16  ;;  %v3868_v48 = vpop.permute.xlu0 %2005 }
 0x61e   :  { %v1691_v30 = vpop.f32.mrf.mxu1  ;;  %v1709_v44 = vpack.c.bf16 %v1705_v53, %v1701_v39 }
 0x61f   :  { %v1692_v56 = vadd.f32 %v1691_v30, %v1587_v19 }
 0x620   :  { %v1693_v41 = vpop.f32.mrf.mxu1  ;;  %1744 = vmatprep.subr.bf16.mxu0 %v1709_v44  ;;  %v3870_v44 = vpop.permute.xlu1 %2039 }
 0x621   :  { %1745 = vmatpush1.bf16.msra.mxu0 %v1708_v2  ;;  %v1694_v23 = vadd.f32 %v1693_v41, %v1587_v19  ;;  %v1702_v11 = vmax.f32 %v1692_v56, 0.0  ;;  %v3872_v56 = vpop.permute.xlu0 %2041 }
 0x622   :  { %v1695_v27 = vpop.f32.mrf.mxu1 }
 0x623   :  { %v1696_v18 = vadd.f32 %v1695_v27, %v1592_v21  ;;  %v1703_v51 = vmax.f32 %v1694_v23, 0.0 }
 0x624   :  { %v1697_v58 = vpop.f32.mrf.mxu1  ;;  %2321 = vmatmul.mubr.msk.bf16.vlgmr.msra.gmra.mxu0 %vm806_vm12, %v2365_v46 }
 0x625   :  { %v1698_v32 = vadd.f32 %v1697_v58, %v1592_v21  ;;  %v1706_v15 = vmax.f32 %v1696_v18, 0.0 }
 0x627   :  { %v1707_v22 = vmax.f32 %v1698_v32, 0.0  ;;  %v1710_v5 = vpack.c.bf16 %v1706_v15, %v1702_v11 }
 0x629   :  { %v1711_v52 = vpack.c.bf16 %v1707_v22, %v1703_v51 }
 0x62b   :  { %1787 = vmatprep.subr.bf16.mxu1 %v1711_v52 }
 0x62c   :  { %1788 = vmatpush1.bf16.msra.mxu1 %v1710_v5 }
 0x62f   :  { %2322 = vmatmul.mubr.msk.bf16.vlgmr.msra.gmra.mxu1 %vm806_vm12, %v2365_v46 }
 0x6e4   :  { %v1764_v4 = vpop.f32.mrf.mxu0 }
 0x6e5   :  { %v1765_v42 = vadd.f32 %v1764_v4, %v1715_v28  ;;  %v3875_v4 = vpop.permute.xlu1 %2043 }
 0x6e6   :  { %v1766_v54 = vpop.f32.mrf.mxu0 }
 0x6e7   :  { %v1767_v47 = vadd.f32 %v1766_v54, %v1715_v28 }
 0x6e8   :  { %v1768_v55 = vpop.f32.mrf.mxu0 }
 0x6e9   :  { %v1769_v3 = vadd.f32 %v1768_v55, %v1720_v34 }
 0x6ea   :  { %v1770_v60 = vpop.f32.mrf.mxu0 }
 0x6eb   :  { %v1817_v21 = vsel %vm1816_vm8, %v1769_v3, -inf  ;;  %v1771_v19 = vadd.f32 %v1770_v60, %v1720_v34 }
 0x6ec   :  { %v1818_v57 = vmax.f32 %v1765_v42, %v1817_v21 }
 0x6ed   :  { %v1825_v61 = vsel %vm1816_vm8, %v1771_v19, -inf }
 0x6ee   :  { %v1819_v59 = vrot.slane %v1818_v57, 4  ;;  %v1826_v35 = vmax.f32 %v1767_v47, %v1825_v61 }
 0x6ef   :  { %v1807_v39 = vpop.f32.mrf.mxu1 }
 0x6f0   :  { %v1820_v53 = vmax.f32 %v1818_v57, %v1819_v59  ;;  %v1827_v16 = vrot.slane %v1826_v35, 4  ;;  %v1808_v58 = vadd.f32 %v1807_v39, %v1715_v28  ;;  %v3878_v39 = vpop.permute.xlu0 %2045 }
 0x6f1   :  { %v1809_v30 = vpop.f32.mrf.mxu1 }
 0x6f2   :  { %v1821_v2 = vrot.slane %v1820_v53, 2  ;;  %v1828_v41 = vmax.f32 %v1826_v35, %v1827_v16  ;;  %v1810_v52 = vadd.f32 %v1809_v30, %v1715_v28 }
 0x6f3   :  { %v1811_v46 = vpop.f32.mrf.mxu1 }
 0x6f4   :  { %v1822_v27 = vmax.f32 %v1820_v53, %v1821_v2  ;;  %v1829_v23 = vrot.slane %v1828_v41, 2  ;;  %v1812_v18 = vadd.f32 %v1811_v46, %v1720_v34 }
 0x6f5   :  { %v1813_v32 = vpop.f32.mrf.mxu1 }
 0x6f6   :  { %v1823_v15 = vrot.slane %v1822_v27, 1  ;;  %v1830_v51 = vmax.f32 %v1828_v41, %v1829_v23  ;;  %v1833_v22 = vsel %vm1816_vm8, %v1812_v18, -inf  ;;  %v1814_v11 = vadd.f32 %v1813_v32, %v1720_v34  ;;  %v3880_v23 = vpop.permute.xlu1 %2115 }
 0x6f7   :  { %v1834_v5 = vmax.f32 %v1808_v58, %v1833_v22 }
 0x6f8   :  { %v1824_v54 = vmax.f32 %v1822_v27, %v1823_v15  ;;  %v1831_v55 = vrot.slane %v1830_v51, 1  ;;  %v1841_v60 = vsel %vm1816_vm8, %v1814_v11, -inf }
 0x6f9   :  { %v1835_v21 = vrot.slane %v1834_v5, 4  ;;  %v1842_v57 = vmax.f32 %v1810_v52, %v1841_v60 }
 0x6fa   :  { %v1849_v61 = vsub.f32 %v1765_v42, %v1824_v54  ;;  %v1853_v59 = vsub.f32 %v1769_v3, %v1824_v54  ;;  %v1832_v35 = vmax.f32 %v1830_v51, %v1831_v55  ;;  %v3882_v3 = vpop.permute.xlu0 %2117 }
 0x6fb   :  { %v1836_v53 = vmax.f32 %v1834_v5, %v1835_v21  ;;  %v1843_v16 = vrot.slane %v1842_v57, 4 }
 0x6fc   :  { %v1857_v2 = vmul.f32 1.442695, %v1849_v61  ;;  %v1865_v41 = vmul.f32 1.442695, %v1853_v59  ;;  %v1850_v34 = vsub.f32 %v1767_v47, %v1832_v35  ;;  %v1854_v28 = vsub.f32 %v1771_v19, %v1832_v35  ;;  %v3884_v47 = vpop.permute.xlu1 %2119 }
 0x6fd   :  { %v1837_v30 = vrot.slane %v1836_v53, 2  ;;  %v1844_v46 = vmax.f32 %v1842_v57, %v1843_v16 }
 0x6fe   :  { %2432 = vpow2.f32 %v1857_v2  ;;  %v1859_v27 = vmul.f32 1.442695, %v1850_v34  ;;  %v1867_v32 = vmul.f32 1.442695, %v1854_v28  ;;  %v3886_v21 = vpop.permute.xlu0 %2121 }
 0x6ff   :  { %2434 = vpow2.f32 %v1865_v41  ;;  %v1838_v15 = vmax.f32 %v1836_v53, %v1837_v30  ;;  %v1845_v42 = vrot.slane %v1844_v46, 2 }
 0x700   :  { %2436 = vpow2.f32 %v1859_v27  ;;  %v3888_v2 = vpop.permute.xlu1 %2155 }
 0x701   :  { %2438 = vpow2.f32 %v1867_v32  ;;  %v1839_v51 = vrot.slane %v1838_v15, 1  ;;  %v1846_v22 = vmax.f32 %v1844_v46, %v1845_v42 }
 0x703   :  { %v1840_v5 = vmax.f32 %v1838_v15, %v1839_v51  ;;  %v1847_v54 = vrot.slane %v1846_v22, 1 }
 0x704   :  { %v3905_v46 = vpop.permute.xlu1 %2159 }
 0x705   :  { %v1851_v19 = vsub.f32 %v1808_v58, %v1840_v5  ;;  %v1855_v55 = vsub.f32 %v1812_v18, %v1840_v5  ;;  %v1848_v60 = vmax.f32 %v1846_v22, %v1847_v54  ;;  %v3894_v18 = vpop.permute.xlu0 %2157  ;;  %v1933_v54 = vsel %vm91_vm0, %v3844_v9, %v3846_v37 }
 0x707   :  { %v1861_v57 = vmul.f32 1.442695, %v1851_v19  ;;  %v1869_v61 = vmul.f32 1.442695, %v1855_v55  ;;  %v1852_v59 = vsub.f32 %v1810_v52, %v1848_v60  ;;  %v1856_v35 = vsub.f32 %v1814_v11, %v1848_v60 }
 0x708   :  { %v1932_v19 = vsel %vm91_vm0, %v3846_v37, %v3848_v49  ;;  %v1934_v55 = vsel %vm91_vm0, %v3850_v29, %v3844_v9  ;;  %v3922_v60 = vpop.permute.xlu1 %2195 }
 0x709   :  { %2440 = vpow2.f32 %v1861_v57  ;;  %v1863_v53 = vmul.f32 1.442695, %v1852_v59  ;;  %v1871_v16 = vmul.f32 1.442695, %v1856_v35  ;;  %v3908_v51 = vpop.permute.xlu0 %2161  ;;  %v1931_v35 = vsel %vm91_vm0, %v3848_v49, %v3850_v29 }
 0x70a   :  { %2442 = vpow2.f32 %v1869_v61 }
 0x70b   :  { %v3890_v41 = vpop.eup %2432  ;;  %2444 = vpow2.f32 %v1863_v53 }
 0x70c   :  { %v3892_v34 = vpop.eup %2434  ;;  %2446 = vpow2.f32 %v1871_v16  ;;  %v4436_v16 = vld [vmem:[#allocation7_spill] sm:$0xff] }
 0x70d   :  { %v3896_v58 = vpop.eup %2436  ;;  %v1873_v52 = vsel %vm1816_vm8, %v3892_v34, 0.0  ;;  %v3933_v37 = vmul.f32 %v1933_v54, %v4436_v16  ;;  %v1967_v16 = vsel %vm133_vm1, %v3856_v50, %v3858_v10 }
 0x70e   :  { %v3900_v11 = vpop.eup %2438  ;;  %v1874_v28 = vadd.f32 %v3890_v41, %v1873_v52  ;;  %v3936_v52 = vmul.f32 %v1932_v19, %v4414_v36  ;;  %v1969_v36 = vsel %vm133_vm1, %v3852_v6, %v3854_v45 }
 0x70f   :  { %4434 = vst [vmem:[#allocation10_spill] sm:$0xff] %v3900_v11  ;;  %v1881_v30 = vsel %vm1816_vm8, %v3900_v11, 0.0  ;;  %v4441_v11 = vld [vmem:[#allocation14_spill] sm:$0xff] }
 0x710   :  { %v1875_v27 = vrot.slane %v1874_v28, 4  ;;  %v1882_v32 = vadd.f32 %v3896_v58, %v1881_v30 }
 0x712   :  { %v1876_v15 = vadd.f32 %v1875_v27, %v1874_v28  ;;  %v1883_v42 = vrot.slane %v1882_v32, 4 }
 0x714   :  { %v1877_v22 = vrot.slane %v1876_v15, 2  ;;  %v1884_v5 = vadd.f32 %v1883_v42, %v1882_v32  ;;  %v4437_v32 = vld [vmem:[#allocation9_spill] sm:$0xff]  ;;  %v3945_v42 = vpop.permute.xlu0 %2197 }
 0x716   :  { %v3924_v57 = vpop.eup %2440  ;;  %v1878_v61 = vadd.f32 %v1877_v22, %v1876_v15  ;;  %v1885_v59 = vrot.slane %v1884_v5, 2  ;;  %v3943_v15 = vmul.f32 %v1934_v55, %v4437_v32  ;;  %v3951_v22 = vmul.f32 %v1931_v35, %v4417_v25 }
 0x717   :  { %v3930_v53 = vpop.eup %2442  ;;  %v1970_v25 = vsel %vm133_vm1, %v3858_v10, %v3852_v6  ;;  %v4440_v6 = vld [vmem:[#allocation13_spill] sm:$0xff]  ;;  %v3990_v10 = vmul.f32 %v1967_v16, %v2837_v63  ;;  %v2049_v63 = vsel %vm223_vm3, %v3870_v44, %v3872_v56 }
 0x718   :  { %4435 = vst [vmem:[#allocation16_spill] sm:$0xff] %v3930_v53  ;;  %v3938_v9 = vpop.eup %2444  ;;  %v1879_v28 = vrot.slane %v1878_v61, 1  ;;  %v1886_v30 = vadd.f32 %v1885_v59, %v1884_v5  ;;  %v1889_v27 = vsel %vm1816_vm8, %v3930_v53, 0.0  ;;  %v1968_v5 = vsel %vm133_vm1, %v3854_v45, %v3856_v50 }
 0x719   :  { %v3947_v49 = vpop.eup %2446  ;;  %v1890_v29 = vadd.f32 %v3924_v57, %v1889_v27  ;;  %v2009_v45 = vsel %vm178_vm2, %v3860_v24, %v3862_v31  ;;  %v4439_v27 = vld [vmem:[#allocation12_spill] sm:$0xff]  ;;  %v3983_v14 = vmul.f32 %v1970_v25, %v4441_v11  ;;  %v2008_v50 = vsel %vm178_vm2, %v3862_v31, %v3865_v7  ;;  %v4442_v25 = vld [vmem:[#allocation17_spill] sm:$0xff] }
 0x71a   :  { %4438 = vst [vmem:[#allocation18_spill] sm:$0xff] %v3947_v49  ;;  %v1880_v54 = vadd.f32 %v1879_v28, %v1878_v61  ;;  %v1887_v19 = vrot.slane %v1886_v30, 1  ;;  %v1897_v55 = vsel %vm1816_vm8, %v3947_v49, 0.0  ;;  %v2200_v61 = vpop.permute.xlu1 %2199  ;;  %v3977_v32 = vmul.f32 %v1969_v36, %v4439_v27  ;;  %v2202_v36 = vpop.permute.xlu0 %2201 }
 0x71b   :  { %v1891_v59 = vrot.slane %v1890_v29, 4  ;;  %v1898_v35 = vadd.f32 %v3938_v9, %v1897_v55  ;;  %v3980_v49 = vmul.f32 %v1968_v5, %v4440_v6  ;;  %v2007_v31 = vsel %vm178_vm2, %v3865_v7, %v3868_v48 }
 0x71c   :  { %2448 = vrcp.f32 %v1880_v54  ;;  %v1888_v28 = vadd.f32 %v1887_v19, %v1886_v30  ;;  %v3993_v30 = vmul.f32 %v2009_v45, %v2842_v1  ;;  %v4008_v1 = vmul.f32 %v2008_v50, %v4419_v8  ;;  %v4444_v50 = vld [vmem:[#allocation2_spill] sm:$0xff] }
 0x71d   :  { %v1892_v55 = vadd.f32 %v1891_v59, %v1890_v29  ;;  %v1899_v53 = vrot.slane %v1898_v35, 4  ;;  %v2010_v29 = vsel %vm178_vm2, %v3868_v48, %v3860_v24  ;;  %v2048_v24 = vsel %vm223_vm3, %v3872_v56, %v3875_v4 }
 0x71e   :  { %2450 = vrcp.f32 %v1888_v28  ;;  %v2050_v7 = vsel %vm223_vm3, %v3878_v39, %v3870_v44  ;;  %v2125_v8 = vsel %vm280_vm4, %v3880_v23, %v3882_v3  ;;  %v2124_v56 = vsel %vm280_vm4, %v3882_v3, %v3884_v47  ;;  %v2236_v19 = vpop.permute.xlu1 %2235  ;;  %v2238_v6 = vpop.permute.xlu0 %2237 }
 0x71f   :  { %v1893_v11 = vrot.slane %v1892_v55, 2  ;;  %v1900_v5 = vadd.f32 %v1899_v53, %v1898_v35  ;;  %v2047_v53 = vsel %vm223_vm3, %v3875_v4, %v3878_v39  ;;  %v2011_v4 = vmul.f32 %v2010_v29, %v4442_v25  ;;  %v4449_v25 = vld [vmem:[#allocation29_spill] sm:$0xff] }
 0x720   :  { %v4032_v59 = vmul.f32 %v2007_v31, %v4420_v33  ;;  %v4035_v44 = vmul.f32 %v2049_v63, %v2869_v12  ;;  %v2126_v39 = vsel %vm280_vm4, %v3886_v21, %v3880_v23  ;;  %v4042_v45 = vmul.f32 %v2048_v24, %v2873_v13  ;;  %v4443_v33 = vld [vmem:[#allocation20_spill] sm:$0xff] }
 0x721   :  { %v1894_v48 = vadd.f32 %v1893_v11, %v1892_v55  ;;  %v1901_v54 = vrot.slane %v1900_v5, 2  ;;  %v2123_v3 = vsel %vm280_vm4, %v3884_v47, %v3886_v21  ;;  %v2051_v28 = vmul.f32 %v2050_v7, %v4443_v33  ;;  %v4445_v24 = vld [vmem:[#allocation24_spill] sm:$0xff]  ;;  %v4446_v7 = vld [vmem:[#allocation26_spill] sm:$0xff] }
 0x722   :  { %v4050_v12 = vmul.f32 %v2047_v53, %v2887_v17  ;;  %v4053_v27 = vmul.f32 %v2125_v8, %v2895_v0  ;;  %v4056_v23 = vmul.f32 %v2124_v56, %v2903_v26  ;;  %v4059_v29 = vsub.s32 4, %v4444_v50  ;;  %v2242_v56 = vpop.permute.xlu0 %2241  ;;  %v2464_v33 = vld [vmem:[%s4284_s2 + $0x20] ss:$0 sm:$0xff] }
 0x723   :  { %v1895_v35 = vrot.slane %v1894_v48, 1  ;;  %v1902_v16 = vadd.f32 %v1901_v54, %v1900_v5  ;;  %v4062_v11 = vmul.f32 %v2126_v39, %v4402_v40  ;;  %v4065_v47 = vmul.f32 %v2123_v3, %v4404_v20  ;;  %v2240_v5 = vpop.permute.xlu1 %2239 }
 0x724   :  { %v2165_v0 = vsel %vm325_vm5, %v3888_v2, %v3894_v18  ;;  %v2164_v17 = vsel %vm325_vm5, %v3894_v18, %v3905_v46  ;;  %v2166_v26 = vsel %vm325_vm5, %v3908_v51, %v3888_v2  ;;  %v2163_v20 = vsel %vm325_vm5, %v3905_v46, %v3908_v51 }
 0x725   :  { %v1896_v55 = vadd.f32 %v1895_v35, %v1894_v48  ;;  %v1903_v13 = vrot.slane %v1902_v16, 1  ;;  %v2205_v21 = vsel %vm370_vm6, %v3922_v60, %v3945_v42  ;;  %v2204_v18 = vsel %vm370_vm6, %v3945_v42, %v2200_v61  ;;  %v4450_v35 = vld [vmem:[#allocation30_spill] sm:$0xff] }
 0x726   :  { %v2203_v2 = vsel %vm370_vm6, %v2200_v61, %v2202_v36  ;;  %v2206_v31 = vsel %vm370_vm6, %v2202_v36, %v3922_v60  ;;  %v2245_v46 = vsel %vm415_vm7, %v2236_v19, %v2238_v6  ;;  %v2167_v63 = vmul.f32 %v2165_v0, %v2916_v38  ;;  %v4447_v61 = vld [vmem:[#allocation25_spill] sm:$0xff]  ;;  %v4448_v60 = vld [vmem:[#allocation28_spill] sm:$0xff] }
 0x727   :  { %2452 = vrcp.f32 %v1896_v55  ;;  %v1904_v40 = vadd.f32 %v1903_v13, %v1902_v16  ;;  %v4099_v53 = vmul.f32 %v2164_v17, %v4445_v24  ;;  %v4102_v48 = vmul.f32 %v2166_v26, %v4446_v7  ;;  %v4452_v13 = vld [vmem:[#allocation4_spill] sm:$0xff]  ;;  %v4453_v0 = vld [vmem:[#allocation5_spill] sm:$0xff]  ;;  %v4454_v26 = vld [vmem:[#allocation6_spill] sm:$0xff] }
 0x728   :  { %v4108_v54 = vmul.f32 %v2163_v20, %v4447_v61  ;;  %v4111_v36 = vmul.f32 %v2205_v21, %v4448_v60  ;;  %v2244_v8 = vsel %vm415_vm7, %v2238_v6, %v2240_v5  ;;  %v4118_v39 = vmul.f32 %v2204_v18, %v4449_v25  ;;  %v4455_v20 = vld [vmem:[#allocation11_spill] sm:$0xff] }
 0x729   :  { %v2449_v51 = vpop.eup %2448  ;;  %2454 = vrcp.f32 %v1904_v40  ;;  %v4121_v16 = vmul.f32 %v2203_v2, %v4450_v35  ;;  %v4129_v55 = vmul.f32 %v2464_v33, %v2245_v46  ;;  %v2465_v18 = vld [vmem:[%s4284_s2 + $0x28] ss:$0 sm:$0xff] }
 0x72a   :  { %v4105_v42 = vmul.f32 %v2449_v51, %v3890_v41  ;;  %v4451_v41 = vld [vmem:[#allocation31_spill] sm:$0xff]  ;;  %v4146_v2 = vmul.f32 %v2465_v18, %v2244_v8 }
 0x72b   :  { %v4115_v38 = vpop.eup %2450  ;;  %v4124_v3 = vmul.f32 %v2206_v31, %v4451_v41  ;;  %v2246_v31 = vsel %vm415_vm7, %v2242_v56, %v2236_v19  ;;  %v4457_v33 = vld [vmem:[#allocation19_spill] sm:$0xff] }
 0x72c   :  { %v4133_v6 = vmul.f32 %v4115_v38, %v3896_v58  ;;  %v1942_v50 = vrot.slane %v4105_v42, %v4452_v13  ;;  %v1978_v17 = vrot.slane %v4105_v42, %v4453_v0  ;;  %v2018_v40 = vrot.slane %v4105_v42, %v4454_v26 }
 0x72d   :  { %v2058_v21 = vrot.slane %v4105_v42, %v4455_v20  ;;  %v2243_v58 = vsel %vm415_vm7, %v2240_v5, %v2242_v56  ;;  %v2082_v43 = vrot.slane %v4105_v42, %v4059_v29 }
 0x72e   :  { %v1946_v46 = vrot.slane %v4133_v6, %v4452_v13  ;;  %v1955_v24 = vmul.f32 %v1942_v50, %v3943_v15  ;;  %v1982_v7 = vrot.slane %v4133_v6, %v4453_v0  ;;  %v1991_v61 = vmul.f32 %v1978_v17, %v3983_v14  ;;  %v4456_v14 = vld [vmem:[#allocation15_spill] sm:$0xff] }
 0x72f   :  { %v2022_v60 = vrot.slane %v4133_v6, %v4454_v26  ;;  %v2031_v8 = vmul.f32 %v2018_v40, %v2011_v4  ;;  %v2062_v5 = vrot.slane %v4133_v6, %v4455_v20  ;;  %v2086_v25 = vrot.slane %v4133_v6, %v4059_v29 }
 0x730   :  { %v1956_v19 = vmul.f32 %v1946_v46, %v3933_v37  ;;  %v1992_v56 = vmul.f32 %v1982_v7, %v3977_v32  ;;  %v1995_v15 = vadd.f32 %v1991_v61, %v1955_v24  ;;  %v2071_v35 = vmul.f32 %v2058_v21, %v2051_v28  ;;  %v2466_v28 = vld [vmem:[%s4284_s2 + $0x30] ss:$0 sm:$0xff]  ;;  %v2467_v24 = vld [vmem:[%s4284_s2 + $0x38] ss:$0 sm:$0xff] }
 0x731   :  { %v2134_v41 = vrot.slane %v4105_v42, %v4456_v14  ;;  %v2138_v4 = vrot.slane %v4133_v6, %v4456_v14  ;;  %v2174_v50 = vrot.slane %v4105_v42, %v4457_v33  ;;  %v2032_v40 = vmul.f32 %v2022_v60, %v3993_v30 }
 0x732   :  { %v1996_v17 = vadd.f32 %v1992_v56, %v1956_v19  ;;  %v2035_v37 = vadd.f32 %v2031_v8, %v1995_v15  ;;  %v2099_v18 = vcombine.low %v2082_v43, %v2086_v25  ;;  %v2072_v32 = vmul.f32 %v2062_v5, %v4035_v44  ;;  %v4458_v15 = vld [vmem:[#allocation27_spill] sm:$0xff] }
 0x733   :  { %v4177_v46 = vmul.f32 %v2449_v51, %v3892_v34  ;;  %v4182_v21 = vmul.f32 %v2466_v28, %v2243_v58  ;;  %v4187_v7 = vmul.f32 %v2467_v24, %v2246_v31  ;;  %v2178_v34 = vrot.slane %v4133_v6, %v4457_v33 }
 0x734   :  { %v4189_v30 = vpop.eup %2452  ;;  %v2036_v61 = vadd.f32 %v2032_v40, %v1996_v17  ;;  %v2075_v60 = vadd.f32 %v2071_v35, %v2035_v37  ;;  %v2103_v44 = vmul.f32 %v2099_v18, %v3780_v62  ;;  %v2147_v58 = vmul.f32 %v2134_v41, %v4053_v27 }
 0x735   :  { %v4196_v51 = vmul.f32 %v4189_v30, %v3924_v57  ;;  %v2148_v8 = vmul.f32 %v2138_v4, %v4056_v23  ;;  %v2187_v5 = vmul.f32 %v2174_v50, %v2167_v63  ;;  %v2214_v25 = vrot.slane %v4105_v42, %v4458_v15 }
 0x736   :  { %v2455_v31 = vpop.eup %2454  ;;  %v2076_v43 = vadd.f32 %v2072_v32, %v2036_v61  ;;  %v2111_v19 = vadd.f32 %v2103_v44, %v2075_v60  ;;  %v2107_v56 = vcombine.high %v2103_v44, %v2103_v44  ;;  %v2188_v41 = vmul.f32 %v2178_v34, %v4099_v53 }
 0x737   :  { %v4203_v62 = vmul.f32 %v2455_v31, %v3938_v9  ;;  %v1950_v35 = vrot.slane %v4196_v51, %v4452_v13  ;;  %v1986_v57 = vrot.slane %v4196_v51, %v4453_v0  ;;  %v2026_v27 = vrot.slane %v4196_v51, %v4454_v26 }
 0x738   :  { %v2066_v23 = vrot.slane %v4196_v51, %v4455_v20  ;;  %v2112_v63 = vadd.f32 %v2107_v56, %v2076_v43  ;;  %v2218_v42 = vrot.slane %v4133_v6, %v4458_v15  ;;  %v2151_v18 = vadd.f32 %v2147_v58, %v2111_v19  ;;  %v4459_v43 = vld [vmem:[#allocation8_spill] sm:$0xff] }
 0x739   :  { %v1957_v9 = vmul.f32 %v1950_v35, %v3936_v52  ;;  %v1954_v4 = vrot.slane %v4203_v62, %v4452_v13  ;;  %v1993_v50 = vmul.f32 %v1986_v57, %v3980_v49  ;;  %v1990_v17 = vrot.slane %v4203_v62, %v4453_v0 }
 0x73a   :  { %v2033_v40 = vmul.f32 %v2026_v27, %v4008_v1  ;;  %v2030_v37 = vrot.slane %v4203_v62, %v4454_v26  ;;  %v2070_v53 = vrot.slane %v4203_v62, %v4455_v20  ;;  %v2152_v28 = vadd.f32 %v2148_v8, %v2112_v63  ;;  %v4460_v63 = vld [vmem:[#allocation10_spill] sm:$0xff] }
 0x73b   :  { %v1958_v6 = vmul.f32 %v1954_v4, %v3951_v22  ;;  %v1997_v52 = vadd.f32 %v1993_v50, %v1957_v9  ;;  %v1994_v32 = vmul.f32 %v1990_v17, %v3990_v10  ;;  %v2073_v49 = vmul.f32 %v2066_v23, %v4042_v45 }
 0x73c   :  { %v2090_v0 = vrot.slane %v4196_v51, %v4059_v29  ;;  %v2094_v1 = vrot.slane %v4203_v62, %v4059_v29  ;;  %v2142_v26 = vrot.slane %v4196_v51, %v4456_v14  ;;  %v2034_v61 = vmul.f32 %v2030_v37, %v4032_v59 }
 0x73d   :  { %v1998_v24 = vadd.f32 %v1994_v32, %v1958_v6  ;;  %v2037_v20 = vadd.f32 %v2033_v40, %v1997_v52  ;;  %v2146_v22 = vrot.slane %v4203_v62, %v4456_v14  ;;  %v2074_v10 = vmul.f32 %v2070_v53, %v4050_v12 }
 0x73e   :  { %v2100_v60 = vcombine.low %v2090_v0, %v2094_v1  ;;  %v2182_v45 = vrot.slane %v4196_v51, %v4457_v33  ;;  %v2254_v44 = vrot.slane %v4177_v46, %v4452_v13  ;;  %v2191_v58 = vadd.f32 %v2187_v5, %v2151_v18 }
 0x73f   :  { %v2038_v29 = vadd.f32 %v2034_v61, %v1998_v24  ;;  %v2077_v34 = vadd.f32 %v2073_v49, %v2037_v20  ;;  %v2192_v8 = vadd.f32 %v2188_v41, %v2152_v28  ;;  %v2149_v59 = vmul.f32 %v2142_v26, %v4065_v47 }
 0x740   :  { %v2104_v19 = vmul.f32 %v2100_v60, %v4459_v43  ;;  %v2227_v56 = vmul.f32 %v2214_v25, %v4111_v36  ;;  %v2228_v14 = vmul.f32 %v2218_v42, %v4118_v39  ;;  %v2150_v35 = vmul.f32 %v2146_v22, %v4062_v11  ;;  %v4461_v25 = vld [vmem:[#allocation16_spill] sm:$0xff]  ;;  %v4462_v42 = vld [vmem:[#allocation18_spill] sm:$0xff] }
 0x741   :  { %v2078_v12 = vadd.f32 %v2074_v10, %v2038_v29  ;;  %v2186_v57 = vrot.slane %v4203_v62, %v4457_v33  ;;  %v2222_v46 = vrot.slane %v4196_v51, %v4458_v15  ;;  %v2189_v23 = vmul.f32 %v2182_v45, %v4108_v54 }
 0x742   :  { %v2108_v27 = vcombine.high %v2104_v19, %v2104_v19  ;;  %v2113_v5 = vadd.f32 %v2104_v19, %v2077_v34  ;;  %v1914_v47 = vmul.f32 %v4115_v38, %v4460_v63  ;;  %v2231_v41 = vadd.f32 %v2227_v56, %v2191_v58 }
 0x743   :  { %v2232_v36 = vadd.f32 %v2228_v14, %v2192_v8  ;;  %v1915_v39 = vmul.f32 %v4189_v30, %v4461_v25  ;;  %v1916_v11 = vmul.f32 %v2455_v31, %v4462_v42  ;;  %v2226_v33 = vrot.slane %v4203_v62, %v4458_v15 }
 0x744   :  { %v2114_v9 = vadd.f32 %v2108_v27, %v2078_v12  ;;  %v2153_v4 = vadd.f32 %v2149_v59, %v2113_v5  ;;  %v2258_v51 = vrot.slane %v1914_v47, %v4452_v13  ;;  %v2190_v50 = vmul.f32 %v2186_v57, %v4102_v48 }
 0x745   :  { %v2229_v54 = vmul.f32 %v2222_v46, %v4121_v16  ;;  %v2267_v38 = vmul.f32 %v2254_v44, %v4129_v55  ;;  %v2262_v17 = vrot.slane %v1915_v39, %v4452_v13  ;;  %v2266_v31 = vrot.slane %v1916_v11, %v4452_v13 }
 0x746   :  { %v2154_v40 = vadd.f32 %v2150_v35, %v2114_v9  ;;  %v2193_v37 = vadd.f32 %v2189_v23, %v2153_v4  ;;  %v2268_v30 = vmul.f32 %v2258_v51, %v4146_v2  ;;  %v2230_v15 = vmul.f32 %v2226_v33, %v4124_v3 }
 0x747   :  { %v2271_v53 = vadd.f32 %v2267_v38, %v2231_v41  ;;  %v2269_v16 = vmul.f32 %v2262_v17, %v4182_v21  ;;  %v2270_v55 = vmul.f32 %v2266_v31, %v4187_v7 }
 0x748   :  { %v2194_v18 = vadd.f32 %v2190_v50, %v2154_v40  ;;  %v2233_v62 = vadd.f32 %v2229_v54, %v2193_v37  ;;  %v2272_v6 = vadd.f32 %v2268_v30, %v2232_v36 }
 0x74a   :  { %v2234_v52 = vadd.f32 %v2230_v15, %v2194_v18  ;;  %v2283_v48 = vcombine.low %v2271_v53, %v2272_v6  ;;  %v2273_v32 = vadd.f32 %v2269_v16, %v2233_v62 }
 0x74c   :  { %2287 = vst [vmem:[%s4297_s20] sm:$0x77] %v2283_v48  ;;  %v2274_v2 = vadd.f32 %v2270_v55, %v2234_v52 }
 0x74e   :  { %v2284_v28 = vcombine.low %v2273_v32, %v2274_v2 }
 0x750   :  { %2288 = vst [vmem:[%s4297_s20 + $0x8] sm:$0x77] %v2284_v28 }

</bundles_post_ra>
